<compile_context>
chip_gen: v7x
topology: tpu7x:2x2x1
jax: 0.10.0
libtpu: 0.0.40
codegen_flags: <defaults>
</compile_context>

<pallas_src>
import jax
import jax.numpy as jnp
from jax.experimental import pallas as pl
from jax.experimental.pallas import tpu as pltpu


def _round_up(x, m):
    return ((x + m - 1) // m) * m


def _tgc_kernel(x_ref, w_ref, b_ref, o_ref):
    """One batch block per grid step; batch on lanes, time on sublanes.

    x_ref : (Cin, Tp, Bblk)    VMEM  input block
    w_ref : (K*Cin*3*Cout,)    SMEM  fused conv1|conv2|conv3 taps, flat
    b_ref : (3*Cout,)          SMEM  fused biases
    o_ref : (Cout, Tp, Bblk)   VMEM  output block
    """
    Cin, Tp, Bblk = x_ref.shape
    Cout = o_ref.shape[0]
    C3 = 3 * Cout
    K = w_ref.shape[0] // (Cin * C3)
    pad_l = (K - 1) // 2

    x = x_ref[...]                                   # (Cin, Tp, Bblk) f32

    def time_shift(v, s):
        # y[:, t, :] = v[:, t + s, :], zero outside [0, Tp)  ('same' padding).
        if s == 0:
            return v
        if s > 0:
            z = jnp.zeros((Cin, s, Bblk), v.dtype)
            return jnp.concatenate([v[:, s:, :], z], axis=1)
        z = jnp.zeros((Cin, -s, Bblk), v.dtype)
        return jnp.concatenate([z, v[:, :Tp + s, :]], axis=1)

    # K shifted copies of the block (cheap VMEM copies, reused by every tap).
    xs = [time_shift(x, k - pad_l) for k in range(K)]

    # Static unroll: one output channel at a time keeps live values small
    # (p, q, r accumulators + one input slab), so no spill-store pressure.
    for co in range(Cout):
        p = jnp.full((Tp, Bblk), b_ref[co], jnp.float32)
        q = jnp.full((Tp, Bblk), b_ref[Cout + co], jnp.float32)
        r = jnp.full((Tp, Bblk), b_ref[2 * Cout + co], jnp.float32)
        for k in range(K):
            for ci in range(Cin):
                xv = xs[k][ci]                       # (Tp, Bblk) lane-dense slab
                base = (k * Cin + ci) * C3
                p = p + xv * w_ref[base + co]        # scalar-broadcast MACs
                q = q + xv * w_ref[base + Cout + co]
                r = r + xv * w_ref[base + 2 * Cout + co]
        h = jnp.maximum(p * jax.nn.sigmoid(q) + r, 0.0)
        o_ref[co] = h.astype(o_ref.dtype)            # full-lane, unmasked store


def temporal_gated_conv(x_nct, w1, w2, w3, b1, b2, b3,
                        kernel_size=3, block_b=512):
    """x_nct: (B, Cin, T) f32.  wX: (K, Cin, Cout) (torch weight transposed
    (2,1,0)).  bX: (Cout,).  Returns (B, Cout, T), same convention as the
    PyTorch module."""
    B, Cin, T = x_nct.shape
    K, Cin_w, Cout = w1.shape
    assert K == kernel_size and Cin_w == Cin
    assert w2.shape == w1.shape and w3.shape == w1.shape
    C3 = 3 * Cout

    # Fuse the three convs: flat weights indexed (k*Cin + ci)*C3 + c3 with
    # c3 = [conv1 | conv2 | conv3]; done once on tiny arrays.
    w_f = jnp.concatenate([w1, w2, w3], axis=-1).reshape(K * Cin * C3)
    b_f = jnp.concatenate([b1, b2, b3])

    # Relayout: batch -> lane (minor) axis, time -> sublane axis.  Zero-pad
    # time to a sublane multiple (safe: 'same' padding is zero anyway) and
    # batch to a lane-block multiple.
    Tp = _round_up(T, 8)
    Bblk = max(128, (min(block_b, _round_up(B, 128)) // 128) * 128)
    n_blk = pl.cdiv(B, Bblk)
    Bp = n_blk * Bblk

    x_t = jnp.transpose(x_nct, (1, 2, 0))            # (Cin, T, B)
    if (Tp, Bp) != (T, B):
        x_t = jnp.pad(x_t, ((0, 0), (0, Tp - T), (0, Bp - B)))

    out_t = pl.pallas_call(
        _tgc_kernel,
        out_shape=jax.ShapeDtypeStruct((Cout, Tp, Bp), jnp.float32),
        grid=(n_blk,),
        in_specs=[
            pl.BlockSpec((Cin, Tp, Bblk), lambda g: (0, 0, g)),
            pl.BlockSpec(memory_space=pltpu.MemorySpace.SMEM),   # fused weights
            pl.BlockSpec(memory_space=pltpu.MemorySpace.SMEM),   # fused biases
        ],
        out_specs=pl.BlockSpec((Cout, Tp, Bblk), lambda g: (0, 0, g)),
        compiler_params=pltpu.CompilerParams(
            dimension_semantics=("parallel",),
            vmem_limit_bytes=32 * 1024 * 1024,
        ),
    )(x_t, w_f, b_f)

    # Slice off padding and return to the module's (B, Cout, T) layout.
    return jnp.transpose(out_t[:, :T, :B], (2, 0, 1))


def _reference(x_nct, w1, w2, w3, b1, b2, b3):
    """Plain-JAX reference (same math as the PyTorch module)."""
    B, Cin, T = x_nct.shape
    K, _, Cout = w1.shape
    pad_l = (K - 1) // 2
    x = jnp.pad(jnp.transpose(x_nct, (0, 2, 1)),
                ((0, 0), (pad_l, K - 1 - pad_l), (0, 0)))

    def conv(w, b):
        acc = jnp.zeros((B, T, Cout), jnp.float32)
        for k in range(K):
            acc = acc + jnp.einsum("bti,io->bto", x[:, k:k + T, :], w[k])
        return acc + b

    p = conv(w1, b1)
    q = jax.nn.sigmoid(conv(w2, b2))
    r = conv(w3, b3)
    return jnp.transpose(jnp.maximum(p * q + r, 0.0), (0, 2, 1))


if __name__ == "__main__":
    # Small shapes consistent with the module: (batch*nodes, in_ch, time).
    B, Cin, Cout, T, K = 64, 4, 6, 16, 3

    key = jax.random.PRNGKey(0)
    kx, k1, k2, k3, kb1, kb2, kb3 = jax.random.split(key, 7)

    x = jax.random.normal(kx, (B, Cin, T), dtype=jnp.float32)

    # Deterministic init mimicking torch Conv1d default:
    # uniform(-bound, bound), bound = 1/sqrt(Cin * K).  Stored as (K, Cin, Cout).
    bound = 1.0 / jnp.sqrt(jnp.float32(Cin * K))
    w1 = jax.random.uniform(k1, (K, Cin, Cout), jnp.float32, -bound, bound)
    w2 = jax.random.uniform(k2, (K, Cin, Cout), jnp.float32, -bound, bound)
    w3 = jax.random.uniform(k3, (K, Cin, Cout), jnp.float32, -bound, bound)
    b1 = jax.random.uniform(kb1, (Cout,), jnp.float32, -bound, bound)
    b2 = jax.random.uniform(kb2, (Cout,), jnp.float32, -bound, bound)
    b3 = jax.random.uniform(kb3, (Cout,), jnp.float32, -bound, bound)

    out = temporal_gated_conv(x, w1, w2, w3, b1, b2, b3,
                              kernel_size=K, block_b=512)
    out = jax.block_until_ready(out)

    ref = _reference(x, w1, w2, w3, b1, b2, b3)
    assert out.shape == (B, Cout, T)
    assert jnp.allclose(out, ref, atol=1e-5, rtol=1e-5)

    print("KERNEL_OK")
</pallas_src>

<mosaic_0001>
module attributes {stable_mosaic.version = 11 : i64} {
  func.func @_tgc_kernel(%arg0: i32, %arg1: memref<4x16x128xf32, #tpu.memory_space<vmem>>, %arg2: memref<216xf32, #tpu.memory_space<smem>>, %arg3: memref<18xf32, #tpu.memory_space<smem>>, %arg4: memref<6x16x128xf32, #tpu.memory_space<vmem>>) attributes {dimension_semantics = [#tpu.dimension_semantics<parallel>], iteration_bounds = array<i64: 1>, scalar_prefetch = 0 : i64, scratch_operands = 0 : i64, tpu.core_type = #tpu.core_type<tc>, window_params = [{transform_indices = @transform_0, window_bounds = array<i64: 4, 16, 128>}, {transform_indices = @transform_1, window_bounds = array<i64: 216>}, {transform_indices = @transform_2, window_bounds = array<i64: 18>}, {transform_indices = @transform_3, window_bounds = array<i64: 6, 16, 128>}]} {
    %c0 = arith.constant 0 : index
    %c0_0 = arith.constant 0 : index
    %c0_1 = arith.constant 0 : index
    %0 = vector.load %arg1[%c0, %c0_0, %c0_1] : memref<4x16x128xf32, #tpu.memory_space<vmem>>, vector<4x16x128xf32>
    %cst = arith.constant 0.000000e+00 : f32
    %1 = vector.broadcast %cst : f32 to vector<4x1x128xf32>
    %2 = vector.extract_strided_slice %0 {offsets = [0, 0, 0], sizes = [4, 15, 128], strides = [1, 1, 1]} : vector<4x16x128xf32> to vector<4x15x128xf32>
    %3 = tpu.concatenate %1, %2 in 1 : vector<4x1x128xf32>, vector<4x15x128xf32> -> vector<4x16x128xf32>
    %cst_2 = arith.constant 0.000000e+00 : f32
    %4 = vector.broadcast %cst_2 : f32 to vector<4x1x128xf32>
    %5 = vector.extract_strided_slice %0 {offsets = [0, 1, 0], sizes = [4, 15, 128], strides = [1, 1, 1]} : vector<4x16x128xf32> to vector<4x15x128xf32>
    %6 = tpu.concatenate %5, %4 in 1 : vector<4x15x128xf32>, vector<4x1x128xf32> -> vector<4x16x128xf32>
    %c0_3 = arith.constant 0 : index
    %7 = memref.load %arg3[%c0_3] : memref<18xf32, #tpu.memory_space<smem>>
    %8 = vector.broadcast %7 : f32 to vector<16x128xf32>
    %c6 = arith.constant 6 : index
    %9 = memref.load %arg3[%c6] : memref<18xf32, #tpu.memory_space<smem>>
    %10 = vector.broadcast %9 : f32 to vector<16x128xf32>
    %c12 = arith.constant 12 : index
    %11 = memref.load %arg3[%c12] : memref<18xf32, #tpu.memory_space<smem>>
    %12 = vector.broadcast %11 : f32 to vector<16x128xf32>
    %13 = vector.extract_strided_slice %3 {offsets = [0, 0, 0], sizes = [1, 16, 128], strides = [1, 1, 1]} : vector<4x16x128xf32> to vector<1x16x128xf32>
    %14 = vector.shape_cast %13 : vector<1x16x128xf32> to vector<16x128xf32>
    %c0_4 = arith.constant 0 : index
    %15 = memref.load %arg2[%c0_4] : memref<216xf32, #tpu.memory_space<smem>>
    %16 = vector.broadcast %15 : f32 to vector<16x128xf32>
    %17 = arith.mulf %14, %16 : vector<16x128xf32>
    %18 = arith.addf %8, %17 : vector<16x128xf32>
    %c6_5 = arith.constant 6 : index
    %19 = memref.load %arg2[%c6_5] : memref<216xf32, #tpu.memory_space<smem>>
    %20 = vector.broadcast %19 : f32 to vector<16x128xf32>
    %21 = arith.mulf %14, %20 : vector<16x128xf32>
    %22 = arith.addf %10, %21 : vector<16x128xf32>
    %c12_6 = arith.constant 12 : index
    %23 = memref.load %arg2[%c12_6] : memref<216xf32, #tpu.memory_space<smem>>
    %24 = vector.broadcast %23 : f32 to vector<16x128xf32>
    %25 = arith.mulf %14, %24 : vector<16x128xf32>
    %26 = arith.addf %12, %25 : vector<16x128xf32>
    %27 = vector.extract_strided_slice %3 {offsets = [1, 0, 0], sizes = [1, 16, 128], strides = [1, 1, 1]} : vector<4x16x128xf32> to vector<1x16x128xf32>
    %28 = vector.shape_cast %27 : vector<1x16x128xf32> to vector<16x128xf32>
    %c18 = arith.constant 18 : index
    %29 = memref.load %arg2[%c18] : memref<216xf32, #tpu.memory_space<smem>>
    %30 = vector.broadcast %29 : f32 to vector<16x128xf32>
    %31 = arith.mulf %28, %30 : vector<16x128xf32>
    %32 = arith.addf %18, %31 : vector<16x128xf32>
    %c24 = arith.constant 24 : index
    %33 = memref.load %arg2[%c24] : memref<216xf32, #tpu.memory_space<smem>>
    %34 = vector.broadcast %33 : f32 to vector<16x128xf32>
    %35 = arith.mulf %28, %34 : vector<16x128xf32>
    %36 = arith.addf %22, %35 : vector<16x128xf32>
    %c30 = arith.constant 30 : index
    %37 = memref.load %arg2[%c30] : memref<216xf32, #tpu.memory_space<smem>>
    %38 = vector.broadcast %37 : f32 to vector<16x128xf32>
    %39 = arith.mulf %28, %38 : vector<16x128xf32>
    %40 = arith.addf %26, %39 : vector<16x128xf32>
    %41 = vector.extract_strided_slice %3 {offsets = [2, 0, 0], sizes = [1, 16, 128], strides = [1, 1, 1]} : vector<4x16x128xf32> to vector<1x16x128xf32>
    %42 = vector.shape_cast %41 : vector<1x16x128xf32> to vector<16x128xf32>
    %c36 = arith.constant 36 : index
    %43 = memref.load %arg2[%c36] : memref<216xf32, #tpu.memory_space<smem>>
    %44 = vector.broadcast %43 : f32 to vector<16x128xf32>
    %45 = arith.mulf %42, %44 : vector<16x128xf32>
    %46 = arith.addf %32, %45 : vector<16x128xf32>
    %c42 = arith.constant 42 : index
    %47 = memref.load %arg2[%c42] : memref<216xf32, #tpu.memory_space<smem>>
    %48 = vector.broadcast %47 : f32 to vector<16x128xf32>
    %49 = arith.mulf %42, %48 : vector<16x128xf32>
    %50 = arith.addf %36, %49 : vector<16x128xf32>
    %c48 = arith.constant 48 : index
    %51 = memref.load %arg2[%c48] : memref<216xf32, #tpu.memory_space<smem>>
    %52 = vector.broadcast %51 : f32 to vector<16x128xf32>
    %53 = arith.mulf %42, %52 : vector<16x128xf32>
    %54 = arith.addf %40, %53 : vector<16x128xf32>
    %55 = vector.extract_strided_slice %3 {offsets = [3, 0, 0], sizes = [1, 16, 128], strides = [1, 1, 1]} : vector<4x16x128xf32> to vector<1x16x128xf32>
    %56 = vector.shape_cast %55 : vector<1x16x128xf32> to vector<16x128xf32>
    %c54 = arith.constant 54 : index
    %57 = memref.load %arg2[%c54] : memref<216xf32, #tpu.memory_space<smem>>
    %58 = vector.broadcast %57 : f32 to vector<16x128xf32>
    %59 = arith.mulf %56, %58 : vector<16x128xf32>
    %60 = arith.addf %46, %59 : vector<16x128xf32>
    %c60 = arith.constant 60 : index
    %61 = memref.load %arg2[%c60] : memref<216xf32, #tpu.memory_space<smem>>
    %62 = vector.broadcast %61 : f32 to vector<16x128xf32>
    %63 = arith.mulf %56, %62 : vector<16x128xf32>
    %64 = arith.addf %50, %63 : vector<16x128xf32>
    %c66 = arith.constant 66 : index
    %65 = memref.load %arg2[%c66] : memref<216xf32, #tpu.memory_space<smem>>
    %66 = vector.broadcast %65 : f32 to vector<16x128xf32>
    %67 = arith.mulf %56, %66 : vector<16x128xf32>
    %68 = arith.addf %54, %67 : vector<16x128xf32>
    %69 = vector.extract_strided_slice %0 {offsets = [0, 0, 0], sizes = [1, 16, 128], strides = [1, 1, 1]} : vector<4x16x128xf32> to vector<1x16x128xf32>
    %70 = vector.shape_cast %69 : vector<1x16x128xf32> to vector<16x128xf32>
    %c72 = arith.constant 72 : index
    %71 = memref.load %arg2[%c72] : memref<216xf32, #tpu.memory_space<smem>>
    %72 = vector.broadcast %71 : f32 to vector<16x128xf32>
    %73 = arith.mulf %70, %72 : vector<16x128xf32>
    %74 = arith.addf %60, %73 : vector<16x128xf32>
    %c78 = arith.constant 78 : index
    %75 = memref.load %arg2[%c78] : memref<216xf32, #tpu.memory_space<smem>>
    %76 = vector.broadcast %75 : f32 to vector<16x128xf32>
    %77 = arith.mulf %70, %76 : vector<16x128xf32>
    %78 = arith.addf %64, %77 : vector<16x128xf32>
    %c84 = arith.constant 84 : index
    %79 = memref.load %arg2[%c84] : memref<216xf32, #tpu.memory_space<smem>>
    %80 = vector.broadcast %79 : f32 to vector<16x128xf32>
    %81 = arith.mulf %70, %80 : vector<16x128xf32>
    %82 = arith.addf %68, %81 : vector<16x128xf32>
    %83 = vector.extract_strided_slice %0 {offsets = [1, 0, 0], sizes = [1, 16, 128], strides = [1, 1, 1]} : vector<4x16x128xf32> to vector<1x16x128xf32>
    %84 = vector.shape_cast %83 : vector<1x16x128xf32> to vector<16x128xf32>
    %c90 = arith.constant 90 : index
    %85 = memref.load %arg2[%c90] : memref<216xf32, #tpu.memory_space<smem>>
    %86 = vector.broadcast %85 : f32 to vector<16x128xf32>
    %87 = arith.mulf %84, %86 : vector<16x128xf32>
    %88 = arith.addf %74, %87 : vector<16x128xf32>
    %c96 = arith.constant 96 : index
    %89 = memref.load %arg2[%c96] : memref<216xf32, #tpu.memory_space<smem>>
    %90 = vector.broadcast %89 : f32 to vector<16x128xf32>
    %91 = arith.mulf %84, %90 : vector<16x128xf32>
    %92 = arith.addf %78, %91 : vector<16x128xf32>
    %c102 = arith.constant 102 : index
    %93 = memref.load %arg2[%c102] : memref<216xf32, #tpu.memory_space<smem>>
    %94 = vector.broadcast %93 : f32 to vector<16x128xf32>
    %95 = arith.mulf %84, %94 : vector<16x128xf32>
    %96 = arith.addf %82, %95 : vector<16x128xf32>
    %97 = vector.extract_strided_slice %0 {offsets = [2, 0, 0], sizes = [1, 16, 128], strides = [1, 1, 1]} : vector<4x16x128xf32> to vector<1x16x128xf32>
    %98 = vector.shape_cast %97 : vector<1x16x128xf32> to vector<16x128xf32>
    %c108 = arith.constant 108 : index
    %99 = memref.load %arg2[%c108] : memref<216xf32, #tpu.memory_space<smem>>
    %100 = vector.broadcast %99 : f32 to vector<16x128xf32>
    %101 = arith.mulf %98, %100 : vector<16x128xf32>
    %102 = arith.addf %88, %101 : vector<16x128xf32>
    %c114 = arith.constant 114 : index
    %103 = memref.load %arg2[%c114] : memref<216xf32, #tpu.memory_space<smem>>
    %104 = vector.broadcast %103 : f32 to vector<16x128xf32>
    %105 = arith.mulf %98, %104 : vector<16x128xf32>
    %106 = arith.addf %92, %105 : vector<16x128xf32>
    %c120 = arith.constant 120 : index
    %107 = memref.load %arg2[%c120] : memref<216xf32, #tpu.memory_space<smem>>
    %108 = vector.broadcast %107 : f32 to vector<16x128xf32>
    %109 = arith.mulf %98, %108 : vector<16x128xf32>
    %110 = arith.addf %96, %109 : vector<16x128xf32>
    %111 = vector.extract_strided_slice %0 {offsets = [3, 0, 0], sizes = [1, 16, 128], strides = [1, 1, 1]} : vector<4x16x128xf32> to vector<1x16x128xf32>
    %112 = vector.shape_cast %111 : vector<1x16x128xf32> to vector<16x128xf32>
    %c126 = arith.constant 126 : index
    %113 = memref.load %arg2[%c126] : memref<216xf32, #tpu.memory_space<smem>>
    %114 = vector.broadcast %113 : f32 to vector<16x128xf32>
    %115 = arith.mulf %112, %114 : vector<16x128xf32>
    %116 = arith.addf %102, %115 : vector<16x128xf32>
    %c132 = arith.constant 132 : index
    %117 = memref.load %arg2[%c132] : memref<216xf32, #tpu.memory_space<smem>>
    %118 = vector.broadcast %117 : f32 to vector<16x128xf32>
    %119 = arith.mulf %112, %118 : vector<16x128xf32>
    %120 = arith.addf %106, %119 : vector<16x128xf32>
    %c138 = arith.constant 138 : index
    %121 = memref.load %arg2[%c138] : memref<216xf32, #tpu.memory_space<smem>>
    %122 = vector.broadcast %121 : f32 to vector<16x128xf32>
    %123 = arith.mulf %112, %122 : vector<16x128xf32>
    %124 = arith.addf %110, %123 : vector<16x128xf32>
    %125 = vector.extract_strided_slice %6 {offsets = [0, 0, 0], sizes = [1, 16, 128], strides = [1, 1, 1]} : vector<4x16x128xf32> to vector<1x16x128xf32>
    %126 = vector.shape_cast %125 : vector<1x16x128xf32> to vector<16x128xf32>
    %c144 = arith.constant 144 : index
    %127 = memref.load %arg2[%c144] : memref<216xf32, #tpu.memory_space<smem>>
    %128 = vector.broadcast %127 : f32 to vector<16x128xf32>
    %129 = arith.mulf %126, %128 : vector<16x128xf32>
    %130 = arith.addf %116, %129 : vector<16x128xf32>
    %c150 = arith.constant 150 : index
    %131 = memref.load %arg2[%c150] : memref<216xf32, #tpu.memory_space<smem>>
    %132 = vector.broadcast %131 : f32 to vector<16x128xf32>
    %133 = arith.mulf %126, %132 : vector<16x128xf32>
    %134 = arith.addf %120, %133 : vector<16x128xf32>
    %c156 = arith.constant 156 : index
    %135 = memref.load %arg2[%c156] : memref<216xf32, #tpu.memory_space<smem>>
    %136 = vector.broadcast %135 : f32 to vector<16x128xf32>
    %137 = arith.mulf %126, %136 : vector<16x128xf32>
    %138 = arith.addf %124, %137 : vector<16x128xf32>
    %139 = vector.extract_strided_slice %6 {offsets = [1, 0, 0], sizes = [1, 16, 128], strides = [1, 1, 1]} : vector<4x16x128xf32> to vector<1x16x128xf32>
    %140 = vector.shape_cast %139 : vector<1x16x128xf32> to vector<16x128xf32>
    %c162 = arith.constant 162 : index
    %141 = memref.load %arg2[%c162] : memref<216xf32, #tpu.memory_space<smem>>
    %142 = vector.broadcast %141 : f32 to vector<16x128xf32>
    %143 = arith.mulf %140, %142 : vector<16x128xf32>
    %144 = arith.addf %130, %143 : vector<16x128xf32>
    %c168 = arith.constant 168 : index
    %145 = memref.load %arg2[%c168] : memref<216xf32, #tpu.memory_space<smem>>
    %146 = vector.broadcast %145 : f32 to vector<16x128xf32>
    %147 = arith.mulf %140, %146 : vector<16x128xf32>
    %148 = arith.addf %134, %147 : vector<16x128xf32>
    %c174 = arith.constant 174 : index
    %149 = memref.load %arg2[%c174] : memref<216xf32, #tpu.memory_space<smem>>
    %150 = vector.broadcast %149 : f32 to vector<16x128xf32>
    %151 = arith.mulf %140, %150 : vector<16x128xf32>
    %152 = arith.addf %138, %151 : vector<16x128xf32>
    %153 = vector.extract_strided_slice %6 {offsets = [2, 0, 0], sizes = [1, 16, 128], strides = [1, 1, 1]} : vector<4x16x128xf32> to vector<1x16x128xf32>
    %154 = vector.shape_cast %153 : vector<1x16x128xf32> to vector<16x128xf32>
    %c180 = arith.constant 180 : index
    %155 = memref.load %arg2[%c180] : memref<216xf32, #tpu.memory_space<smem>>
    %156 = vector.broadcast %155 : f32 to vector<16x128xf32>
    %157 = arith.mulf %154, %156 : vector<16x128xf32>
    %158 = arith.addf %144, %157 : vector<16x128xf32>
    %c186 = arith.constant 186 : index
    %159 = memref.load %arg2[%c186] : memref<216xf32, #tpu.memory_space<smem>>
    %160 = vector.broadcast %159 : f32 to vector<16x128xf32>
    %161 = arith.mulf %154, %160 : vector<16x128xf32>
    %162 = arith.addf %148, %161 : vector<16x128xf32>
    %c192 = arith.constant 192 : index
    %163 = memref.load %arg2[%c192] : memref<216xf32, #tpu.memory_space<smem>>
    %164 = vector.broadcast %163 : f32 to vector<16x128xf32>
    %165 = arith.mulf %154, %164 : vector<16x128xf32>
    %166 = arith.addf %152, %165 : vector<16x128xf32>
    %167 = vector.extract_strided_slice %6 {offsets = [3, 0, 0], sizes = [1, 16, 128], strides = [1, 1, 1]} : vector<4x16x128xf32> to vector<1x16x128xf32>
    %168 = vector.shape_cast %167 : vector<1x16x128xf32> to vector<16x128xf32>
    %c198 = arith.constant 198 : index
    %169 = memref.load %arg2[%c198] : memref<216xf32, #tpu.memory_space<smem>>
    %170 = vector.broadcast %169 : f32 to vector<16x128xf32>
    %171 = arith.mulf %168, %170 : vector<16x128xf32>
    %172 = arith.addf %158, %171 : vector<16x128xf32>
    %c204 = arith.constant 204 : index
    %173 = memref.load %arg2[%c204] : memref<216xf32, #tpu.memory_space<smem>>
    %174 = vector.broadcast %173 : f32 to vector<16x128xf32>
    %175 = arith.mulf %168, %174 : vector<16x128xf32>
    %176 = arith.addf %162, %175 : vector<16x128xf32>
    %c210 = arith.constant 210 : index
    %177 = memref.load %arg2[%c210] : memref<216xf32, #tpu.memory_space<smem>>
    %178 = vector.broadcast %177 : f32 to vector<16x128xf32>
    %179 = arith.mulf %168, %178 : vector<16x128xf32>
    %180 = arith.addf %166, %179 : vector<16x128xf32>
    %181 = arith.negf %176 : vector<16x128xf32>
    %182 = math.exp %181 : vector<16x128xf32>
    %cst_7 = arith.constant 1.000000e+00 : f32
    %183 = vector.broadcast %cst_7 : f32 to vector<16x128xf32>
    %184 = arith.addf %183, %182 : vector<16x128xf32>
    %185 = arith.divf %183, %184 : vector<16x128xf32>
    %186 = arith.mulf %172, %185 : vector<16x128xf32>
    %187 = arith.addf %186, %180 : vector<16x128xf32>
    %cst_8 = arith.constant 0.000000e+00 : f32
    %188 = vector.broadcast %cst_8 : f32 to vector<16x128xf32>
    %189 = arith.maximumf %187, %188 : vector<16x128xf32>
    %c0_9 = arith.constant 0 : index
    %c0_10 = arith.constant 0 : index
    %c0_11 = arith.constant 0 : index
    %190 = vector.load %arg4[%c0_9, %c0_10, %c0_11] : memref<6x16x128xf32, #tpu.memory_space<vmem>>, vector<1x16x128xf32>
    %191 = vector.shape_cast %190 : vector<1x16x128xf32> to vector<16x128xf32>
    %192 = vector.shape_cast %189 : vector<16x128xf32> to vector<1x16x128xf32>
    tpu.vector_store %arg4[%c0_9, %c0_10, %c0_11], %192 {strides = array<i32>} : memref<6x16x128xf32, #tpu.memory_space<vmem>>, vector<1x16x128xf32>,
    %c1 = arith.constant 1 : index
    %193 = memref.load %arg3[%c1] : memref<18xf32, #tpu.memory_space<smem>>
    %194 = vector.broadcast %193 : f32 to vector<16x128xf32>
    %c7 = arith.constant 7 : index
    %195 = memref.load %arg3[%c7] : memref<18xf32, #tpu.memory_space<smem>>
    %196 = vector.broadcast %195 : f32 to vector<16x128xf32>
    %c13 = arith.constant 13 : index
    %197 = memref.load %arg3[%c13] : memref<18xf32, #tpu.memory_space<smem>>
    %198 = vector.broadcast %197 : f32 to vector<16x128xf32>
    %199 = vector.extract_strided_slice %3 {offsets = [0, 0, 0], sizes = [1, 16, 128], strides = [1, 1, 1]} : vector<4x16x128xf32> to vector<1x16x128xf32>
    %200 = vector.shape_cast %199 : vector<1x16x128xf32> to vector<16x128xf32>
    %c1_12 = arith.constant 1 : index
    %201 = memref.load %arg2[%c1_12] : memref<216xf32, #tpu.memory_space<smem>>
    %202 = vector.broadcast %201 : f32 to vector<16x128xf32>
    %203 = arith.mulf %200, %202 : vector<16x128xf32>
    %204 = arith.addf %194, %203 : vector<16x128xf32>
    %c7_13 = arith.constant 7 : index
    %205 = memref.load %arg2[%c7_13] : memref<216xf32, #tpu.memory_space<smem>>
    %206 = vector.broadcast %205 : f32 to vector<16x128xf32>
    %207 = arith.mulf %200, %206 : vector<16x128xf32>
    %208 = arith.addf %196, %207 : vector<16x128xf32>
    %c13_14 = arith.constant 13 : index
    %209 = memref.load %arg2[%c13_14] : memref<216xf32, #tpu.memory_space<smem>>
    %210 = vector.broadcast %209 : f32 to vector<16x128xf32>
    %211 = arith.mulf %200, %210 : vector<16x128xf32>
    %212 = arith.addf %198, %211 : vector<16x128xf32>
    %213 = vector.extract_strided_slice %3 {offsets = [1, 0, 0], sizes = [1, 16, 128], strides = [1, 1, 1]} : vector<4x16x128xf32> to vector<1x16x128xf32>
    %214 = vector.shape_cast %213 : vector<1x16x128xf32> to vector<16x128xf32>
    %c19 = arith.constant 19 : index
    %215 = memref.load %arg2[%c19] : memref<216xf32, #tpu.memory_space<smem>>
    %216 = vector.broadcast %215 : f32 to vector<16x128xf32>
    %217 = arith.mulf %214, %216 : vector<16x128xf32>
    %218 = arith.addf %204, %217 : vector<16x128xf32>
    %c25 = arith.constant 25 : index
    %219 = memref.load %arg2[%c25] : memref<216xf32, #tpu.memory_space<smem>>
    %220 = vector.broadcast %219 : f32 to vector<16x128xf32>
    %221 = arith.mulf %214, %220 : vector<16x128xf32>
    %222 = arith.addf %208, %221 : vector<16x128xf32>
    %c31 = arith.constant 31 : index
    %223 = memref.load %arg2[%c31] : memref<216xf32, #tpu.memory_space<smem>>
    %224 = vector.broadcast %223 : f32 to vector<16x128xf32>
    %225 = arith.mulf %214, %224 : vector<16x128xf32>
    %226 = arith.addf %212, %225 : vector<16x128xf32>
    %227 = vector.extract_strided_slice %3 {offsets = [2, 0, 0], sizes = [1, 16, 128], strides = [1, 1, 1]} : vector<4x16x128xf32> to vector<1x16x128xf32>
    %228 = vector.shape_cast %227 : vector<1x16x128xf32> to vector<16x128xf32>
    %c37 = arith.constant 37 : index
    %229 = memref.load %arg2[%c37] : memref<216xf32, #tpu.memory_space<smem>>
    %230 = vector.broadcast %229 : f32 to vector<16x128xf32>
    %231 = arith.mulf %228, %230 : vector<16x128xf32>
    %232 = arith.addf %218, %231 : vector<16x128xf32>
    %c43 = arith.constant 43 : index
    %233 = memref.load %arg2[%c43] : memref<216xf32, #tpu.memory_space<smem>>
    %234 = vector.broadcast %233 : f32 to vector<16x128xf32>
    %235 = arith.mulf %228, %234 : vector<16x128xf32>
    %236 = arith.addf %222, %235 : vector<16x128xf32>
    %c49 = arith.constant 49 : index
    %237 = memref.load %arg2[%c49] : memref<216xf32, #tpu.memory_space<smem>>
    %238 = vector.broadcast %237 : f32 to vector<16x128xf32>
    %239 = arith.mulf %228, %238 : vector<16x128xf32>
    %240 = arith.addf %226, %239 : vector<16x128xf32>
    %241 = vector.extract_strided_slice %3 {offsets = [3, 0, 0], sizes = [1, 16, 128], strides = [1, 1, 1]} : vector<4x16x128xf32> to vector<1x16x128xf32>
    %242 = vector.shape_cast %241 : vector<1x16x128xf32> to vector<16x128xf32>
    %c55 = arith.constant 55 : index
    %243 = memref.load %arg2[%c55] : memref<216xf32, #tpu.memory_space<smem>>
    %244 = vector.broadcast %243 : f32 to vector<16x128xf32>
    %245 = arith.mulf %242, %244 : vector<16x128xf32>
    %246 = arith.addf %232, %245 : vector<16x128xf32>
    %c61 = arith.constant 61 : index
    %247 = memref.load %arg2[%c61] : memref<216xf32, #tpu.memory_space<smem>>
    %248 = vector.broadcast %247 : f32 to vector<16x128xf32>
    %249 = arith.mulf %242, %248 : vector<16x128xf32>
    %250 = arith.addf %236, %249 : vector<16x128xf32>
    %c67 = arith.constant 67 : index
    %251 = memref.load %arg2[%c67] : memref<216xf32, #tpu.memory_space<smem>>
    %252 = vector.broadcast %251 : f32 to vector<16x128xf32>
    %253 = arith.mulf %242, %252 : vector<16x128xf32>
    %254 = arith.addf %240, %253 : vector<16x128xf32>
    %255 = vector.extract_strided_slice %0 {offsets = [0, 0, 0], sizes = [1, 16, 128], strides = [1, 1, 1]} : vector<4x16x128xf32> to vector<1x16x128xf32>
    %256 = vector.shape_cast %255 : vector<1x16x128xf32> to vector<16x128xf32>
    %c73 = arith.constant 73 : index
    %257 = memref.load %arg2[%c73] : memref<216xf32, #tpu.memory_space<smem>>
    %258 = vector.broadcast %257 : f32 to vector<16x128xf32>
    %259 = arith.mulf %256, %258 : vector<16x128xf32>
    %260 = arith.addf %246, %259 : vector<16x128xf32>
    %c79 = arith.constant 79 : index
    %261 = memref.load %arg2[%c79] : memref<216xf32, #tpu.memory_space<smem>>
    %262 = vector.broadcast %261 : f32 to vector<16x128xf32>
    %263 = arith.mulf %256, %262 : vector<16x128xf32>
    %264 = arith.addf %250, %263 : vector<16x128xf32>
    %c85 = arith.constant 85 : index
    %265 = memref.load %arg2[%c85] : memref<216xf32, #tpu.memory_space<smem>>
    %266 = vector.broadcast %265 : f32 to vector<16x128xf32>
    %267 = arith.mulf %256, %266 : vector<16x128xf32>
    %268 = arith.addf %254, %267 : vector<16x128xf32>
    %269 = vector.extract_strided_slice %0 {offsets = [1, 0, 0], sizes = [1, 16, 128], strides = [1, 1, 1]} : vector<4x16x128xf32> to vector<1x16x128xf32>
    %270 = vector.shape_cast %269 : vector<1x16x128xf32> to vector<16x128xf32>
    %c91 = arith.constant 91 : index
    %271 = memref.load %arg2[%c91] : memref<216xf32, #tpu.memory_space<smem>>
    %272 = vector.broadcast %271 : f32 to vector<16x128xf32>
    %273 = arith.mulf %270, %272 : vector<16x128xf32>
    %274 = arith.addf %260, %273 : vector<16x128xf32>
    %c97 = arith.constant 97 : index
    %275 = memref.load %arg2[%c97] : memref<216xf32, #tpu.memory_space<smem>>
    %276 = vector.broadcast %275 : f32 to vector<16x128xf32>
    %277 = arith.mulf %270, %276 : vector<16x128xf32>
    %278 = arith.addf %264, %277 : vector<16x128xf32>
    %c103 = arith.constant 103 : index
    %279 = memref.load %arg2[%c103] : memref<216xf32, #tpu.memory_space<smem>>
    %280 = vector.broadcast %279 : f32 to vector<16x128xf32>
    %281 = arith.mulf %270, %280 : vector<16x128xf32>
    %282 = arith.addf %268, %281 : vector<16x128xf32>
    %283 = vector.extract_strided_slice %0 {offsets = [2, 0, 0], sizes = [1, 16, 128], strides = [1, 1, 1]} : vector<4x16x128xf32> to vector<1x16x128xf32>
    %284 = vector.shape_cast %283 : vector<1x16x128xf32> to vector<16x128xf32>
    %c109 = arith.constant 109 : index
    %285 = memref.load %arg2[%c109] : memref<216xf32, #tpu.memory_space<smem>>
    %286 = vector.broadcast %285 : f32 to vector<16x128xf32>
    %287 = arith.mulf %284, %286 : vector<16x128xf32>
    %288 = arith.addf %274, %287 : vector<16x128xf32>
    %c115 = arith.constant 115 : index
    %289 = memref.load %arg2[%c115] : memref<216xf32, #tpu.memory_space<smem>>
    %290 = vector.broadcast %289 : f32 to vector<16x128xf32>
    %291 = arith.mulf %284, %290 : vector<16x128xf32>
    %292 = arith.addf %278, %291 : vector<16x128xf32>
    %c121 = arith.constant 121 : index
    %293 = memref.load %arg2[%c121] : memref<216xf32, #tpu.memory_space<smem>>
    %294 = vector.broadcast %293 : f32 to vector<16x128xf32>
    %295 = arith.mulf %284, %294 : vector<16x128xf32>
    %296 = arith.addf %282, %295 : vector<16x128xf32>
    %297 = vector.extract_strided_slice %0 {offsets = [3, 0, 0], sizes = [1, 16, 128], strides = [1, 1, 1]} : vector<4x16x128xf32> to vector<1x16x128xf32>
    %298 = vector.shape_cast %297 : vector<1x16x128xf32> to vector<16x128xf32>
    %c127 = arith.constant 127 : index
    %299 = memref.load %arg2[%c127] : memref<216xf32, #tpu.memory_space<smem>>
    %300 = vector.broadcast %299 : f32 to vector<16x128xf32>
    %301 = arith.mulf %298, %300 : vector<16x128xf32>
    %302 = arith.addf %288, %301 : vector<16x128xf32>
    %c133 = arith.constant 133 : index
    %303 = memref.load %arg2[%c133] : memref<216xf32, #tpu.memory_space<smem>>
    %304 = vector.broadcast %303 : f32 to vector<16x128xf32>
    %305 = arith.mulf %298, %304 : vector<16x128xf32>
    %306 = arith.addf %292, %305 : vector<16x128xf32>
    %c139 = arith.constant 139 : index
    %307 = memref.load %arg2[%c139] : memref<216xf32, #tpu.memory_space<smem>>
    %308 = vector.broadcast %307 : f32 to vector<16x128xf32>
    %309 = arith.mulf %298, %308 : vector<16x128xf32>
    %310 = arith.addf %296, %309 : vector<16x128xf32>
    %311 = vector.extract_strided_slice %6 {offsets = [0, 0, 0], sizes = [1, 16, 128], strides = [1, 1, 1]} : vector<4x16x128xf32> to vector<1x16x128xf32>
    %312 = vector.shape_cast %311 : vector<1x16x128xf32> to vector<16x128xf32>
    %c145 = arith.constant 145 : index
    %313 = memref.load %arg2[%c145] : memref<216xf32, #tpu.memory_space<smem>>
    %314 = vector.broadcast %313 : f32 to vector<16x128xf32>
    %315 = arith.mulf %312, %314 : vector<16x128xf32>
    %316 = arith.addf %302, %315 : vector<16x128xf32>
    %c151 = arith.constant 151 : index
    %317 = memref.load %arg2[%c151] : memref<216xf32, #tpu.memory_space<smem>>
    %318 = vector.broadcast %317 : f32 to vector<16x128xf32>
    %319 = arith.mulf %312, %318 : vector<16x128xf32>
    %320 = arith.addf %306, %319 : vector<16x128xf32>
    %c157 = arith.constant 157 : index
    %321 = memref.load %arg2[%c157] : memref<216xf32, #tpu.memory_space<smem>>
    %322 = vector.broadcast %321 : f32 to vector<16x128xf32>
    %323 = arith.mulf %312, %322 : vector<16x128xf32>
    %324 = arith.addf %310, %323 : vector<16x128xf32>
    %325 = vector.extract_strided_slice %6 {offsets = [1, 0, 0], sizes = [1, 16, 128], strides = [1, 1, 1]} : vector<4x16x128xf32> to vector<1x16x128xf32>
    %326 = vector.shape_cast %325 : vector<1x16x128xf32> to vector<16x128xf32>
    %c163 = arith.constant 163 : index
    %327 = memref.load %arg2[%c163] : memref<216xf32, #tpu.memory_space<smem>>
    %328 = vector.broadcast %327 : f32 to vector<16x128xf32>
    %329 = arith.mulf %326, %328 : vector<16x128xf32>
    %330 = arith.addf %316, %329 : vector<16x128xf32>
    %c169 = arith.constant 169 : index
    %331 = memref.load %arg2[%c169] : memref<216xf32, #tpu.memory_space<smem>>
    %332 = vector.broadcast %331 : f32 to vector<16x128xf32>
    %333 = arith.mulf %326, %332 : vector<16x128xf32>
    %334 = arith.addf %320, %333 : vector<16x128xf32>
    %c175 = arith.constant 175 : index
    %335 = memref.load %arg2[%c175] : memref<216xf32, #tpu.memory_space<smem>>
    %336 = vector.broadcast %335 : f32 to vector<16x128xf32>
    %337 = arith.mulf %326, %336 : vector<16x128xf32>
    %338 = arith.addf %324, %337 : vector<16x128xf32>
    %339 = vector.extract_strided_slice %6 {offsets = [2, 0, 0], sizes = [1, 16, 128], strides = [1, 1, 1]} : vector<4x16x128xf32> to vector<1x16x128xf32>
    %340 = vector.shape_cast %339 : vector<1x16x128xf32> to vector<16x128xf32>
    %c181 = arith.constant 181 : index
    %341 = memref.load %arg2[%c181] : memref<216xf32, #tpu.memory_space<smem>>
    %342 = vector.broadcast %341 : f32 to vector<16x128xf32>
    %343 = arith.mulf %340, %342 : vector<16x128xf32>
    %344 = arith.addf %330, %343 : vector<16x128xf32>
    %c187 = arith.constant 187 : index
    %345 = memref.load %arg2[%c187] : memref<216xf32, #tpu.memory_space<smem>>
    %346 = vector.broadcast %345 : f32 to vector<16x128xf32>
    %347 = arith.mulf %340, %346 : vector<16x128xf32>
    %348 = arith.addf %334, %347 : vector<16x128xf32>
    %c193 = arith.constant 193 : index
    %349 = memref.load %arg2[%c193] : memref<216xf32, #tpu.memory_space<smem>>
    %350 = vector.broadcast %349 : f32 to vector<16x128xf32>
    %351 = arith.mulf %340, %350 : vector<16x128xf32>
    %352 = arith.addf %338, %351 : vector<16x128xf32>
    %353 = vector.extract_strided_slice %6 {offsets = [3, 0, 0], sizes = [1, 16, 128], strides = [1, 1, 1]} : vector<4x16x128xf32> to vector<1x16x128xf32>
    %354 = vector.shape_cast %353 : vector<1x16x128xf32> to vector<16x128xf32>
    %c199 = arith.constant 199 : index
    %355 = memref.load %arg2[%c199] : memref<216xf32, #tpu.memory_space<smem>>
    %356 = vector.broadcast %355 : f32 to vector<16x128xf32>
    %357 = arith.mulf %354, %356 : vector<16x128xf32>
    %358 = arith.addf %344, %357 : vector<16x128xf32>
    %c205 = arith.constant 205 : index
    %359 = memref.load %arg2[%c205] : memref<216xf32, #tpu.memory_space<smem>>
    %360 = vector.broadcast %359 : f32 to vector<16x128xf32>
    %361 = arith.mulf %354, %360 : vector<16x128xf32>
    %362 = arith.addf %348, %361 : vector<16x128xf32>
    %c211 = arith.constant 211 : index
    %363 = memref.load %arg2[%c211] : memref<216xf32, #tpu.memory_space<smem>>
    %364 = vector.broadcast %363 : f32 to vector<16x128xf32>
    %365 = arith.mulf %354, %364 : vector<16x128xf32>
    %366 = arith.addf %352, %365 : vector<16x128xf32>
    %367 = arith.negf %362 : vector<16x128xf32>
    %368 = math.exp %367 : vector<16x128xf32>
    %cst_15 = arith.constant 1.000000e+00 : f32
    %369 = vector.broadcast %cst_15 : f32 to vector<16x128xf32>
    %370 = arith.addf %369, %368 : vector<16x128xf32>
    %371 = arith.divf %369, %370 : vector<16x128xf32>
    %372 = arith.mulf %358, %371 : vector<16x128xf32>
    %373 = arith.addf %372, %366 : vector<16x128xf32>
    %cst_16 = arith.constant 0.000000e+00 : f32
    %374 = vector.broadcast %cst_16 : f32 to vector<16x128xf32>
    %375 = arith.maximumf %373, %374 : vector<16x128xf32>
    %c1_17 = arith.constant 1 : index
    %c0_18 = arith.constant 0 : index
    %c0_19 = arith.constant 0 : index
    %376 = vector.load %arg4[%c1_17, %c0_18, %c0_19] : memref<6x16x128xf32, #tpu.memory_space<vmem>>, vector<1x16x128xf32>
    %377 = vector.shape_cast %376 : vector<1x16x128xf32> to vector<16x128xf32>
    %378 = vector.shape_cast %375 : vector<16x128xf32> to vector<1x16x128xf32>
    tpu.vector_store %arg4[%c1_17, %c0_18, %c0_19], %378 {strides = array<i32>} : memref<6x16x128xf32, #tpu.memory_space<vmem>>, vector<1x16x128xf32>,
    %c2 = arith.constant 2 : index
    %379 = memref.load %arg3[%c2] : memref<18xf32, #tpu.memory_space<smem>>
    %380 = vector.broadcast %379 : f32 to vector<16x128xf32>
    %c8 = arith.constant 8 : index
    %381 = memref.load %arg3[%c8] : memref<18xf32, #tpu.memory_space<smem>>
    %382 = vector.broadcast %381 : f32 to vector<16x128xf32>
    %c14 = arith.constant 14 : index
    %383 = memref.load %arg3[%c14] : memref<18xf32, #tpu.memory_space<smem>>
    %384 = vector.broadcast %383 : f32 to vector<16x128xf32>
    %385 = vector.extract_strided_slice %3 {offsets = [0, 0, 0], sizes = [1, 16, 128], strides = [1, 1, 1]} : vector<4x16x128xf32> to vector<1x16x128xf32>
    %386 = vector.shape_cast %385 : vector<1x16x128xf32> to vector<16x128xf32>
    %c2_20 = arith.constant 2 : index
    %387 = memref.load %arg2[%c2_20] : memref<216xf32, #tpu.memory_space<smem>>
    %388 = vector.broadcast %387 : f32 to vector<16x128xf32>
    %389 = arith.mulf %386, %388 : vector<16x128xf32>
    %390 = arith.addf %380, %389 : vector<16x128xf32>
    %c8_21 = arith.constant 8 : index
    %391 = memref.load %arg2[%c8_21] : memref<216xf32, #tpu.memory_space<smem>>
    %392 = vector.broadcast %391 : f32 to vector<16x128xf32>
    %393 = arith.mulf %386, %392 : vector<16x128xf32>
    %394 = arith.addf %382, %393 : vector<16x128xf32>
    %c14_22 = arith.constant 14 : index
    %395 = memref.load %arg2[%c14_22] : memref<216xf32, #tpu.memory_space<smem>>
    %396 = vector.broadcast %395 : f32 to vector<16x128xf32>
    %397 = arith.mulf %386, %396 : vector<16x128xf32>
    %398 = arith.addf %384, %397 : vector<16x128xf32>
    %399 = vector.extract_strided_slice %3 {offsets = [1, 0, 0], sizes = [1, 16, 128], strides = [1, 1, 1]} : vector<4x16x128xf32> to vector<1x16x128xf32>
    %400 = vector.shape_cast %399 : vector<1x16x128xf32> to vector<16x128xf32>
    %c20 = arith.constant 20 : index
    %401 = memref.load %arg2[%c20] : memref<216xf32, #tpu.memory_space<smem>>
    %402 = vector.broadcast %401 : f32 to vector<16x128xf32>
    %403 = arith.mulf %400, %402 : vector<16x128xf32>
    %404 = arith.addf %390, %403 : vector<16x128xf32>
    %c26 = arith.constant 26 : index
    %405 = memref.load %arg2[%c26] : memref<216xf32, #tpu.memory_space<smem>>
    %406 = vector.broadcast %405 : f32 to vector<16x128xf32>
    %407 = arith.mulf %400, %406 : vector<16x128xf32>
    %408 = arith.addf %394, %407 : vector<16x128xf32>
    %c32 = arith.constant 32 : index
    %409 = memref.load %arg2[%c32] : memref<216xf32, #tpu.memory_space<smem>>
    %410 = vector.broadcast %409 : f32 to vector<16x128xf32>
    %411 = arith.mulf %400, %410 : vector<16x128xf32>
    %412 = arith.addf %398, %411 : vector<16x128xf32>
    %413 = vector.extract_strided_slice %3 {offsets = [2, 0, 0], sizes = [1, 16, 128], strides = [1, 1, 1]} : vector<4x16x128xf32> to vector<1x16x128xf32>
    %414 = vector.shape_cast %413 : vector<1x16x128xf32> to vector<16x128xf32>
    %c38 = arith.constant 38 : index
    %415 = memref.load %arg2[%c38] : memref<216xf32, #tpu.memory_space<smem>>
    %416 = vector.broadcast %415 : f32 to vector<16x128xf32>
    %417 = arith.mulf %414, %416 : vector<16x128xf32>
    %418 = arith.addf %404, %417 : vector<16x128xf32>
    %c44 = arith.constant 44 : index
    %419 = memref.load %arg2[%c44] : memref<216xf32, #tpu.memory_space<smem>>
    %420 = vector.broadcast %419 : f32 to vector<16x128xf32>
    %421 = arith.mulf %414, %420 : vector<16x128xf32>
    %422 = arith.addf %408, %421 : vector<16x128xf32>
    %c50 = arith.constant 50 : index
    %423 = memref.load %arg2[%c50] : memref<216xf32, #tpu.memory_space<smem>>
    %424 = vector.broadcast %423 : f32 to vector<16x128xf32>
    %425 = arith.mulf %414, %424 : vector<16x128xf32>
    %426 = arith.addf %412, %425 : vector<16x128xf32>
    %427 = vector.extract_strided_slice %3 {offsets = [3, 0, 0], sizes = [1, 16, 128], strides = [1, 1, 1]} : vector<4x16x128xf32> to vector<1x16x128xf32>
    %428 = vector.shape_cast %427 : vector<1x16x128xf32> to vector<16x128xf32>
    %c56 = arith.constant 56 : index
    %429 = memref.load %arg2[%c56] : memref<216xf32, #tpu.memory_space<smem>>
    %430 = vector.broadcast %429 : f32 to vector<16x128xf32>
    %431 = arith.mulf %428, %430 : vector<16x128xf32>
    %432 = arith.addf %418, %431 : vector<16x128xf32>
    %c62 = arith.constant 62 : index
    %433 = memref.load %arg2[%c62] : memref<216xf32, #tpu.memory_space<smem>>
    %434 = vector.broadcast %433 : f32 to vector<16x128xf32>
    %435 = arith.mulf %428, %434 : vector<16x128xf32>
    %436 = arith.addf %422, %435 : vector<16x128xf32>
    %c68 = arith.constant 68 : index
    %437 = memref.load %arg2[%c68] : memref<216xf32, #tpu.memory_space<smem>>
    %438 = vector.broadcast %437 : f32 to vector<16x128xf32>
    %439 = arith.mulf %428, %438 : vector<16x128xf32>
    %440 = arith.addf %426, %439 : vector<16x128xf32>
    %441 = vector.extract_strided_slice %0 {offsets = [0, 0, 0], sizes = [1, 16, 128], strides = [1, 1, 1]} : vector<4x16x128xf32> to vector<1x16x128xf32>
    %442 = vector.shape_cast %441 : vector<1x16x128xf32> to vector<16x128xf32>
    %c74 = arith.constant 74 : index
    %443 = memref.load %arg2[%c74] : memref<216xf32, #tpu.memory_space<smem>>
    %444 = vector.broadcast %443 : f32 to vector<16x128xf32>
    %445 = arith.mulf %442, %444 : vector<16x128xf32>
    %446 = arith.addf %432, %445 : vector<16x128xf32>
    %c80 = arith.constant 80 : index
    %447 = memref.load %arg2[%c80] : memref<216xf32, #tpu.memory_space<smem>>
    %448 = vector.broadcast %447 : f32 to vector<16x128xf32>
    %449 = arith.mulf %442, %448 : vector<16x128xf32>
    %450 = arith.addf %436, %449 : vector<16x128xf32>
    %c86 = arith.constant 86 : index
    %451 = memref.load %arg2[%c86] : memref<216xf32, #tpu.memory_space<smem>>
    %452 = vector.broadcast %451 : f32 to vector<16x128xf32>
    %453 = arith.mulf %442, %452 : vector<16x128xf32>
    %454 = arith.addf %440, %453 : vector<16x128xf32>
    %455 = vector.extract_strided_slice %0 {offsets = [1, 0, 0], sizes = [1, 16, 128], strides = [1, 1, 1]} : vector<4x16x128xf32> to vector<1x16x128xf32>
    %456 = vector.shape_cast %455 : vector<1x16x128xf32> to vector<16x128xf32>
    %c92 = arith.constant 92 : index
    %457 = memref.load %arg2[%c92] : memref<216xf32, #tpu.memory_space<smem>>
    %458 = vector.broadcast %457 : f32 to vector<16x128xf32>
    %459 = arith.mulf %456, %458 : vector<16x128xf32>
    %460 = arith.addf %446, %459 : vector<16x128xf32>
    %c98 = arith.constant 98 : index
    %461 = memref.load %arg2[%c98] : memref<216xf32, #tpu.memory_space<smem>>
    %462 = vector.broadcast %461 : f32 to vector<16x128xf32>
    %463 = arith.mulf %456, %462 : vector<16x128xf32>
    %464 = arith.addf %450, %463 : vector<16x128xf32>
    %c104 = arith.constant 104 : index
    %465 = memref.load %arg2[%c104] : memref<216xf32, #tpu.memory_space<smem>>
    %466 = vector.broadcast %465 : f32 to vector<16x128xf32>
    %467 = arith.mulf %456, %466 : vector<16x128xf32>
    %468 = arith.addf %454, %467 : vector<16x128xf32>
    %469 = vector.extract_strided_slice %0 {offsets = [2, 0, 0], sizes = [1, 16, 128], strides = [1, 1, 1]} : vector<4x16x128xf32> to vector<1x16x128xf32>
    %470 = vector.shape_cast %469 : vector<1x16x128xf32> to vector<16x128xf32>
    %c110 = arith.constant 110 : index
    %471 = memref.load %arg2[%c110] : memref<216xf32, #tpu.memory_space<smem>>
    %472 = vector.broadcast %471 : f32 to vector<16x128xf32>
    %473 = arith.mulf %470, %472 : vector<16x128xf32>
    %474 = arith.addf %460, %473 : vector<16x128xf32>
    %c116 = arith.constant 116 : index
    %475 = memref.load %arg2[%c116] : memref<216xf32, #tpu.memory_space<smem>>
    %476 = vector.broadcast %475 : f32 to vector<16x128xf32>
    %477 = arith.mulf %470, %476 : vector<16x128xf32>
    %478 = arith.addf %464, %477 : vector<16x128xf32>
    %c122 = arith.constant 122 : index
    %479 = memref.load %arg2[%c122] : memref<216xf32, #tpu.memory_space<smem>>
    %480 = vector.broadcast %479 : f32 to vector<16x128xf32>
    %481 = arith.mulf %470, %480 : vector<16x128xf32>
    %482 = arith.addf %468, %481 : vector<16x128xf32>
    %483 = vector.extract_strided_slice %0 {offsets = [3, 0, 0], sizes = [1, 16, 128], strides = [1, 1, 1]} : vector<4x16x128xf32> to vector<1x16x128xf32>
    %484 = vector.shape_cast %483 : vector<1x16x128xf32> to vector<16x128xf32>
    %c128 = arith.constant 128 : index
    %485 = memref.load %arg2[%c128] : memref<216xf32, #tpu.memory_space<smem>>
    %486 = vector.broadcast %485 : f32 to vector<16x128xf32>
    %487 = arith.mulf %484, %486 : vector<16x128xf32>
    %488 = arith.addf %474, %487 : vector<16x128xf32>
    %c134 = arith.constant 134 : index
    %489 = memref.load %arg2[%c134] : memref<216xf32, #tpu.memory_space<smem>>
    %490 = vector.broadcast %489 : f32 to vector<16x128xf32>
    %491 = arith.mulf %484, %490 : vector<16x128xf32>
    %492 = arith.addf %478, %491 : vector<16x128xf32>
    %c140 = arith.constant 140 : index
    %493 = memref.load %arg2[%c140] : memref<216xf32, #tpu.memory_space<smem>>
    %494 = vector.broadcast %493 : f32 to vector<16x128xf32>
    %495 = arith.mulf %484, %494 : vector<16x128xf32>
    %496 = arith.addf %482, %495 : vector<16x128xf32>
    %497 = vector.extract_strided_slice %6 {offsets = [0, 0, 0], sizes = [1, 16, 128], strides = [1, 1, 1]} : vector<4x16x128xf32> to vector<1x16x128xf32>
    %498 = vector.shape_cast %497 : vector<1x16x128xf32> to vector<16x128xf32>
    %c146 = arith.constant 146 : index
    %499 = memref.load %arg2[%c146] : memref<216xf32, #tpu.memory_space<smem>>
    %500 = vector.broadcast %499 : f32 to vector<16x128xf32>
    %501 = arith.mulf %498, %500 : vector<16x128xf32>
    %502 = arith.addf %488, %501 : vector<16x128xf32>
    %c152 = arith.constant 152 : index
    %503 = memref.load %arg2[%c152] : memref<216xf32, #tpu.memory_space<smem>>
    %504 = vector.broadcast %503 : f32 to vector<16x128xf32>
    %505 = arith.mulf %498, %504 : vector<16x128xf32>
    %506 = arith.addf %492, %505 : vector<16x128xf32>
    %c158 = arith.constant 158 : index
    %507 = memref.load %arg2[%c158] : memref<216xf32, #tpu.memory_space<smem>>
    %508 = vector.broadcast %507 : f32 to vector<16x128xf32>
    %509 = arith.mulf %498, %508 : vector<16x128xf32>
    %510 = arith.addf %496, %509 : vector<16x128xf32>
    %511 = vector.extract_strided_slice %6 {offsets = [1, 0, 0], sizes = [1, 16, 128], strides = [1, 1, 1]} : vector<4x16x128xf32> to vector<1x16x128xf32>
    %512 = vector.shape_cast %511 : vector<1x16x128xf32> to vector<16x128xf32>
    %c164 = arith.constant 164 : index
    %513 = memref.load %arg2[%c164] : memref<216xf32, #tpu.memory_space<smem>>
    %514 = vector.broadcast %513 : f32 to vector<16x128xf32>
    %515 = arith.mulf %512, %514 : vector<16x128xf32>
    %516 = arith.addf %502, %515 : vector<16x128xf32>
    %c170 = arith.constant 170 : index
    %517 = memref.load %arg2[%c170] : memref<216xf32, #tpu.memory_space<smem>>
    %518 = vector.broadcast %517 : f32 to vector<16x128xf32>
    %519 = arith.mulf %512, %518 : vector<16x128xf32>
    %520 = arith.addf %506, %519 : vector<16x128xf32>
    %c176 = arith.constant 176 : index
    %521 = memref.load %arg2[%c176] : memref<216xf32, #tpu.memory_space<smem>>
    %522 = vector.broadcast %521 : f32 to vector<16x128xf32>
    %523 = arith.mulf %512, %522 : vector<16x128xf32>
    %524 = arith.addf %510, %523 : vector<16x128xf32>
    %525 = vector.extract_strided_slice %6 {offsets = [2, 0, 0], sizes = [1, 16, 128], strides = [1, 1, 1]} : vector<4x16x128xf32> to vector<1x16x128xf32>
    %526 = vector.shape_cast %525 : vector<1x16x128xf32> to vector<16x128xf32>
    %c182 = arith.constant 182 : index
    %527 = memref.load %arg2[%c182] : memref<216xf32, #tpu.memory_space<smem>>
    %528 = vector.broadcast %527 : f32 to vector<16x128xf32>
    %529 = arith.mulf %526, %528 : vector<16x128xf32>
    %530 = arith.addf %516, %529 : vector<16x128xf32>
    %c188 = arith.constant 188 : index
    %531 = memref.load %arg2[%c188] : memref<216xf32, #tpu.memory_space<smem>>
    %532 = vector.broadcast %531 : f32 to vector<16x128xf32>
    %533 = arith.mulf %526, %532 : vector<16x128xf32>
    %534 = arith.addf %520, %533 : vector<16x128xf32>
    %c194 = arith.constant 194 : index
    %535 = memref.load %arg2[%c194] : memref<216xf32, #tpu.memory_space<smem>>
    %536 = vector.broadcast %535 : f32 to vector<16x128xf32>
    %537 = arith.mulf %526, %536 : vector<16x128xf32>
    %538 = arith.addf %524, %537 : vector<16x128xf32>
    %539 = vector.extract_strided_slice %6 {offsets = [3, 0, 0], sizes = [1, 16, 128], strides = [1, 1, 1]} : vector<4x16x128xf32> to vector<1x16x128xf32>
    %540 = vector.shape_cast %539 : vector<1x16x128xf32> to vector<16x128xf32>
    %c200 = arith.constant 200 : index
    %541 = memref.load %arg2[%c200] : memref<216xf32, #tpu.memory_space<smem>>
    %542 = vector.broadcast %541 : f32 to vector<16x128xf32>
    %543 = arith.mulf %540, %542 : vector<16x128xf32>
    %544 = arith.addf %530, %543 : vector<16x128xf32>
    %c206 = arith.constant 206 : index
    %545 = memref.load %arg2[%c206] : memref<216xf32, #tpu.memory_space<smem>>
    %546 = vector.broadcast %545 : f32 to vector<16x128xf32>
    %547 = arith.mulf %540, %546 : vector<16x128xf32>
    %548 = arith.addf %534, %547 : vector<16x128xf32>
    %c212 = arith.constant 212 : index
    %549 = memref.load %arg2[%c212] : memref<216xf32, #tpu.memory_space<smem>>
    %550 = vector.broadcast %549 : f32 to vector<16x128xf32>
    %551 = arith.mulf %540, %550 : vector<16x128xf32>
    %552 = arith.addf %538, %551 : vector<16x128xf32>
    %553 = arith.negf %548 : vector<16x128xf32>
    %554 = math.exp %553 : vector<16x128xf32>
    %cst_23 = arith.constant 1.000000e+00 : f32
    %555 = vector.broadcast %cst_23 : f32 to vector<16x128xf32>
    %556 = arith.addf %555, %554 : vector<16x128xf32>
    %557 = arith.divf %555, %556 : vector<16x128xf32>
    %558 = arith.mulf %544, %557 : vector<16x128xf32>
    %559 = arith.addf %558, %552 : vector<16x128xf32>
    %cst_24 = arith.constant 0.000000e+00 : f32
    %560 = vector.broadcast %cst_24 : f32 to vector<16x128xf32>
    %561 = arith.maximumf %559, %560 : vector<16x128xf32>
    %c2_25 = arith.constant 2 : index
    %c0_26 = arith.constant 0 : index
    %c0_27 = arith.constant 0 : index
    %562 = vector.load %arg4[%c2_25, %c0_26, %c0_27] : memref<6x16x128xf32, #tpu.memory_space<vmem>>, vector<1x16x128xf32>
    %563 = vector.shape_cast %562 : vector<1x16x128xf32> to vector<16x128xf32>
    %564 = vector.shape_cast %561 : vector<16x128xf32> to vector<1x16x128xf32>
    tpu.vector_store %arg4[%c2_25, %c0_26, %c0_27], %564 {strides = array<i32>} : memref<6x16x128xf32, #tpu.memory_space<vmem>>, vector<1x16x128xf32>,
    %c3 = arith.constant 3 : index
    %565 = memref.load %arg3[%c3] : memref<18xf32, #tpu.memory_space<smem>>
    %566 = vector.broadcast %565 : f32 to vector<16x128xf32>
    %c9 = arith.constant 9 : index
    %567 = memref.load %arg3[%c9] : memref<18xf32, #tpu.memory_space<smem>>
    %568 = vector.broadcast %567 : f32 to vector<16x128xf32>
    %c15 = arith.constant 15 : index
    %569 = memref.load %arg3[%c15] : memref<18xf32, #tpu.memory_space<smem>>
    %570 = vector.broadcast %569 : f32 to vector<16x128xf32>
    %571 = vector.extract_strided_slice %3 {offsets = [0, 0, 0], sizes = [1, 16, 128], strides = [1, 1, 1]} : vector<4x16x128xf32> to vector<1x16x128xf32>
    %572 = vector.shape_cast %571 : vector<1x16x128xf32> to vector<16x128xf32>
    %c3_28 = arith.constant 3 : index
    %573 = memref.load %arg2[%c3_28] : memref<216xf32, #tpu.memory_space<smem>>
    %574 = vector.broadcast %573 : f32 to vector<16x128xf32>
    %575 = arith.mulf %572, %574 : vector<16x128xf32>
    %576 = arith.addf %566, %575 : vector<16x128xf32>
    %c9_29 = arith.constant 9 : index
    %577 = memref.load %arg2[%c9_29] : memref<216xf32, #tpu.memory_space<smem>>
    %578 = vector.broadcast %577 : f32 to vector<16x128xf32>
    %579 = arith.mulf %572, %578 : vector<16x128xf32>
    %580 = arith.addf %568, %579 : vector<16x128xf32>
    %c15_30 = arith.constant 15 : index
    %581 = memref.load %arg2[%c15_30] : memref<216xf32, #tpu.memory_space<smem>>
    %582 = vector.broadcast %581 : f32 to vector<16x128xf32>
    %583 = arith.mulf %572, %582 : vector<16x128xf32>
    %584 = arith.addf %570, %583 : vector<16x128xf32>
    %585 = vector.extract_strided_slice %3 {offsets = [1, 0, 0], sizes = [1, 16, 128], strides = [1, 1, 1]} : vector<4x16x128xf32> to vector<1x16x128xf32>
    %586 = vector.shape_cast %585 : vector<1x16x128xf32> to vector<16x128xf32>
    %c21 = arith.constant 21 : index
    %587 = memref.load %arg2[%c21] : memref<216xf32, #tpu.memory_space<smem>>
    %588 = vector.broadcast %587 : f32 to vector<16x128xf32>
    %589 = arith.mulf %586, %588 : vector<16x128xf32>
    %590 = arith.addf %576, %589 : vector<16x128xf32>
    %c27 = arith.constant 27 : index
    %591 = memref.load %arg2[%c27] : memref<216xf32, #tpu.memory_space<smem>>
    %592 = vector.broadcast %591 : f32 to vector<16x128xf32>
    %593 = arith.mulf %586, %592 : vector<16x128xf32>
    %594 = arith.addf %580, %593 : vector<16x128xf32>
    %c33 = arith.constant 33 : index
    %595 = memref.load %arg2[%c33] : memref<216xf32, #tpu.memory_space<smem>>
    %596 = vector.broadcast %595 : f32 to vector<16x128xf32>
    %597 = arith.mulf %586, %596 : vector<16x128xf32>
    %598 = arith.addf %584, %597 : vector<16x128xf32>
    %599 = vector.extract_strided_slice %3 {offsets = [2, 0, 0], sizes = [1, 16, 128], strides = [1, 1, 1]} : vector<4x16x128xf32> to vector<1x16x128xf32>
    %600 = vector.shape_cast %599 : vector<1x16x128xf32> to vector<16x128xf32>
    %c39 = arith.constant 39 : index
    %601 = memref.load %arg2[%c39] : memref<216xf32, #tpu.memory_space<smem>>
    %602 = vector.broadcast %601 : f32 to vector<16x128xf32>
    %603 = arith.mulf %600, %602 : vector<16x128xf32>
    %604 = arith.addf %590, %603 : vector<16x128xf32>
    %c45 = arith.constant 45 : index
    %605 = memref.load %arg2[%c45] : memref<216xf32, #tpu.memory_space<smem>>
    %606 = vector.broadcast %605 : f32 to vector<16x128xf32>
    %607 = arith.mulf %600, %606 : vector<16x128xf32>
    %608 = arith.addf %594, %607 : vector<16x128xf32>
    %c51 = arith.constant 51 : index
    %609 = memref.load %arg2[%c51] : memref<216xf32, #tpu.memory_space<smem>>
    %610 = vector.broadcast %609 : f32 to vector<16x128xf32>
    %611 = arith.mulf %600, %610 : vector<16x128xf32>
    %612 = arith.addf %598, %611 : vector<16x128xf32>
    %613 = vector.extract_strided_slice %3 {offsets = [3, 0, 0], sizes = [1, 16, 128], strides = [1, 1, 1]} : vector<4x16x128xf32> to vector<1x16x128xf32>
    %614 = vector.shape_cast %613 : vector<1x16x128xf32> to vector<16x128xf32>
    %c57 = arith.constant 57 : index
    %615 = memref.load %arg2[%c57] : memref<216xf32, #tpu.memory_space<smem>>
    %616 = vector.broadcast %615 : f32 to vector<16x128xf32>
    %617 = arith.mulf %614, %616 : vector<16x128xf32>
    %618 = arith.addf %604, %617 : vector<16x128xf32>
    %c63 = arith.constant 63 : index
    %619 = memref.load %arg2[%c63] : memref<216xf32, #tpu.memory_space<smem>>
    %620 = vector.broadcast %619 : f32 to vector<16x128xf32>
    %621 = arith.mulf %614, %620 : vector<16x128xf32>
    %622 = arith.addf %608, %621 : vector<16x128xf32>
    %c69 = arith.constant 69 : index
    %623 = memref.load %arg2[%c69] : memref<216xf32, #tpu.memory_space<smem>>
    %624 = vector.broadcast %623 : f32 to vector<16x128xf32>
    %625 = arith.mulf %614, %624 : vector<16x128xf32>
    %626 = arith.addf %612, %625 : vector<16x128xf32>
    %627 = vector.extract_strided_slice %0 {offsets = [0, 0, 0], sizes = [1, 16, 128], strides = [1, 1, 1]} : vector<4x16x128xf32> to vector<1x16x128xf32>
    %628 = vector.shape_cast %627 : vector<1x16x128xf32> to vector<16x128xf32>
    %c75 = arith.constant 75 : index
    %629 = memref.load %arg2[%c75] : memref<216xf32, #tpu.memory_space<smem>>
    %630 = vector.broadcast %629 : f32 to vector<16x128xf32>
    %631 = arith.mulf %628, %630 : vector<16x128xf32>
    %632 = arith.addf %618, %631 : vector<16x128xf32>
    %c81 = arith.constant 81 : index
    %633 = memref.load %arg2[%c81] : memref<216xf32, #tpu.memory_space<smem>>
    %634 = vector.broadcast %633 : f32 to vector<16x128xf32>
    %635 = arith.mulf %628, %634 : vector<16x128xf32>
    %636 = arith.addf %622, %635 : vector<16x128xf32>
    %c87 = arith.constant 87 : index
    %637 = memref.load %arg2[%c87] : memref<216xf32, #tpu.memory_space<smem>>
    %638 = vector.broadcast %637 : f32 to vector<16x128xf32>
    %639 = arith.mulf %628, %638 : vector<16x128xf32>
    %640 = arith.addf %626, %639 : vector<16x128xf32>
    %641 = vector.extract_strided_slice %0 {offsets = [1, 0, 0], sizes = [1, 16, 128], strides = [1, 1, 1]} : vector<4x16x128xf32> to vector<1x16x128xf32>
    %642 = vector.shape_cast %641 : vector<1x16x128xf32> to vector<16x128xf32>
    %c93 = arith.constant 93 : index
    %643 = memref.load %arg2[%c93] : memref<216xf32, #tpu.memory_space<smem>>
    %644 = vector.broadcast %643 : f32 to vector<16x128xf32>
    %645 = arith.mulf %642, %644 : vector<16x128xf32>
    %646 = arith.addf %632, %645 : vector<16x128xf32>
    %c99 = arith.constant 99 : index
    %647 = memref.load %arg2[%c99] : memref<216xf32, #tpu.memory_space<smem>>
    %648 = vector.broadcast %647 : f32 to vector<16x128xf32>
    %649 = arith.mulf %642, %648 : vector<16x128xf32>
    %650 = arith.addf %636, %649 : vector<16x128xf32>
    %c105 = arith.constant 105 : index
    %651 = memref.load %arg2[%c105] : memref<216xf32, #tpu.memory_space<smem>>
    %652 = vector.broadcast %651 : f32 to vector<16x128xf32>
    %653 = arith.mulf %642, %652 : vector<16x128xf32>
    %654 = arith.addf %640, %653 : vector<16x128xf32>
    %655 = vector.extract_strided_slice %0 {offsets = [2, 0, 0], sizes = [1, 16, 128], strides = [1, 1, 1]} : vector<4x16x128xf32> to vector<1x16x128xf32>
    %656 = vector.shape_cast %655 : vector<1x16x128xf32> to vector<16x128xf32>
    %c111 = arith.constant 111 : index
    %657 = memref.load %arg2[%c111] : memref<216xf32, #tpu.memory_space<smem>>
    %658 = vector.broadcast %657 : f32 to vector<16x128xf32>
    %659 = arith.mulf %656, %658 : vector<16x128xf32>
    %660 = arith.addf %646, %659 : vector<16x128xf32>
    %c117 = arith.constant 117 : index
    %661 = memref.load %arg2[%c117] : memref<216xf32, #tpu.memory_space<smem>>
    %662 = vector.broadcast %661 : f32 to vector<16x128xf32>
    %663 = arith.mulf %656, %662 : vector<16x128xf32>
    %664 = arith.addf %650, %663 : vector<16x128xf32>
    %c123 = arith.constant 123 : index
    %665 = memref.load %arg2[%c123] : memref<216xf32, #tpu.memory_space<smem>>
    %666 = vector.broadcast %665 : f32 to vector<16x128xf32>
    %667 = arith.mulf %656, %666 : vector<16x128xf32>
    %668 = arith.addf %654, %667 : vector<16x128xf32>
    %669 = vector.extract_strided_slice %0 {offsets = [3, 0, 0], sizes = [1, 16, 128], strides = [1, 1, 1]} : vector<4x16x128xf32> to vector<1x16x128xf32>
    %670 = vector.shape_cast %669 : vector<1x16x128xf32> to vector<16x128xf32>
    %c129 = arith.constant 129 : index
    %671 = memref.load %arg2[%c129] : memref<216xf32, #tpu.memory_space<smem>>
    %672 = vector.broadcast %671 : f32 to vector<16x128xf32>
    %673 = arith.mulf %670, %672 : vector<16x128xf32>
    %674 = arith.addf %660, %673 : vector<16x128xf32>
    %c135 = arith.constant 135 : index
    %675 = memref.load %arg2[%c135] : memref<216xf32, #tpu.memory_space<smem>>
    %676 = vector.broadcast %675 : f32 to vector<16x128xf32>
    %677 = arith.mulf %670, %676 : vector<16x128xf32>
    %678 = arith.addf %664, %677 : vector<16x128xf32>
    %c141 = arith.constant 141 : index
    %679 = memref.load %arg2[%c141] : memref<216xf32, #tpu.memory_space<smem>>
    %680 = vector.broadcast %679 : f32 to vector<16x128xf32>
    %681 = arith.mulf %670, %680 : vector<16x128xf32>
    %682 = arith.addf %668, %681 : vector<16x128xf32>
    %683 = vector.extract_strided_slice %6 {offsets = [0, 0, 0], sizes = [1, 16, 128], strides = [1, 1, 1]} : vector<4x16x128xf32> to vector<1x16x128xf32>
    %684 = vector.shape_cast %683 : vector<1x16x128xf32> to vector<16x128xf32>
    %c147 = arith.constant 147 : index
    %685 = memref.load %arg2[%c147] : memref<216xf32, #tpu.memory_space<smem>>
    %686 = vector.broadcast %685 : f32 to vector<16x128xf32>
    %687 = arith.mulf %684, %686 : vector<16x128xf32>
    %688 = arith.addf %674, %687 : vector<16x128xf32>
    %c153 = arith.constant 153 : index
    %689 = memref.load %arg2[%c153] : memref<216xf32, #tpu.memory_space<smem>>
    %690 = vector.broadcast %689 : f32 to vector<16x128xf32>
    %691 = arith.mulf %684, %690 : vector<16x128xf32>
    %692 = arith.addf %678, %691 : vector<16x128xf32>
    %c159 = arith.constant 159 : index
    %693 = memref.load %arg2[%c159] : memref<216xf32, #tpu.memory_space<smem>>
    %694 = vector.broadcast %693 : f32 to vector<16x128xf32>
    %695 = arith.mulf %684, %694 : vector<16x128xf32>
    %696 = arith.addf %682, %695 : vector<16x128xf32>
    %697 = vector.extract_strided_slice %6 {offsets = [1, 0, 0], sizes = [1, 16, 128], strides = [1, 1, 1]} : vector<4x16x128xf32> to vector<1x16x128xf32>
    %698 = vector.shape_cast %697 : vector<1x16x128xf32> to vector<16x128xf32>
    %c165 = arith.constant 165 : index
    %699 = memref.load %arg2[%c165] : memref<216xf32, #tpu.memory_space<smem>>
    %700 = vector.broadcast %699 : f32 to vector<16x128xf32>
    %701 = arith.mulf %698, %700 : vector<16x128xf32>
    %702 = arith.addf %688, %701 : vector<16x128xf32>
    %c171 = arith.constant 171 : index
    %703 = memref.load %arg2[%c171] : memref<216xf32, #tpu.memory_space<smem>>
    %704 = vector.broadcast %703 : f32 to vector<16x128xf32>
    %705 = arith.mulf %698, %704 : vector<16x128xf32>
    %706 = arith.addf %692, %705 : vector<16x128xf32>
    %c177 = arith.constant 177 : index
    %707 = memref.load %arg2[%c177] : memref<216xf32, #tpu.memory_space<smem>>
    %708 = vector.broadcast %707 : f32 to vector<16x128xf32>
    %709 = arith.mulf %698, %708 : vector<16x128xf32>
    %710 = arith.addf %696, %709 : vector<16x128xf32>
    %711 = vector.extract_strided_slice %6 {offsets = [2, 0, 0], sizes = [1, 16, 128], strides = [1, 1, 1]} : vector<4x16x128xf32> to vector<1x16x128xf32>
    %712 = vector.shape_cast %711 : vector<1x16x128xf32> to vector<16x128xf32>
    %c183 = arith.constant 183 : index
    %713 = memref.load %arg2[%c183] : memref<216xf32, #tpu.memory_space<smem>>
    %714 = vector.broadcast %713 : f32 to vector<16x128xf32>
    %715 = arith.mulf %712, %714 : vector<16x128xf32>
    %716 = arith.addf %702, %715 : vector<16x128xf32>
    %c189 = arith.constant 189 : index
    %717 = memref.load %arg2[%c189] : memref<216xf32, #tpu.memory_space<smem>>
    %718 = vector.broadcast %717 : f32 to vector<16x128xf32>
    %719 = arith.mulf %712, %718 : vector<16x128xf32>
    %720 = arith.addf %706, %719 : vector<16x128xf32>
    %c195 = arith.constant 195 : index
    %721 = memref.load %arg2[%c195] : memref<216xf32, #tpu.memory_space<smem>>
    %722 = vector.broadcast %721 : f32 to vector<16x128xf32>
    %723 = arith.mulf %712, %722 : vector<16x128xf32>
    %724 = arith.addf %710, %723 : vector<16x128xf32>
    %725 = vector.extract_strided_slice %6 {offsets = [3, 0, 0], sizes = [1, 16, 128], strides = [1, 1, 1]} : vector<4x16x128xf32> to vector<1x16x128xf32>
    %726 = vector.shape_cast %725 : vector<1x16x128xf32> to vector<16x128xf32>
    %c201 = arith.constant 201 : index
    %727 = memref.load %arg2[%c201] : memref<216xf32, #tpu.memory_space<smem>>
    %728 = vector.broadcast %727 : f32 to vector<16x128xf32>
    %729 = arith.mulf %726, %728 : vector<16x128xf32>
    %730 = arith.addf %716, %729 : vector<16x128xf32>
    %c207 = arith.constant 207 : index
    %731 = memref.load %arg2[%c207] : memref<216xf32, #tpu.memory_space<smem>>
    %732 = vector.broadcast %731 : f32 to vector<16x128xf32>
    %733 = arith.mulf %726, %732 : vector<16x128xf32>
    %734 = arith.addf %720, %733 : vector<16x128xf32>
    %c213 = arith.constant 213 : index
    %735 = memref.load %arg2[%c213] : memref<216xf32, #tpu.memory_space<smem>>
    %736 = vector.broadcast %735 : f32 to vector<16x128xf32>
    %737 = arith.mulf %726, %736 : vector<16x128xf32>
    %738 = arith.addf %724, %737 : vector<16x128xf32>
    %739 = arith.negf %734 : vector<16x128xf32>
    %740 = math.exp %739 : vector<16x128xf32>
    %cst_31 = arith.constant 1.000000e+00 : f32
    %741 = vector.broadcast %cst_31 : f32 to vector<16x128xf32>
    %742 = arith.addf %741, %740 : vector<16x128xf32>
    %743 = arith.divf %741, %742 : vector<16x128xf32>
    %744 = arith.mulf %730, %743 : vector<16x128xf32>
    %745 = arith.addf %744, %738 : vector<16x128xf32>
    %cst_32 = arith.constant 0.000000e+00 : f32
    %746 = vector.broadcast %cst_32 : f32 to vector<16x128xf32>
    %747 = arith.maximumf %745, %746 : vector<16x128xf32>
    %c3_33 = arith.constant 3 : index
    %c0_34 = arith.constant 0 : index
    %c0_35 = arith.constant 0 : index
    %748 = vector.load %arg4[%c3_33, %c0_34, %c0_35] : memref<6x16x128xf32, #tpu.memory_space<vmem>>, vector<1x16x128xf32>
    %749 = vector.shape_cast %748 : vector<1x16x128xf32> to vector<16x128xf32>
    %750 = vector.shape_cast %747 : vector<16x128xf32> to vector<1x16x128xf32>
    tpu.vector_store %arg4[%c3_33, %c0_34, %c0_35], %750 {strides = array<i32>} : memref<6x16x128xf32, #tpu.memory_space<vmem>>, vector<1x16x128xf32>,
    %c4 = arith.constant 4 : index
    %751 = memref.load %arg3[%c4] : memref<18xf32, #tpu.memory_space<smem>>
    %752 = vector.broadcast %751 : f32 to vector<16x128xf32>
    %c10 = arith.constant 10 : index
    %753 = memref.load %arg3[%c10] : memref<18xf32, #tpu.memory_space<smem>>
    %754 = vector.broadcast %753 : f32 to vector<16x128xf32>
    %c16 = arith.constant 16 : index
    %755 = memref.load %arg3[%c16] : memref<18xf32, #tpu.memory_space<smem>>
    %756 = vector.broadcast %755 : f32 to vector<16x128xf32>
    %757 = vector.extract_strided_slice %3 {offsets = [0, 0, 0], sizes = [1, 16, 128], strides = [1, 1, 1]} : vector<4x16x128xf32> to vector<1x16x128xf32>
    %758 = vector.shape_cast %757 : vector<1x16x128xf32> to vector<16x128xf32>
    %c4_36 = arith.constant 4 : index
    %759 = memref.load %arg2[%c4_36] : memref<216xf32, #tpu.memory_space<smem>>
    %760 = vector.broadcast %759 : f32 to vector<16x128xf32>
    %761 = arith.mulf %758, %760 : vector<16x128xf32>
    %762 = arith.addf %752, %761 : vector<16x128xf32>
    %c10_37 = arith.constant 10 : index
    %763 = memref.load %arg2[%c10_37] : memref<216xf32, #tpu.memory_space<smem>>
    %764 = vector.broadcast %763 : f32 to vector<16x128xf32>
    %765 = arith.mulf %758, %764 : vector<16x128xf32>
    %766 = arith.addf %754, %765 : vector<16x128xf32>
    %c16_38 = arith.constant 16 : index
    %767 = memref.load %arg2[%c16_38] : memref<216xf32, #tpu.memory_space<smem>>
    %768 = vector.broadcast %767 : f32 to vector<16x128xf32>
    %769 = arith.mulf %758, %768 : vector<16x128xf32>
    %770 = arith.addf %756, %769 : vector<16x128xf32>
    %771 = vector.extract_strided_slice %3 {offsets = [1, 0, 0], sizes = [1, 16, 128], strides = [1, 1, 1]} : vector<4x16x128xf32> to vector<1x16x128xf32>
    %772 = vector.shape_cast %771 : vector<1x16x128xf32> to vector<16x128xf32>
    %c22 = arith.constant 22 : index
    %773 = memref.load %arg2[%c22] : memref<216xf32, #tpu.memory_space<smem>>
    %774 = vector.broadcast %773 : f32 to vector<16x128xf32>
    %775 = arith.mulf %772, %774 : vector<16x128xf32>
    %776 = arith.addf %762, %775 : vector<16x128xf32>
    %c28 = arith.constant 28 : index
    %777 = memref.load %arg2[%c28] : memref<216xf32, #tpu.memory_space<smem>>
    %778 = vector.broadcast %777 : f32 to vector<16x128xf32>
    %779 = arith.mulf %772, %778 : vector<16x128xf32>
    %780 = arith.addf %766, %779 : vector<16x128xf32>
    %c34 = arith.constant 34 : index
    %781 = memref.load %arg2[%c34] : memref<216xf32, #tpu.memory_space<smem>>
    %782 = vector.broadcast %781 : f32 to vector<16x128xf32>
    %783 = arith.mulf %772, %782 : vector<16x128xf32>
    %784 = arith.addf %770, %783 : vector<16x128xf32>
    %785 = vector.extract_strided_slice %3 {offsets = [2, 0, 0], sizes = [1, 16, 128], strides = [1, 1, 1]} : vector<4x16x128xf32> to vector<1x16x128xf32>
    %786 = vector.shape_cast %785 : vector<1x16x128xf32> to vector<16x128xf32>
    %c40 = arith.constant 40 : index
    %787 = memref.load %arg2[%c40] : memref<216xf32, #tpu.memory_space<smem>>
    %788 = vector.broadcast %787 : f32 to vector<16x128xf32>
    %789 = arith.mulf %786, %788 : vector<16x128xf32>
    %790 = arith.addf %776, %789 : vector<16x128xf32>
    %c46 = arith.constant 46 : index
    %791 = memref.load %arg2[%c46] : memref<216xf32, #tpu.memory_space<smem>>
    %792 = vector.broadcast %791 : f32 to vector<16x128xf32>
    %793 = arith.mulf %786, %792 : vector<16x128xf32>
    %794 = arith.addf %780, %793 : vector<16x128xf32>
    %c52 = arith.constant 52 : index
    %795 = memref.load %arg2[%c52] : memref<216xf32, #tpu.memory_space<smem>>
    %796 = vector.broadcast %795 : f32 to vector<16x128xf32>
    %797 = arith.mulf %786, %796 : vector<16x128xf32>
    %798 = arith.addf %784, %797 : vector<16x128xf32>
    %799 = vector.extract_strided_slice %3 {offsets = [3, 0, 0], sizes = [1, 16, 128], strides = [1, 1, 1]} : vector<4x16x128xf32> to vector<1x16x128xf32>
    %800 = vector.shape_cast %799 : vector<1x16x128xf32> to vector<16x128xf32>
    %c58 = arith.constant 58 : index
    %801 = memref.load %arg2[%c58] : memref<216xf32, #tpu.memory_space<smem>>
    %802 = vector.broadcast %801 : f32 to vector<16x128xf32>
    %803 = arith.mulf %800, %802 : vector<16x128xf32>
    %804 = arith.addf %790, %803 : vector<16x128xf32>
    %c64 = arith.constant 64 : index
    %805 = memref.load %arg2[%c64] : memref<216xf32, #tpu.memory_space<smem>>
    %806 = vector.broadcast %805 : f32 to vector<16x128xf32>
    %807 = arith.mulf %800, %806 : vector<16x128xf32>
    %808 = arith.addf %794, %807 : vector<16x128xf32>
    %c70 = arith.constant 70 : index
    %809 = memref.load %arg2[%c70] : memref<216xf32, #tpu.memory_space<smem>>
    %810 = vector.broadcast %809 : f32 to vector<16x128xf32>
    %811 = arith.mulf %800, %810 : vector<16x128xf32>
    %812 = arith.addf %798, %811 : vector<16x128xf32>
    %813 = vector.extract_strided_slice %0 {offsets = [0, 0, 0], sizes = [1, 16, 128], strides = [1, 1, 1]} : vector<4x16x128xf32> to vector<1x16x128xf32>
    %814 = vector.shape_cast %813 : vector<1x16x128xf32> to vector<16x128xf32>
    %c76 = arith.constant 76 : index
    %815 = memref.load %arg2[%c76] : memref<216xf32, #tpu.memory_space<smem>>
    %816 = vector.broadcast %815 : f32 to vector<16x128xf32>
    %817 = arith.mulf %814, %816 : vector<16x128xf32>
    %818 = arith.addf %804, %817 : vector<16x128xf32>
    %c82 = arith.constant 82 : index
    %819 = memref.load %arg2[%c82] : memref<216xf32, #tpu.memory_space<smem>>
    %820 = vector.broadcast %819 : f32 to vector<16x128xf32>
    %821 = arith.mulf %814, %820 : vector<16x128xf32>
    %822 = arith.addf %808, %821 : vector<16x128xf32>
    %c88 = arith.constant 88 : index
    %823 = memref.load %arg2[%c88] : memref<216xf32, #tpu.memory_space<smem>>
    %824 = vector.broadcast %823 : f32 to vector<16x128xf32>
    %825 = arith.mulf %814, %824 : vector<16x128xf32>
    %826 = arith.addf %812, %825 : vector<16x128xf32>
    %827 = vector.extract_strided_slice %0 {offsets = [1, 0, 0], sizes = [1, 16, 128], strides = [1, 1, 1]} : vector<4x16x128xf32> to vector<1x16x128xf32>
    %828 = vector.shape_cast %827 : vector<1x16x128xf32> to vector<16x128xf32>
    %c94 = arith.constant 94 : index
    %829 = memref.load %arg2[%c94] : memref<216xf32, #tpu.memory_space<smem>>
    %830 = vector.broadcast %829 : f32 to vector<16x128xf32>
    %831 = arith.mulf %828, %830 : vector<16x128xf32>
    %832 = arith.addf %818, %831 : vector<16x128xf32>
    %c100 = arith.constant 100 : index
    %833 = memref.load %arg2[%c100] : memref<216xf32, #tpu.memory_space<smem>>
    %834 = vector.broadcast %833 : f32 to vector<16x128xf32>
    %835 = arith.mulf %828, %834 : vector<16x128xf32>
    %836 = arith.addf %822, %835 : vector<16x128xf32>
    %c106 = arith.constant 106 : index
    %837 = memref.load %arg2[%c106] : memref<216xf32, #tpu.memory_space<smem>>
    %838 = vector.broadcast %837 : f32 to vector<16x128xf32>
    %839 = arith.mulf %828, %838 : vector<16x128xf32>
    %840 = arith.addf %826, %839 : vector<16x128xf32>
    %841 = vector.extract_strided_slice %0 {offsets = [2, 0, 0], sizes = [1, 16, 128], strides = [1, 1, 1]} : vector<4x16x128xf32> to vector<1x16x128xf32>
    %842 = vector.shape_cast %841 : vector<1x16x128xf32> to vector<16x128xf32>
    %c112 = arith.constant 112 : index
    %843 = memref.load %arg2[%c112] : memref<216xf32, #tpu.memory_space<smem>>
    %844 = vector.broadcast %843 : f32 to vector<16x128xf32>
    %845 = arith.mulf %842, %844 : vector<16x128xf32>
    %846 = arith.addf %832, %845 : vector<16x128xf32>
    %c118 = arith.constant 118 : index
    %847 = memref.load %arg2[%c118] : memref<216xf32, #tpu.memory_space<smem>>
    %848 = vector.broadcast %847 : f32 to vector<16x128xf32>
    %849 = arith.mulf %842, %848 : vector<16x128xf32>
    %850 = arith.addf %836, %849 : vector<16x128xf32>
    %c124 = arith.constant 124 : index
    %851 = memref.load %arg2[%c124] : memref<216xf32, #tpu.memory_space<smem>>
    %852 = vector.broadcast %851 : f32 to vector<16x128xf32>
    %853 = arith.mulf %842, %852 : vector<16x128xf32>
    %854 = arith.addf %840, %853 : vector<16x128xf32>
    %855 = vector.extract_strided_slice %0 {offsets = [3, 0, 0], sizes = [1, 16, 128], strides = [1, 1, 1]} : vector<4x16x128xf32> to vector<1x16x128xf32>
    %856 = vector.shape_cast %855 : vector<1x16x128xf32> to vector<16x128xf32>
    %c130 = arith.constant 130 : index
    %857 = memref.load %arg2[%c130] : memref<216xf32, #tpu.memory_space<smem>>
    %858 = vector.broadcast %857 : f32 to vector<16x128xf32>
    %859 = arith.mulf %856, %858 : vector<16x128xf32>
    %860 = arith.addf %846, %859 : vector<16x128xf32>
    %c136 = arith.constant 136 : index
    %861 = memref.load %arg2[%c136] : memref<216xf32, #tpu.memory_space<smem>>
    %862 = vector.broadcast %861 : f32 to vector<16x128xf32>
    %863 = arith.mulf %856, %862 : vector<16x128xf32>
    %864 = arith.addf %850, %863 : vector<16x128xf32>
    %c142 = arith.constant 142 : index
    %865 = memref.load %arg2[%c142] : memref<216xf32, #tpu.memory_space<smem>>
    %866 = vector.broadcast %865 : f32 to vector<16x128xf32>
    %867 = arith.mulf %856, %866 : vector<16x128xf32>
    %868 = arith.addf %854, %867 : vector<16x128xf32>
    %869 = vector.extract_strided_slice %6 {offsets = [0, 0, 0], sizes = [1, 16, 128], strides = [1, 1, 1]} : vector<4x16x128xf32> to vector<1x16x128xf32>
    %870 = vector.shape_cast %869 : vector<1x16x128xf32> to vector<16x128xf32>
    %c148 = arith.constant 148 : index
    %871 = memref.load %arg2[%c148] : memref<216xf32, #tpu.memory_space<smem>>
    %872 = vector.broadcast %871 : f32 to vector<16x128xf32>
    %873 = arith.mulf %870, %872 : vector<16x128xf32>
    %874 = arith.addf %860, %873 : vector<16x128xf32>
    %c154 = arith.constant 154 : index
    %875 = memref.load %arg2[%c154] : memref<216xf32, #tpu.memory_space<smem>>
    %876 = vector.broadcast %875 : f32 to vector<16x128xf32>
    %877 = arith.mulf %870, %876 : vector<16x128xf32>
    %878 = arith.addf %864, %877 : vector<16x128xf32>
    %c160 = arith.constant 160 : index
    %879 = memref.load %arg2[%c160] : memref<216xf32, #tpu.memory_space<smem>>
    %880 = vector.broadcast %879 : f32 to vector<16x128xf32>
    %881 = arith.mulf %870, %880 : vector<16x128xf32>
    %882 = arith.addf %868, %881 : vector<16x128xf32>
    %883 = vector.extract_strided_slice %6 {offsets = [1, 0, 0], sizes = [1, 16, 128], strides = [1, 1, 1]} : vector<4x16x128xf32> to vector<1x16x128xf32>
    %884 = vector.shape_cast %883 : vector<1x16x128xf32> to vector<16x128xf32>
    %c166 = arith.constant 166 : index
    %885 = memref.load %arg2[%c166] : memref<216xf32, #tpu.memory_space<smem>>
    %886 = vector.broadcast %885 : f32 to vector<16x128xf32>
    %887 = arith.mulf %884, %886 : vector<16x128xf32>
    %888 = arith.addf %874, %887 : vector<16x128xf32>
    %c172 = arith.constant 172 : index
    %889 = memref.load %arg2[%c172] : memref<216xf32, #tpu.memory_space<smem>>
    %890 = vector.broadcast %889 : f32 to vector<16x128xf32>
    %891 = arith.mulf %884, %890 : vector<16x128xf32>
    %892 = arith.addf %878, %891 : vector<16x128xf32>
    %c178 = arith.constant 178 : index
    %893 = memref.load %arg2[%c178] : memref<216xf32, #tpu.memory_space<smem>>
    %894 = vector.broadcast %893 : f32 to vector<16x128xf32>
    %895 = arith.mulf %884, %894 : vector<16x128xf32>
    %896 = arith.addf %882, %895 : vector<16x128xf32>
    %897 = vector.extract_strided_slice %6 {offsets = [2, 0, 0], sizes = [1, 16, 128], strides = [1, 1, 1]} : vector<4x16x128xf32> to vector<1x16x128xf32>
    %898 = vector.shape_cast %897 : vector<1x16x128xf32> to vector<16x128xf32>
    %c184 = arith.constant 184 : index
    %899 = memref.load %arg2[%c184] : memref<216xf32, #tpu.memory_space<smem>>
    %900 = vector.broadcast %899 : f32 to vector<16x128xf32>
    %901 = arith.mulf %898, %900 : vector<16x128xf32>
    %902 = arith.addf %888, %901 : vector<16x128xf32>
    %c190 = arith.constant 190 : index
    %903 = memref.load %arg2[%c190] : memref<216xf32, #tpu.memory_space<smem>>
    %904 = vector.broadcast %903 : f32 to vector<16x128xf32>
    %905 = arith.mulf %898, %904 : vector<16x128xf32>
    %906 = arith.addf %892, %905 : vector<16x128xf32>
    %c196 = arith.constant 196 : index
    %907 = memref.load %arg2[%c196] : memref<216xf32, #tpu.memory_space<smem>>
    %908 = vector.broadcast %907 : f32 to vector<16x128xf32>
    %909 = arith.mulf %898, %908 : vector<16x128xf32>
    %910 = arith.addf %896, %909 : vector<16x128xf32>
    %911 = vector.extract_strided_slice %6 {offsets = [3, 0, 0], sizes = [1, 16, 128], strides = [1, 1, 1]} : vector<4x16x128xf32> to vector<1x16x128xf32>
    %912 = vector.shape_cast %911 : vector<1x16x128xf32> to vector<16x128xf32>
    %c202 = arith.constant 202 : index
    %913 = memref.load %arg2[%c202] : memref<216xf32, #tpu.memory_space<smem>>
    %914 = vector.broadcast %913 : f32 to vector<16x128xf32>
    %915 = arith.mulf %912, %914 : vector<16x128xf32>
    %916 = arith.addf %902, %915 : vector<16x128xf32>
    %c208 = arith.constant 208 : index
    %917 = memref.load %arg2[%c208] : memref<216xf32, #tpu.memory_space<smem>>
    %918 = vector.broadcast %917 : f32 to vector<16x128xf32>
    %919 = arith.mulf %912, %918 : vector<16x128xf32>
    %920 = arith.addf %906, %919 : vector<16x128xf32>
    %c214 = arith.constant 214 : index
    %921 = memref.load %arg2[%c214] : memref<216xf32, #tpu.memory_space<smem>>
    %922 = vector.broadcast %921 : f32 to vector<16x128xf32>
    %923 = arith.mulf %912, %922 : vector<16x128xf32>
    %924 = arith.addf %910, %923 : vector<16x128xf32>
    %925 = arith.negf %920 : vector<16x128xf32>
    %926 = math.exp %925 : vector<16x128xf32>
    %cst_39 = arith.constant 1.000000e+00 : f32
    %927 = vector.broadcast %cst_39 : f32 to vector<16x128xf32>
    %928 = arith.addf %927, %926 : vector<16x128xf32>
    %929 = arith.divf %927, %928 : vector<16x128xf32>
    %930 = arith.mulf %916, %929 : vector<16x128xf32>
    %931 = arith.addf %930, %924 : vector<16x128xf32>
    %cst_40 = arith.constant 0.000000e+00 : f32
    %932 = vector.broadcast %cst_40 : f32 to vector<16x128xf32>
    %933 = arith.maximumf %931, %932 : vector<16x128xf32>
    %c4_41 = arith.constant 4 : index
    %c0_42 = arith.constant 0 : index
    %c0_43 = arith.constant 0 : index
    %934 = vector.load %arg4[%c4_41, %c0_42, %c0_43] : memref<6x16x128xf32, #tpu.memory_space<vmem>>, vector<1x16x128xf32>
    %935 = vector.shape_cast %934 : vector<1x16x128xf32> to vector<16x128xf32>
    %936 = vector.shape_cast %933 : vector<16x128xf32> to vector<1x16x128xf32>
    tpu.vector_store %arg4[%c4_41, %c0_42, %c0_43], %936 {strides = array<i32>} : memref<6x16x128xf32, #tpu.memory_space<vmem>>, vector<1x16x128xf32>,
    %c5 = arith.constant 5 : index
    %937 = memref.load %arg3[%c5] : memref<18xf32, #tpu.memory_space<smem>>
    %938 = vector.broadcast %937 : f32 to vector<16x128xf32>
    %c11 = arith.constant 11 : index
    %939 = memref.load %arg3[%c11] : memref<18xf32, #tpu.memory_space<smem>>
    %940 = vector.broadcast %939 : f32 to vector<16x128xf32>
    %c17 = arith.constant 17 : index
    %941 = memref.load %arg3[%c17] : memref<18xf32, #tpu.memory_space<smem>>
    %942 = vector.broadcast %941 : f32 to vector<16x128xf32>
    %943 = vector.extract_strided_slice %3 {offsets = [0, 0, 0], sizes = [1, 16, 128], strides = [1, 1, 1]} : vector<4x16x128xf32> to vector<1x16x128xf32>
    %944 = vector.shape_cast %943 : vector<1x16x128xf32> to vector<16x128xf32>
    %c5_44 = arith.constant 5 : index
    %945 = memref.load %arg2[%c5_44] : memref<216xf32, #tpu.memory_space<smem>>
    %946 = vector.broadcast %945 : f32 to vector<16x128xf32>
    %947 = arith.mulf %944, %946 : vector<16x128xf32>
    %948 = arith.addf %938, %947 : vector<16x128xf32>
    %c11_45 = arith.constant 11 : index
    %949 = memref.load %arg2[%c11_45] : memref<216xf32, #tpu.memory_space<smem>>
    %950 = vector.broadcast %949 : f32 to vector<16x128xf32>
    %951 = arith.mulf %944, %950 : vector<16x128xf32>
    %952 = arith.addf %940, %951 : vector<16x128xf32>
    %c17_46 = arith.constant 17 : index
    %953 = memref.load %arg2[%c17_46] : memref<216xf32, #tpu.memory_space<smem>>
    %954 = vector.broadcast %953 : f32 to vector<16x128xf32>
    %955 = arith.mulf %944, %954 : vector<16x128xf32>
    %956 = arith.addf %942, %955 : vector<16x128xf32>
    %957 = vector.extract_strided_slice %3 {offsets = [1, 0, 0], sizes = [1, 16, 128], strides = [1, 1, 1]} : vector<4x16x128xf32> to vector<1x16x128xf32>
    %958 = vector.shape_cast %957 : vector<1x16x128xf32> to vector<16x128xf32>
    %c23 = arith.constant 23 : index
    %959 = memref.load %arg2[%c23] : memref<216xf32, #tpu.memory_space<smem>>
    %960 = vector.broadcast %959 : f32 to vector<16x128xf32>
    %961 = arith.mulf %958, %960 : vector<16x128xf32>
    %962 = arith.addf %948, %961 : vector<16x128xf32>
    %c29 = arith.constant 29 : index
    %963 = memref.load %arg2[%c29] : memref<216xf32, #tpu.memory_space<smem>>
    %964 = vector.broadcast %963 : f32 to vector<16x128xf32>
    %965 = arith.mulf %958, %964 : vector<16x128xf32>
    %966 = arith.addf %952, %965 : vector<16x128xf32>
    %c35 = arith.constant 35 : index
    %967 = memref.load %arg2[%c35] : memref<216xf32, #tpu.memory_space<smem>>
    %968 = vector.broadcast %967 : f32 to vector<16x128xf32>
    %969 = arith.mulf %958, %968 : vector<16x128xf32>
    %970 = arith.addf %956, %969 : vector<16x128xf32>
    %971 = vector.extract_strided_slice %3 {offsets = [2, 0, 0], sizes = [1, 16, 128], strides = [1, 1, 1]} : vector<4x16x128xf32> to vector<1x16x128xf32>
    %972 = vector.shape_cast %971 : vector<1x16x128xf32> to vector<16x128xf32>
    %c41 = arith.constant 41 : index
    %973 = memref.load %arg2[%c41] : memref<216xf32, #tpu.memory_space<smem>>
    %974 = vector.broadcast %973 : f32 to vector<16x128xf32>
    %975 = arith.mulf %972, %974 : vector<16x128xf32>
    %976 = arith.addf %962, %975 : vector<16x128xf32>
    %c47 = arith.constant 47 : index
    %977 = memref.load %arg2[%c47] : memref<216xf32, #tpu.memory_space<smem>>
    %978 = vector.broadcast %977 : f32 to vector<16x128xf32>
    %979 = arith.mulf %972, %978 : vector<16x128xf32>
    %980 = arith.addf %966, %979 : vector<16x128xf32>
    %c53 = arith.constant 53 : index
    %981 = memref.load %arg2[%c53] : memref<216xf32, #tpu.memory_space<smem>>
    %982 = vector.broadcast %981 : f32 to vector<16x128xf32>
    %983 = arith.mulf %972, %982 : vector<16x128xf32>
    %984 = arith.addf %970, %983 : vector<16x128xf32>
    %985 = vector.extract_strided_slice %3 {offsets = [3, 0, 0], sizes = [1, 16, 128], strides = [1, 1, 1]} : vector<4x16x128xf32> to vector<1x16x128xf32>
    %986 = vector.shape_cast %985 : vector<1x16x128xf32> to vector<16x128xf32>
    %c59 = arith.constant 59 : index
    %987 = memref.load %arg2[%c59] : memref<216xf32, #tpu.memory_space<smem>>
    %988 = vector.broadcast %987 : f32 to vector<16x128xf32>
    %989 = arith.mulf %986, %988 : vector<16x128xf32>
    %990 = arith.addf %976, %989 : vector<16x128xf32>
    %c65 = arith.constant 65 : index
    %991 = memref.load %arg2[%c65] : memref<216xf32, #tpu.memory_space<smem>>
    %992 = vector.broadcast %991 : f32 to vector<16x128xf32>
    %993 = arith.mulf %986, %992 : vector<16x128xf32>
    %994 = arith.addf %980, %993 : vector<16x128xf32>
    %c71 = arith.constant 71 : index
    %995 = memref.load %arg2[%c71] : memref<216xf32, #tpu.memory_space<smem>>
    %996 = vector.broadcast %995 : f32 to vector<16x128xf32>
    %997 = arith.mulf %986, %996 : vector<16x128xf32>
    %998 = arith.addf %984, %997 : vector<16x128xf32>
    %999 = vector.extract_strided_slice %0 {offsets = [0, 0, 0], sizes = [1, 16, 128], strides = [1, 1, 1]} : vector<4x16x128xf32> to vector<1x16x128xf32>
    %1000 = vector.shape_cast %999 : vector<1x16x128xf32> to vector<16x128xf32>
    %c77 = arith.constant 77 : index
    %1001 = memref.load %arg2[%c77] : memref<216xf32, #tpu.memory_space<smem>>
    %1002 = vector.broadcast %1001 : f32 to vector<16x128xf32>
    %1003 = arith.mulf %1000, %1002 : vector<16x128xf32>
    %1004 = arith.addf %990, %1003 : vector<16x128xf32>
    %c83 = arith.constant 83 : index
    %1005 = memref.load %arg2[%c83] : memref<216xf32, #tpu.memory_space<smem>>
    %1006 = vector.broadcast %1005 : f32 to vector<16x128xf32>
    %1007 = arith.mulf %1000, %1006 : vector<16x128xf32>
    %1008 = arith.addf %994, %1007 : vector<16x128xf32>
    %c89 = arith.constant 89 : index
    %1009 = memref.load %arg2[%c89] : memref<216xf32, #tpu.memory_space<smem>>
    %1010 = vector.broadcast %1009 : f32 to vector<16x128xf32>
    %1011 = arith.mulf %1000, %1010 : vector<16x128xf32>
    %1012 = arith.addf %998, %1011 : vector<16x128xf32>
    %1013 = vector.extract_strided_slice %0 {offsets = [1, 0, 0], sizes = [1, 16, 128], strides = [1, 1, 1]} : vector<4x16x128xf32> to vector<1x16x128xf32>
    %1014 = vector.shape_cast %1013 : vector<1x16x128xf32> to vector<16x128xf32>
    %c95 = arith.constant 95 : index
    %1015 = memref.load %arg2[%c95] : memref<216xf32, #tpu.memory_space<smem>>
    %1016 = vector.broadcast %1015 : f32 to vector<16x128xf32>
    %1017 = arith.mulf %1014, %1016 : vector<16x128xf32>
    %1018 = arith.addf %1004, %1017 : vector<16x128xf32>
    %c101 = arith.constant 101 : index
    %1019 = memref.load %arg2[%c101] : memref<216xf32, #tpu.memory_space<smem>>
    %1020 = vector.broadcast %1019 : f32 to vector<16x128xf32>
    %1021 = arith.mulf %1014, %1020 : vector<16x128xf32>
    %1022 = arith.addf %1008, %1021 : vector<16x128xf32>
    %c107 = arith.constant 107 : index
    %1023 = memref.load %arg2[%c107] : memref<216xf32, #tpu.memory_space<smem>>
    %1024 = vector.broadcast %1023 : f32 to vector<16x128xf32>
    %1025 = arith.mulf %1014, %1024 : vector<16x128xf32>
    %1026 = arith.addf %1012, %1025 : vector<16x128xf32>
    %1027 = vector.extract_strided_slice %0 {offsets = [2, 0, 0], sizes = [1, 16, 128], strides = [1, 1, 1]} : vector<4x16x128xf32> to vector<1x16x128xf32>
    %1028 = vector.shape_cast %1027 : vector<1x16x128xf32> to vector<16x128xf32>
    %c113 = arith.constant 113 : index
    %1029 = memref.load %arg2[%c113] : memref<216xf32, #tpu.memory_space<smem>>
    %1030 = vector.broadcast %1029 : f32 to vector<16x128xf32>
    %1031 = arith.mulf %1028, %1030 : vector<16x128xf32>
    %1032 = arith.addf %1018, %1031 : vector<16x128xf32>
    %c119 = arith.constant 119 : index
    %1033 = memref.load %arg2[%c119] : memref<216xf32, #tpu.memory_space<smem>>
    %1034 = vector.broadcast %1033 : f32 to vector<16x128xf32>
    %1035 = arith.mulf %1028, %1034 : vector<16x128xf32>
    %1036 = arith.addf %1022, %1035 : vector<16x128xf32>
    %c125 = arith.constant 125 : index
    %1037 = memref.load %arg2[%c125] : memref<216xf32, #tpu.memory_space<smem>>
    %1038 = vector.broadcast %1037 : f32 to vector<16x128xf32>
    %1039 = arith.mulf %1028, %1038 : vector<16x128xf32>
    %1040 = arith.addf %1026, %1039 : vector<16x128xf32>
    %1041 = vector.extract_strided_slice %0 {offsets = [3, 0, 0], sizes = [1, 16, 128], strides = [1, 1, 1]} : vector<4x16x128xf32> to vector<1x16x128xf32>
    %1042 = vector.shape_cast %1041 : vector<1x16x128xf32> to vector<16x128xf32>
    %c131 = arith.constant 131 : index
    %1043 = memref.load %arg2[%c131] : memref<216xf32, #tpu.memory_space<smem>>
    %1044 = vector.broadcast %1043 : f32 to vector<16x128xf32>
    %1045 = arith.mulf %1042, %1044 : vector<16x128xf32>
    %1046 = arith.addf %1032, %1045 : vector<16x128xf32>
    %c137 = arith.constant 137 : index
    %1047 = memref.load %arg2[%c137] : memref<216xf32, #tpu.memory_space<smem>>
    %1048 = vector.broadcast %1047 : f32 to vector<16x128xf32>
    %1049 = arith.mulf %1042, %1048 : vector<16x128xf32>
    %1050 = arith.addf %1036, %1049 : vector<16x128xf32>
    %c143 = arith.constant 143 : index
    %1051 = memref.load %arg2[%c143] : memref<216xf32, #tpu.memory_space<smem>>
    %1052 = vector.broadcast %1051 : f32 to vector<16x128xf32>
    %1053 = arith.mulf %1042, %1052 : vector<16x128xf32>
    %1054 = arith.addf %1040, %1053 : vector<16x128xf32>
    %1055 = vector.extract_strided_slice %6 {offsets = [0, 0, 0], sizes = [1, 16, 128], strides = [1, 1, 1]} : vector<4x16x128xf32> to vector<1x16x128xf32>
    %1056 = vector.shape_cast %1055 : vector<1x16x128xf32> to vector<16x128xf32>
    %c149 = arith.constant 149 : index
    %1057 = memref.load %arg2[%c149] : memref<216xf32, #tpu.memory_space<smem>>
    %1058 = vector.broadcast %1057 : f32 to vector<16x128xf32>
    %1059 = arith.mulf %1056, %1058 : vector<16x128xf32>
    %1060 = arith.addf %1046, %1059 : vector<16x128xf32>
    %c155 = arith.constant 155 : index
    %1061 = memref.load %arg2[%c155] : memref<216xf32, #tpu.memory_space<smem>>
    %1062 = vector.broadcast %1061 : f32 to vector<16x128xf32>
    %1063 = arith.mulf %1056, %1062 : vector<16x128xf32>
    %1064 = arith.addf %1050, %1063 : vector<16x128xf32>
    %c161 = arith.constant 161 : index
    %1065 = memref.load %arg2[%c161] : memref<216xf32, #tpu.memory_space<smem>>
    %1066 = vector.broadcast %1065 : f32 to vector<16x128xf32>
    %1067 = arith.mulf %1056, %1066 : vector<16x128xf32>
    %1068 = arith.addf %1054, %1067 : vector<16x128xf32>
    %1069 = vector.extract_strided_slice %6 {offsets = [1, 0, 0], sizes = [1, 16, 128], strides = [1, 1, 1]} : vector<4x16x128xf32> to vector<1x16x128xf32>
    %1070 = vector.shape_cast %1069 : vector<1x16x128xf32> to vector<16x128xf32>
    %c167 = arith.constant 167 : index
    %1071 = memref.load %arg2[%c167] : memref<216xf32, #tpu.memory_space<smem>>
    %1072 = vector.broadcast %1071 : f32 to vector<16x128xf32>
    %1073 = arith.mulf %1070, %1072 : vector<16x128xf32>
    %1074 = arith.addf %1060, %1073 : vector<16x128xf32>
    %c173 = arith.constant 173 : index
    %1075 = memref.load %arg2[%c173] : memref<216xf32, #tpu.memory_space<smem>>
    %1076 = vector.broadcast %1075 : f32 to vector<16x128xf32>
    %1077 = arith.mulf %1070, %1076 : vector<16x128xf32>
    %1078 = arith.addf %1064, %1077 : vector<16x128xf32>
    %c179 = arith.constant 179 : index
    %1079 = memref.load %arg2[%c179] : memref<216xf32, #tpu.memory_space<smem>>
    %1080 = vector.broadcast %1079 : f32 to vector<16x128xf32>
    %1081 = arith.mulf %1070, %1080 : vector<16x128xf32>
    %1082 = arith.addf %1068, %1081 : vector<16x128xf32>
    %1083 = vector.extract_strided_slice %6 {offsets = [2, 0, 0], sizes = [1, 16, 128], strides = [1, 1, 1]} : vector<4x16x128xf32> to vector<1x16x128xf32>
    %1084 = vector.shape_cast %1083 : vector<1x16x128xf32> to vector<16x128xf32>
    %c185 = arith.constant 185 : index
    %1085 = memref.load %arg2[%c185] : memref<216xf32, #tpu.memory_space<smem>>
    %1086 = vector.broadcast %1085 : f32 to vector<16x128xf32>
    %1087 = arith.mulf %1084, %1086 : vector<16x128xf32>
    %1088 = arith.addf %1074, %1087 : vector<16x128xf32>
    %c191 = arith.constant 191 : index
    %1089 = memref.load %arg2[%c191] : memref<216xf32, #tpu.memory_space<smem>>
    %1090 = vector.broadcast %1089 : f32 to vector<16x128xf32>
    %1091 = arith.mulf %1084, %1090 : vector<16x128xf32>
    %1092 = arith.addf %1078, %1091 : vector<16x128xf32>
    %c197 = arith.constant 197 : index
    %1093 = memref.load %arg2[%c197] : memref<216xf32, #tpu.memory_space<smem>>
    %1094 = vector.broadcast %1093 : f32 to vector<16x128xf32>
    %1095 = arith.mulf %1084, %1094 : vector<16x128xf32>
    %1096 = arith.addf %1082, %1095 : vector<16x128xf32>
    %1097 = vector.extract_strided_slice %6 {offsets = [3, 0, 0], sizes = [1, 16, 128], strides = [1, 1, 1]} : vector<4x16x128xf32> to vector<1x16x128xf32>
    %1098 = vector.shape_cast %1097 : vector<1x16x128xf32> to vector<16x128xf32>
    %c203 = arith.constant 203 : index
    %1099 = memref.load %arg2[%c203] : memref<216xf32, #tpu.memory_space<smem>>
    %1100 = vector.broadcast %1099 : f32 to vector<16x128xf32>
    %1101 = arith.mulf %1098, %1100 : vector<16x128xf32>
    %1102 = arith.addf %1088, %1101 : vector<16x128xf32>
    %c209 = arith.constant 209 : index
    %1103 = memref.load %arg2[%c209] : memref<216xf32, #tpu.memory_space<smem>>
    %1104 = vector.broadcast %1103 : f32 to vector<16x128xf32>
    %1105 = arith.mulf %1098, %1104 : vector<16x128xf32>
    %1106 = arith.addf %1092, %1105 : vector<16x128xf32>
    %c215 = arith.constant 215 : index
    %1107 = memref.load %arg2[%c215] : memref<216xf32, #tpu.memory_space<smem>>
    %1108 = vector.broadcast %1107 : f32 to vector<16x128xf32>
    %1109 = arith.mulf %1098, %1108 : vector<16x128xf32>
    %1110 = arith.addf %1096, %1109 : vector<16x128xf32>
    %1111 = arith.negf %1106 : vector<16x128xf32>
    %1112 = math.exp %1111 : vector<16x128xf32>
    %cst_47 = arith.constant 1.000000e+00 : f32
    %1113 = vector.broadcast %cst_47 : f32 to vector<16x128xf32>
    %1114 = arith.addf %1113, %1112 : vector<16x128xf32>
    %1115 = arith.divf %1113, %1114 : vector<16x128xf32>
    %1116 = arith.mulf %1102, %1115 : vector<16x128xf32>
    %1117 = arith.addf %1116, %1110 : vector<16x128xf32>
    %cst_48 = arith.constant 0.000000e+00 : f32
    %1118 = vector.broadcast %cst_48 : f32 to vector<16x128xf32>
    %1119 = arith.maximumf %1117, %1118 : vector<16x128xf32>
    %c5_49 = arith.constant 5 : index
    %c0_50 = arith.constant 0 : index
    %c0_51 = arith.constant 0 : index
    %1120 = vector.load %arg4[%c5_49, %c0_50, %c0_51] : memref<6x16x128xf32, #tpu.memory_space<vmem>>, vector<1x16x128xf32>
    %1121 = vector.shape_cast %1120 : vector<1x16x128xf32> to vector<16x128xf32>
    %1122 = vector.shape_cast %1119 : vector<16x128xf32> to vector<1x16x128xf32>
    tpu.vector_store %arg4[%c5_49, %c0_50, %c0_51], %1122 {strides = array<i32>} : memref<6x16x128xf32, #tpu.memory_space<vmem>>, vector<1x16x128xf32>,
    return
  }
  func.func @transform_0(%arg0: i32) -> (i32, i32, i32) {
    %c0_i32 = arith.constant 0 : i32
    %c0_i32_0 = arith.constant 0 : i32
    %c0_i32_1 = arith.constant 0 : i32
    return %c0_i32, %c0_i32_0, %arg0 : i32, i32, i32
  }
  func.func @transform_1(%arg0: i32) -> i32 {
    %c0_i32 = arith.constant 0 : i32
    %c0_i32_0 = arith.constant 0 : i32
    return %c0_i32 : i32
  }
  func.func @transform_2(%arg0: i32) -> i32 {
    %c0_i32 = arith.constant 0 : i32
    %c0_i32_0 = arith.constant 0 : i32
    return %c0_i32 : i32
  }
  func.func @transform_3(%arg0: i32) -> (i32, i32, i32) {
    %c0_i32 = arith.constant 0 : i32
    %c0_i32_0 = arith.constant 0 : i32
    %c0_i32_1 = arith.constant 0 : i32
    return %c0_i32, %c0_i32_0, %arg0 : i32, i32, i32
  }
}

</mosaic_0001>

<bundles_post_ra>
// kernel: tpu_custom_call.1
= control target key start
LH: loop header
LB: loop body
LE: loop exit
PB: predicated region body
PF: predicated region fallthrough
CT: control target
= control target key end

     0   :  { %8 = vsyncpa [#allocation3], 0  ;;  %s3351_s0 = inlined_call_operand.hbm [shape: f32[4,16,128], index: 0, kind: input, shape index: {}]   ;;  %s3352_s1 = inlined_call_operand.vmem [shape: f32[216], index: 1, kind: input, shape index: {}]   ;;  %s3353_s2 = inlined_call_operand.vmem [shape: f32[18], index: 2, kind: input, shape index: {}]   ;;  %s3354_s3 = inlined_call_operand.hbm [shape: f32[6,16,128], index: 3, kind: output, shape index: {}]  }
   0x1   :  { %9 = vsyncpa [#allocation5], 0 }
   0x2   :  { %10 = vsyncpa [#allocation8], 0 }
   0x3   :  { %11 = vsyncpa [#allocation4], 0  ;;  %s1986_s12 = smov [#allocation2]   ;;  %s30_s16 = sshll.u32 %s3352_s1, 4  ;;  %s31_s16 = int_to_ptr.vmem [resolvable:$true] %s30_s16 }
   0x4   :  { %s17_s13 = sshll.u32 %s1986_s12, 4  ;;  %s1910_s19 = scalar_lea.hbm %s3351_s0, 1024  ;;  %s18_s13 = int_to_ptr.vmem [resolvable:$true] %s17_s13 }
   0x5   :  { %p1911_p0 = scmp.ne.s32.totalorder %s3351_s0, %s1910_s19  ;;  %p1914_p1 = scmp.lt.u32.totalorder %s1910_s19, %s3351_s0 }
   0x7   :  { %p1916_p2 = pnand %p1914_p1, %p1911_p0 }
   0x9   :  { %1919 = shalt.err (!%p1916_p2)
}
   0xa   :  { %s1920_s24 = scalar_lea.vmem %s18_s13, 1024  ;;  %p1925_p4 = scmp.lt.s32.totalorder %s18_s13, %s18_s13 }
   0xb   :  { %p1921_p3 = scmp.ne.s32.totalorder %s18_s13, %s1920_s24  ;;  %p1926_p5 = scmp.lt.s32.totalorder %s1920_s24, %s1920_s24 }
   0xd   :  { %p1927_p6 = por %p1926_p5, %p1925_p4 }
   0xf   :  { %p1928_p7 = pnand %p1927_p6, %p1921_p3 }
  0x11   :  { %1931 = shalt.err (!%p1928_p7)
}
  0x12   :  { %s1987_s1 = smov 128   ;;  %s1988_s25 = smov 8  }
  0x13   :  { %23 = dma.hbm_to_vmem [thread:$0]  %s3351_s0, 1024, %s18_s13, [#allocation3], %s1987_s1, %s1987_s1, %s1988_s25  }
  0x14   :  { %s1932_s28 = scalar_lea.vmem %s31_s16, 32  ;;  %p1937_p9 = scmp.lt.s32.totalorder %s31_s16, %s31_s16 }
  0x15   :  { %p1933_p8 = scmp.ne.s32.totalorder %s31_s16, %s1932_s28  ;;  %p1938_p10 = scmp.lt.s32.totalorder %s1932_s28, %s1932_s28 }
  0x17   :  { %p1939_p11 = por %p1938_p10, %p1937_p9 }
  0x19   :  { %p1940_p12 = pnand %p1939_p11, %p1933_p8 }
  0x1b   :  { %1943 = shalt.err (!%p1940_p12)
}
  0x1c   :  { %s1989_s29 = smov [#allocation6]   ;;  %s40_s5 = sshll.u32 %s3353_s2, 4  ;;  %s41_s5 = int_to_ptr.vmem [resolvable:$true] %s40_s5 }
  0x1d   :  { %33 = dma.vmem_to_smem %s31_s16, 32, %s1989_s29, [#allocation5]  }
  0x1e   :  { %s1944_s6 = scalar_lea.vmem %s41_s5, 16  ;;  %p1949_p0 = scmp.lt.s32.totalorder %s41_s5, %s41_s5 }
  0x1f   :  { %p1945_p13 = scmp.ne.s32.totalorder %s41_s5, %s1944_s6  ;;  %p1950_p1 = scmp.lt.s32.totalorder %s1944_s6, %s1944_s6 }
  0x21   :  { %p1951_p2 = por %p1950_p1, %p1949_p0 }
  0x23   :  { %p1952_p3 = pnand %p1951_p2, %p1945_p13 }
  0x25   :  { %1955 = shalt.err (!%p1952_p3)
}
  0x26   :  { %s1990_s0 = smov [#allocation7]  }
  0x27   :  { %43 = dma.vmem_to_smem %s41_s5, 16, %s1990_s0, [#allocation8]  }
  0x28   :  { %1978 = dma.done.wait [#allocation3], 1024  }
  0x29   :  { %1979 = vsyncadd [#allocation3], 4294966272 }
  0x2a   :  { %1980 = dma.done.wait [#allocation5], 32  }
  0x2b   :  { %1981 = vsyncadd [#allocation5], 4294967264 }
  0x2c   :  { %1982 = dma.done.wait [#allocation8], 16  }
  0x2d   :  { %1983 = vsyncadd [#allocation8], 4294967280 }
  0x2e   :  { %53 = sfence }
  0x2f   :  { %v2033_v0 = vld [vmem:[#allocation2] sm:$0xff]  ;;  %v2035_v1 = vld [vmem:[#allocation2 + $0x8] sm:$0xff]  ;;  %v2037_v2 = vld [vmem:[#allocation2 + $0x10] sm:$0xff]  ;;  %vm70_vm0 = vcmask 1040384   ;;  %s2055_s2 = sld [smem:[#allocation7]]  ;;  %s2059_s7 = sld [smem:[#allocation7 + $0x6]] }
  0x30   :  { %v2039_v3 = vld [vmem:[#allocation2 + $0x18] sm:$0xff]  ;;  %v2041_v4 = vld [vmem:[#allocation2 + $0x20] sm:$0xff]  ;;  %v2043_v5 = vld [vmem:[#allocation2 + $0x28] sm:$0xff]  ;;  %v71_v8 = vrot.slane %v2033_v0, 7  ;;  %v72_v9 = vrot.slane %v2035_v1, 7  ;;  %v74_v10 = vrot.slane %v2037_v2, 7 }
  0x31   :  { %v2045_v6 = vld [vmem:[#allocation2 + $0x30] sm:$0xff]  ;;  %v2047_v7 = vld [vmem:[#allocation2 + $0x38] sm:$0xff]  ;;  %v75_v11 = vrot.slane %v2039_v3, 7  ;;  %v77_v12 = vrot.slane %v2041_v4, 7  ;;  %v78_v13 = vrot.slane %v2043_v5, 7  ;;  %s2061_s8 = sld [smem:[#allocation7 + $0xc]] }
  0x32   :  { %v80_v14 = vrot.slane %v2045_v6, 7  ;;  %v81_v15 = vrot.slane %v2047_v7, 7  ;;  %vm95_vm1 = vcmask 1046528   ;;  %v96_v16 = vrot.slane %v2033_v0, 1  ;;  %s2066_s9 = sld [smem:[#allocation6]]  ;;  %s2072_s10 = sld [smem:[#allocation6 + $0x6]] }
  0x33   :  { %v97_v17 = vrot.slane %v2035_v1, 1  ;;  %v99_v18 = vrot.slane %v2037_v2, 1  ;;  %v100_v19 = vrot.slane %v2039_v3, 1  ;;  %v102_v20 = vrot.slane %v2041_v4, 1  ;;  %s2084_s11 = sld [smem:[#allocation6 + $0xc]]  ;;  %s2086_s12 = sld [smem:[#allocation6 + $0x12]] }
  0x34   :  { %v103_v21 = vrot.slane %v2043_v5, 1  ;;  %v105_v22 = vrot.slane %v2045_v6, 1  ;;  %v2075_v23 = vsel %vm70_vm0, %v71_v8, %v72_v9  ;;  %v2078_v24 = vsel %vm70_vm0, %v74_v10, %v75_v11  ;;  %s2100_s13 = sld [smem:[#allocation6 + $0x18]]  ;;  %s2102_s14 = sld [smem:[#allocation6 + $0x1e]] }
  0x35   :  { %v2081_v25 = vsel %vm70_vm0, 0.0, %v71_v8  ;;  %v106_v26 = vrot.slane %v2047_v7, 1  ;;  %v2089_v27 = vsel %vm70_vm0, %v77_v12, %v78_v13  ;;  %v2092_v28 = vsel %vm70_vm0, %v80_v14, %v81_v15  ;;  %s2128_s15 = sld [smem:[#allocation6 + $0x24]]  ;;  %s2130_s16 = sld [smem:[#allocation6 + $0x2a]] }
  0x36   :  { %v2095_v29 = vsel %vm70_vm0, 0.0, %v74_v10  ;;  %v2098_v30 = vsel %vm70_vm0, 0.0, %v77_v12  ;;  %v2105_v31 = vsel %vm70_vm0, 0.0, %v80_v14  ;;  %v2108_v32 = vsel %vm95_vm1, %v96_v16, %v97_v17  ;;  %s2146_s17 = sld [smem:[#allocation6 + $0x30]]  ;;  %s2148_s18 = sld [smem:[#allocation6 + $0x36]] }
  0x37   :  { %v2111_v33 = vsel %vm95_vm1, %v99_v18, %v100_v19  ;;  %v2114_v34 = vsel %vm95_vm1, %v97_v17, 0.0  ;;  %v2117_v35 = vsel %vm95_vm1, %v102_v20, %v103_v21  ;;  %v2120_v36 = vsel %vm95_vm1, %v105_v22, %v106_v26  ;;  %s2154_s19 = sld [smem:[#allocation6 + $0x3c]]  ;;  %s2156_s20 = sld [smem:[#allocation6 + $0x42]] }
  0x38   :  { %v2123_v37 = vsel %vm95_vm1, %v100_v19, 0.0  ;;  %v2126_v38 = vsel %vm95_vm1, %v103_v21, 0.0  ;;  %v2133_v39 = vsel %vm95_vm1, %v106_v26, 0.0  ;;  %v121_v40 = vstv %s2055_s2  ;;  %s2166_s21 = sld [smem:[#allocation6 + $0x48]]  ;;  %s2168_s22 = sld [smem:[#allocation6 + $0x4e]] }
  0x39   :  { %v123_v41 = vstv %s2059_s7  ;;  %v127_v42 = vstv %s2066_s9  ;;  %v125_v43 = vstv %s2061_s8  ;;  %v133_v46 = vstv %s2072_s10  ;;  %s2174_s23 = sld [smem:[#allocation6 + $0x54]]  ;;  %s2176_s24 = sld [smem:[#allocation6 + $0x5a]] }
  0x3a   :  { %v128_v44 = vmul.f32 %v127_v42, %v2081_v25  ;;  %v129_v45 = vmul.f32 %v127_v42, %v2075_v23  ;;  %v134_v47 = vmul.f32 %v133_v46, %v2081_v25  ;;  %v135_v48 = vmul.f32 %v133_v46, %v2075_v23  ;;  %s2186_s26 = sld [smem:[#allocation6 + $0x60]]  ;;  %s2188_s27 = sld [smem:[#allocation6 + $0x66]] }
  0x3b   :  { %v139_v49 = vstv %s2084_s11  ;;  %v145_v50 = vstv %s2086_s12  ;;  %v151_v61 = vstv %s2100_s13  ;;  %v157_v62 = vstv %s2102_s14  ;;  %s2194_s28 = sld [smem:[#allocation6 + $0x6c]]  ;;  %s2196_s29 = sld [smem:[#allocation6 + $0x72]] }
  0x3c   :  { %v130_v51 = vadd.f32 %v128_v44, %v121_v40  ;;  %v131_v52 = vadd.f32 %v129_v45, %v121_v40  ;;  %v140_v53 = vmul.f32 %v139_v49, %v2081_v25  ;;  %v141_v54 = vmul.f32 %v139_v49, %v2075_v23  ;;  %s2206_s30 = sld [smem:[#allocation6 + $0x78]]  ;;  %s2208_s4 = sld [smem:[#allocation6 + $0x7e]] }
  0x3d   :  { %v136_v55 = vadd.f32 %v134_v47, %v123_v41  ;;  %v137_v56 = vadd.f32 %v135_v48, %v123_v41  ;;  %v146_v57 = vmul.f32 %v145_v50, %v2095_v29  ;;  %v147_v58 = vmul.f32 %v145_v50, %v2078_v24  ;;  %s2214_s5 = sld [smem:[#allocation6 + $0x84]]  ;;  %s2216_s6 = sld [smem:[#allocation6 + $0x8a]] }
  0x3e   :  { %v142_v59 = vadd.f32 %v140_v53, %v125_v43  ;;  %v143_v60 = vadd.f32 %v141_v54, %v125_v43  ;;  %v152_v9 = vmul.f32 %v151_v61, %v2095_v29  ;;  %v153_v10 = vmul.f32 %v151_v61, %v2078_v24  ;;  %s2226_s0 = sld [smem:[#allocation6 + $0x90]]  ;;  %s2228_s2 = sld [smem:[#allocation6 + $0x96]] }
  0x3f   :  { %v148_v63 = vadd.f32 %v146_v57, %v130_v51  ;;  %v149_v8 = vadd.f32 %v147_v58, %v131_v52  ;;  %v158_v11 = vmul.f32 %v157_v62, %v2095_v29  ;;  %v159_v12 = vmul.f32 %v157_v62, %v2078_v24  ;;  %s2234_s7 = sld [smem:[#allocation6 + $0x9c]]  ;;  %s2236_s8 = sld [smem:[#allocation6 + $0xa2]] }
  0x40   :  { %v163_v13 = vstv %s2128_s15  ;;  %v169_v14 = vstv %s2130_s16  ;;  %v154_v15 = vadd.f32 %v152_v9, %v136_v55  ;;  %v155_v16 = vadd.f32 %v153_v10, %v137_v56  ;;  %s2246_s9 = sld [smem:[#allocation6 + $0xa8]]  ;;  %s2248_s10 = sld [smem:[#allocation6 + $0xae]] }
  0x41   :  { %v164_v17 = vmul.f32 %v163_v13, %v2098_v30  ;;  %v165_v18 = vmul.f32 %v163_v13, %v2089_v27  ;;  %v160_v19 = vadd.f32 %v158_v11, %v142_v59  ;;  %v161_v20 = vadd.f32 %v159_v12, %v143_v60  ;;  %s2254_s11 = sld [smem:[#allocation6 + $0xb4]]  ;;  %s2256_s12 = sld [smem:[#allocation6 + $0xba]] }
  0x42   :  { %v170_v21 = vmul.f32 %v169_v14, %v2098_v30  ;;  %v171_v22 = vmul.f32 %v169_v14, %v2089_v27  ;;  %v175_v41 = vstv %s2146_s17  ;;  %v181_v42 = vstv %s2148_s18  ;;  %s2266_s13 = sld [smem:[#allocation6 + $0xc0]]  ;;  %s2268_s14 = sld [smem:[#allocation6 + $0xc6]] }
  0x43   :  { %v166_v26 = vadd.f32 %v164_v17, %v148_v63  ;;  %v167_v40 = vadd.f32 %v165_v18, %v149_v8  ;;  %v176_v45 = vmul.f32 %v175_v41, %v2098_v30  ;;  %v177_v46 = vmul.f32 %v175_v41, %v2089_v27  ;;  %s2274_s15 = sld [smem:[#allocation6 + $0xcc]]  ;;  %s2276_s16 = sld [smem:[#allocation6 + $0xd2]] }
  0x44   :  { %v172_v43 = vadd.f32 %v170_v21, %v154_v15  ;;  %v173_v44 = vadd.f32 %v171_v22, %v155_v16  ;;  %v182_v47 = vmul.f32 %v181_v42, %v2105_v31  ;;  %v183_v48 = vmul.f32 %v181_v42, %v2092_v28  ;;  %s2286_s17 = sld [smem:[#allocation7 + $0x1]]  ;;  %s2288_s18 = sld [smem:[#allocation7 + $0x7]] }
  0x45   :  { %v187_v49 = vstv %s2154_s19  ;;  %v193_v50 = vstv %s2156_s20  ;;  %v178_v51 = vadd.f32 %v176_v45, %v160_v19  ;;  %v179_v52 = vadd.f32 %v177_v46, %v161_v20  ;;  %s2292_s19 = sld [smem:[#allocation7 + $0xd]]  ;;  %s2294_s20 = sld [smem:[#allocation6 + $0x1]] }
  0x46   :  { %v188_v53 = vmul.f32 %v187_v49, %v2105_v31  ;;  %v189_v54 = vmul.f32 %v187_v49, %v2092_v28  ;;  %v184_v55 = vadd.f32 %v182_v47, %v166_v26  ;;  %v185_v56 = vadd.f32 %v183_v48, %v167_v40 }
  0x47   :  { %v194_v57 = vmul.f32 %v193_v50, %v2105_v31  ;;  %v195_v58 = vmul.f32 %v193_v50, %v2092_v28  ;;  %v199_v61 = vstv %s2166_s21  ;;  %v205_v62 = vstv %s2168_s22  ;;  %s2298_s21 = sld [smem:[#allocation6 + $0x7]]  ;;  %s2300_s22 = sld [smem:[#allocation6 + $0xd]] }
  0x48   :  { %v190_v59 = vadd.f32 %v188_v53, %v172_v43  ;;  %v191_v60 = vadd.f32 %v189_v54, %v173_v44  ;;  %v200_v9 = vmul.f32 %v199_v61, %v2033_v0  ;;  %v201_v10 = vmul.f32 %v199_v61, %v2035_v1 }
  0x49   :  { %v196_v63 = vadd.f32 %v194_v57, %v178_v51  ;;  %v197_v8 = vadd.f32 %v195_v58, %v179_v52  ;;  %v206_v11 = vmul.f32 %v205_v62, %v2033_v0  ;;  %v207_v12 = vmul.f32 %v205_v62, %v2035_v1 }
  0x4a   :  { %v211_v13 = vstv %s2174_s23  ;;  %v217_v14 = vstv %s2176_s24  ;;  %v202_v15 = vadd.f32 %v200_v9, %v184_v55  ;;  %v203_v16 = vadd.f32 %v201_v10, %v185_v56  ;;  %s2304_s23 = sld [smem:[#allocation6 + $0x13]]  ;;  %s2306_s24 = sld [smem:[#allocation6 + $0x19]] }
  0x4b   :  { %v212_v17 = vmul.f32 %v211_v13, %v2033_v0  ;;  %v213_v18 = vmul.f32 %v211_v13, %v2035_v1  ;;  %v208_v19 = vadd.f32 %v206_v11, %v190_v59  ;;  %v209_v20 = vadd.f32 %v207_v12, %v191_v60 }
  0x4c   :  { %v218_v21 = vmul.f32 %v217_v14, %v2037_v2  ;;  %v219_v22 = vmul.f32 %v217_v14, %v2039_v3  ;;  %v223_v41 = vstv %s2186_s26  ;;  %v229_v42 = vstv %s2188_s27  ;;  %s2330_s26 = sld [smem:[#allocation6 + $0x1f]]  ;;  %s2336_s27 = sld [smem:[#allocation6 + $0x25]] }
  0x4d   :  { %v214_v26 = vadd.f32 %v212_v17, %v196_v63  ;;  %v215_v40 = vadd.f32 %v213_v18, %v197_v8  ;;  %v224_v45 = vmul.f32 %v223_v41, %v2037_v2  ;;  %v225_v46 = vmul.f32 %v223_v41, %v2039_v3 }
  0x4e   :  { %v220_v43 = vadd.f32 %v218_v21, %v202_v15  ;;  %v221_v44 = vadd.f32 %v219_v22, %v203_v16  ;;  %v230_v47 = vmul.f32 %v229_v42, %v2037_v2  ;;  %v231_v48 = vmul.f32 %v229_v42, %v2039_v3 }
  0x4f   :  { %v235_v49 = vstv %s2194_s28  ;;  %v241_v50 = vstv %s2196_s29  ;;  %v226_v51 = vadd.f32 %v224_v45, %v208_v19  ;;  %v227_v52 = vadd.f32 %v225_v46, %v209_v20  ;;  %s2338_s28 = sld [smem:[#allocation6 + $0x2b]]  ;;  %s2342_s29 = sld [smem:[#allocation6 + $0x31]] }
  0x50   :  { %v236_v53 = vmul.f32 %v235_v49, %v2041_v4  ;;  %v237_v54 = vmul.f32 %v235_v49, %v2043_v5  ;;  %v232_v55 = vadd.f32 %v230_v47, %v214_v26  ;;  %v233_v56 = vadd.f32 %v231_v48, %v215_v40 }
  0x51   :  { %v242_v57 = vmul.f32 %v241_v50, %v2041_v4  ;;  %v243_v58 = vmul.f32 %v241_v50, %v2043_v5  ;;  %v247_v61 = vstv %s2206_s30  ;;  %v253_v62 = vstv %s2208_s4  ;;  %s2352_s30 = sld [smem:[#allocation6 + $0x37]]  ;;  %s2354_s4 = sld [smem:[#allocation6 + $0x3d]] }
  0x52   :  { %v238_v59 = vadd.f32 %v236_v53, %v220_v43  ;;  %v239_v60 = vadd.f32 %v237_v54, %v221_v44  ;;  %v248_v9 = vmul.f32 %v247_v61, %v2041_v4  ;;  %v249_v10 = vmul.f32 %v247_v61, %v2043_v5 }
  0x53   :  { %v244_v63 = vadd.f32 %v242_v57, %v226_v51  ;;  %v245_v8 = vadd.f32 %v243_v58, %v227_v52  ;;  %v254_v11 = vmul.f32 %v253_v62, %v2045_v6  ;;  %v255_v12 = vmul.f32 %v253_v62, %v2047_v7 }
  0x54   :  { %v259_v13 = vstv %s2214_s5  ;;  %v265_v14 = vstv %s2216_s6  ;;  %v250_v15 = vadd.f32 %v248_v9, %v232_v55  ;;  %v251_v16 = vadd.f32 %v249_v10, %v233_v56  ;;  %s2360_s5 = sld [smem:[#allocation6 + $0x43]]  ;;  %s2370_s6 = sld [smem:[#allocation6 + $0x49]] }
  0x55   :  { %v260_v17 = vmul.f32 %v259_v13, %v2045_v6  ;;  %v261_v18 = vmul.f32 %v259_v13, %v2047_v7  ;;  %v256_v19 = vadd.f32 %v254_v11, %v238_v59  ;;  %v257_v20 = vadd.f32 %v255_v12, %v239_v60 }
  0x56   :  { %v266_v21 = vmul.f32 %v265_v14, %v2045_v6  ;;  %v267_v22 = vmul.f32 %v265_v14, %v2047_v7  ;;  %v271_v41 = vstv %s2226_s0  ;;  %v277_v42 = vstv %s2228_s2  ;;  %s2372_s0 = sld [smem:[#allocation6 + $0x4f]]  ;;  %s2376_s2 = sld [smem:[#allocation6 + $0x55]] }
  0x57   :  { %v262_v26 = vadd.f32 %v260_v17, %v244_v63  ;;  %v263_v40 = vadd.f32 %v261_v18, %v245_v8  ;;  %v272_v45 = vmul.f32 %v271_v41, %v2108_v32  ;;  %v273_v46 = vmul.f32 %v271_v41, %v2114_v34 }
  0x58   :  { %v268_v43 = vadd.f32 %v266_v21, %v250_v15  ;;  %v269_v44 = vadd.f32 %v267_v22, %v251_v16  ;;  %v278_v47 = vmul.f32 %v277_v42, %v2108_v32  ;;  %v279_v48 = vmul.f32 %v277_v42, %v2114_v34 }
  0x59   :  { %v283_v49 = vstv %s2234_s7  ;;  %v289_v50 = vstv %s2236_s8  ;;  %v274_v51 = vadd.f32 %v272_v45, %v256_v19  ;;  %v275_v52 = vadd.f32 %v273_v46, %v257_v20  ;;  %s2380_s7 = sld [smem:[#allocation6 + $0x5b]]  ;;  %s2382_s8 = sld [smem:[#allocation6 + $0x61]] }
  0x5a   :  { %v284_v53 = vmul.f32 %v283_v49, %v2108_v32  ;;  %v285_v54 = vmul.f32 %v283_v49, %v2114_v34  ;;  %v280_v55 = vadd.f32 %v278_v47, %v262_v26  ;;  %v281_v56 = vadd.f32 %v279_v48, %v263_v40 }
  0x5b   :  { %v290_v57 = vmul.f32 %v289_v50, %v2111_v33  ;;  %v291_v58 = vmul.f32 %v289_v50, %v2123_v37  ;;  %v295_v61 = vstv %s2246_s9  ;;  %v301_v62 = vstv %s2248_s10  ;;  %s2391_s9 = sld [smem:[#allocation6 + $0x67]]  ;;  %s2395_s10 = sld [smem:[#allocation6 + $0x6d]] }
  0x5c   :  { %v286_v59 = vadd.f32 %v284_v53, %v268_v43  ;;  %v287_v60 = vadd.f32 %v285_v54, %v269_v44  ;;  %v296_v9 = vmul.f32 %v295_v61, %v2111_v33  ;;  %v297_v10 = vmul.f32 %v295_v61, %v2123_v37 }
  0x5d   :  { %v292_v63 = vadd.f32 %v290_v57, %v274_v51  ;;  %v293_v8 = vadd.f32 %v291_v58, %v275_v52  ;;  %v302_v11 = vmul.f32 %v301_v62, %v2111_v33  ;;  %v303_v12 = vmul.f32 %v301_v62, %v2123_v37 }
  0x5e   :  { %v307_v13 = vstv %s2254_s11  ;;  %v313_v14 = vstv %s2256_s12  ;;  %v298_v15 = vadd.f32 %v296_v9, %v280_v55  ;;  %v299_v16 = vadd.f32 %v297_v10, %v281_v56  ;;  %s2399_s11 = sld [smem:[#allocation6 + $0x73]]  ;;  %s2404_s12 = sld [smem:[#allocation6 + $0x79]] }
  0x5f   :  { %v308_v17 = vmul.f32 %v307_v13, %v2117_v35  ;;  %v309_v18 = vmul.f32 %v307_v13, %v2126_v38  ;;  %v304_v19 = vadd.f32 %v302_v11, %v286_v59  ;;  %v305_v20 = vadd.f32 %v303_v12, %v287_v60 }
  0x60   :  { %v314_v21 = vmul.f32 %v313_v14, %v2117_v35  ;;  %v315_v22 = vmul.f32 %v313_v14, %v2126_v38  ;;  %v319_v41 = vstv %s2266_s13  ;;  %v325_v42 = vstv %s2268_s14  ;;  %s2414_s13 = sld [smem:[#allocation6 + $0x7f]]  ;;  %s2416_s14 = sld [smem:[#allocation6 + $0x85]] }
  0x61   :  { %v310_v26 = vadd.f32 %v308_v17, %v292_v63  ;;  %v311_v40 = vadd.f32 %v309_v18, %v293_v8  ;;  %v320_v45 = vmul.f32 %v319_v41, %v2117_v35  ;;  %v321_v46 = vmul.f32 %v319_v41, %v2126_v38 }
  0x62   :  { %v316_v43 = vadd.f32 %v314_v21, %v298_v15  ;;  %v317_v44 = vadd.f32 %v315_v22, %v299_v16  ;;  %v326_v47 = vmul.f32 %v325_v42, %v2120_v36  ;;  %v327_v48 = vmul.f32 %v325_v42, %v2133_v39 }
  0x63   :  { %v331_v49 = vstv %s2274_s15  ;;  %v337_v50 = vstv %s2276_s16  ;;  %v2316_v53 = vadd.f32 %v320_v45, %v304_v19  ;;  %v2318_v54 = vadd.f32 %v321_v46, %v305_v20  ;;  %s2426_s15 = sld [smem:[#allocation6 + $0x8b]]  ;;  %s2432_s16 = sld [smem:[#allocation6 + $0x91]] }
  0x64   :  { %v332_v51 = vmul.f32 %v331_v49, %v2120_v36  ;;  %v333_v52 = vmul.f32 %v331_v49, %v2133_v39  ;;  %v2320_v55 = vadd.f32 %v326_v47, %v310_v26  ;;  %v2322_v56 = vadd.f32 %v327_v48, %v311_v40 }
  0x65   :  { %v2325_v59 = vmul.f32 %v337_v50, %v2120_v36  ;;  %v2328_v60 = vmul.f32 %v337_v50, %v2133_v39  ;;  %v363_v61 = vstv %s2286_s17  ;;  %v365_v62 = vstv %s2288_s18  ;;  %s2438_s17 = sld [smem:[#allocation6 + $0x97]]  ;;  %s2441_s18 = sld [smem:[#allocation6 + $0x9d]] }
  0x66   :  { %v334_v57 = vadd.f32 %v332_v51, %v316_v43  ;;  %v335_v58 = vadd.f32 %v333_v52, %v317_v44  ;;  %v367_v63 = vstv %s2292_s19  ;;  %v369_v8 = vstv %s2294_s20  ;;  %s2448_s19 = sld [smem:[#allocation6 + $0xa3]]  ;;  %s2450_s20 = sld [smem:[#allocation6 + $0xa9]] }
  0x67   :  { %v370_v11 = vmul.f32 %v369_v8, %v2081_v25  ;;  %v371_v12 = vmul.f32 %v369_v8, %v2075_v23  ;;  %v375_v13 = vstv %s2298_s21  ;;  %v381_v14 = vstv %s2300_s22  ;;  %s2456_s21 = sld [smem:[#allocation6 + $0xaf]]  ;;  %s2460_s22 = sld [smem:[#allocation6 + $0xb5]] }
  0x68   :  { %v1633_v9 = vmul.f32 -1.442695, %v334_v57  ;;  %v1634_v10 = vmul.f32 -1.442695, %v335_v58  ;;  %v387_v15 = vstv %s2304_s23  ;;  %v393_v16 = vstv %s2306_s24  ;;  %s2466_s23 = sld [smem:[#allocation6 + $0xbb]]  ;;  %s2473_s24 = sld [smem:[#allocation6 + $0xcd]] }
  0x69   :  { %v372_v17 = vadd.f32 %v370_v11, %v363_v61  ;;  %v373_v18 = vadd.f32 %v371_v12, %v363_v61  ;;  %v376_v19 = vmul.f32 %v375_v13, %v2081_v25  ;;  %v377_v20 = vmul.f32 %v375_v13, %v2075_v23 }
  0x6a   :  { %1846 = vpow2.f32 %v1633_v9  ;;  %v382_v21 = vmul.f32 %v381_v14, %v2081_v25  ;;  %v383_v22 = vmul.f32 %v381_v14, %v2075_v23  ;;  %v388_v40 = vmul.f32 %v387_v15, %v2095_v29 }
  0x6b   :  { %1848 = vpow2.f32 %v1634_v10  ;;  %v378_v26 = vadd.f32 %v376_v19, %v365_v62  ;;  %v389_v41 = vmul.f32 %v387_v15, %v2078_v24  ;;  %v394_v42 = vmul.f32 %v393_v16, %v2095_v29 }
  0x6c   :  { %v379_v43 = vadd.f32 %v377_v20, %v365_v62  ;;  %v384_v44 = vadd.f32 %v382_v21, %v367_v63  ;;  %v385_v45 = vadd.f32 %v383_v22, %v367_v63  ;;  %v395_v46 = vmul.f32 %v393_v16, %v2078_v24 }
  0x6d   :  { %v390_v47 = vadd.f32 %v388_v40, %v372_v17  ;;  %v391_v48 = vadd.f32 %v389_v41, %v373_v18  ;;  %v396_v49 = vadd.f32 %v394_v42, %v378_v26  ;;  %v399_v50 = vstv %s2330_s26  ;;  %s2477_s26 = sld [smem:[#allocation6 + $0xc1]] }
  0x6e   :  { %v397_v51 = vadd.f32 %v395_v46, %v379_v43  ;;  %v400_v52 = vmul.f32 %v399_v50, %v2095_v29  ;;  %v401_v57 = vmul.f32 %v399_v50, %v2078_v24  ;;  %v405_v58 = vstv %s2336_s27  ;;  %s2486_s27 = sld [smem:[#allocation6 + $0xc7]] }
  0x6f   :  { %v406_v61 = vmul.f32 %v405_v58, %v2098_v30  ;;  %v407_v62 = vmul.f32 %v405_v58, %v2089_v27  ;;  %v411_v8 = vstv %s2338_s28  ;;  %v417_v63 = vstv %s2342_s29  ;;  %s2488_s28 = sld [smem:[#allocation6 + $0x2]]  ;;  %s2490_s29 = sld [smem:[#allocation6 + $0x8]] }
  0x70   :  { %v402_v9 = vadd.f32 %v400_v52, %v384_v44  ;;  %v403_v10 = vadd.f32 %v401_v57, %v385_v45  ;;  %v412_v11 = vmul.f32 %v411_v8, %v2098_v30  ;;  %v413_v12 = vmul.f32 %v411_v8, %v2089_v27 }
  0x71   :  { %v408_v13 = vadd.f32 %v406_v61, %v390_v47  ;;  %v409_v14 = vadd.f32 %v407_v62, %v391_v48  ;;  %v418_v15 = vmul.f32 %v417_v63, %v2098_v30  ;;  %v419_v16 = vmul.f32 %v417_v63, %v2089_v27 }
  0x72   :  { %v414_v17 = vadd.f32 %v412_v11, %v396_v49  ;;  %v415_v18 = vadd.f32 %v413_v12, %v397_v51  ;;  %v423_v19 = vstv %s2352_s30  ;;  %v429_v20 = vstv %s2354_s4  ;;  %s2494_s30 = sld [smem:[#allocation7 + $0x2]]  ;;  %s2496_s4 = sld [smem:[#allocation7 + $0x8]] }
  0x73   :  { %v420_v22 = vadd.f32 %v418_v15, %v402_v9  ;;  %v421_v26 = vadd.f32 %v419_v16, %v403_v10  ;;  %v424_v40 = vmul.f32 %v423_v19, %v2105_v31  ;;  %v425_v41 = vmul.f32 %v423_v19, %v2092_v28 }
  0x74   :  { %v1847_v21 = vpop.eup %1846  ;;  %v430_v44 = vmul.f32 %v429_v20, %v2105_v31  ;;  %v431_v45 = vmul.f32 %v429_v20, %v2092_v28  ;;  %v435_v46 = vstv %s2360_s5  ;;  %v441_v61 = vstv %s2370_s6  ;;  %s2502_s5 = sld [smem:[#allocation6 + $0xe]]  ;;  %s2506_s6 = sld [smem:[#allocation6 + $0x14]] }
  0x75   :  { %v1849_v42 = vpop.eup %1848  ;;  %v348_v43 = vadd.f32 1.0, %v1847_v21  ;;  %v426_v48 = vadd.f32 %v424_v40, %v408_v13  ;;  %v427_v49 = vadd.f32 %v425_v41, %v409_v14  ;;  %v436_v50 = vmul.f32 %v435_v46, %v2105_v31 }
  0x76   :  { %v349_v47 = vadd.f32 1.0, %v1849_v42  ;;  %v432_v51 = vadd.f32 %v430_v44, %v414_v17  ;;  %v433_v52 = vadd.f32 %v431_v45, %v415_v18  ;;  %v437_v57 = vmul.f32 %v435_v46, %v2092_v28 }
  0x77   :  { %1850 = vrcp.f32 %v348_v43  ;;  %v438_v58 = vadd.f32 %v436_v50, %v420_v22  ;;  %v447_v62 = vstv %s2372_s0  ;;  %v442_v63 = vmul.f32 %v441_v61, %v2033_v0  ;;  %s2508_s0 = sld [smem:[#allocation6 + $0x1a]] }
  0x78   :  { %1852 = vrcp.f32 %v349_v47  ;;  %v439_v8 = vadd.f32 %v437_v57, %v421_v26  ;;  %v443_v9 = vmul.f32 %v441_v61, %v2035_v1  ;;  %v448_v10 = vmul.f32 %v447_v62, %v2033_v0 }
  0x79   :  { %v449_v11 = vmul.f32 %v447_v62, %v2035_v1  ;;  %v453_v12 = vstv %s2376_s2  ;;  %v459_v13 = vstv %s2380_s7  ;;  %v465_v14 = vstv %s2382_s8  ;;  %s2511_s2 = sld [smem:[#allocation7 + $0xe]]  ;;  %s2517_s7 = sld [smem:[#allocation6 + $0x20]] }
  0x7a   :  { %v444_v15 = vadd.f32 %v442_v63, %v426_v48  ;;  %v445_v16 = vadd.f32 %v443_v9, %v427_v49  ;;  %v450_v17 = vadd.f32 %v448_v10, %v432_v51  ;;  %v454_v18 = vmul.f32 %v453_v12, %v2033_v0  ;;  %s2526_s8 = sld [smem:[#allocation6 + $0x26]] }
  0x7b   :  { %v451_v19 = vadd.f32 %v449_v11, %v433_v52  ;;  %v455_v20 = vmul.f32 %v453_v12, %v2035_v1  ;;  %v460_v21 = vmul.f32 %v459_v13, %v2037_v2  ;;  %v461_v22 = vmul.f32 %v459_v13, %v2039_v3 }
  0x7c   :  { %v340_v26 = vadd.f32 %v2325_v59, %v2316_v53  ;;  %v466_v40 = vmul.f32 %v465_v14, %v2037_v2  ;;  %v467_v0 = vmul.f32 %v465_v14, %v2039_v3  ;;  %v471_v41 = vstv %s2391_s9  ;;  %s2528_s9 = sld [smem:[#allocation6 + $0x2c]] }
  0x7d   :  { %v341_v1 = vadd.f32 %v2328_v60, %v2318_v54  ;;  %v456_v42 = vadd.f32 %v454_v18, %v438_v58  ;;  %v457_v43 = vadd.f32 %v455_v20, %v439_v8  ;;  %v472_v44 = vmul.f32 %v471_v41, %v2037_v2 }
  0x7e   :  { %v468_v45 = vadd.f32 %v466_v40, %v450_v17  ;;  %v469_v46 = vadd.f32 %v467_v0, %v451_v19  ;;  %v473_v53 = vmul.f32 %v471_v41, %v2039_v3  ;;  %v477_v59 = vstv %s2395_s10  ;;  %s2532_s10 = sld [smem:[#allocation6 + $0x32]] }
  0x7f   :  { %v462_v47 = vadd.f32 %v460_v21, %v444_v15  ;;  %v463_v48 = vadd.f32 %v461_v22, %v445_v16  ;;  %v478_v49 = vmul.f32 %v477_v59, %v2041_v4  ;;  %v483_v50 = vstv %s2399_s11  ;;  %s2538_s11 = sld [smem:[#allocation6 + $0xd3]] }
  0x80   :  { %v479_v60 = vmul.f32 %v477_v59, %v2043_v5  ;;  %v484_v2 = vmul.f32 %v483_v50, %v2041_v4  ;;  %v485_v51 = vmul.f32 %v483_v50, %v2043_v5  ;;  %v489_v52 = vstv %s2404_s12  ;;  %s2544_s12 = sld [smem:[#allocation6 + $0x38]] }
  0x81   :  { %v1851_v54 = vpop.eup %1850  ;;  %v474_v58 = vadd.f32 %v472_v44, %v456_v42  ;;  %v475_v61 = vadd.f32 %v473_v53, %v457_v43  ;;  %v490_v9 = vmul.f32 %v489_v52, %v2041_v4  ;;  %v491_v11 = vmul.f32 %v489_v52, %v2043_v5 }
  0x82   :  { %v1853_v3 = vpop.eup %1852  ;;  %v354_v57 = vmul.f32 %v1851_v54, %v2320_v55  ;;  %v486_v8 = vadd.f32 %v484_v2, %v468_v45  ;;  %v487_v63 = vadd.f32 %v485_v51, %v469_v46  ;;  %v495_v12 = vstv %s2414_s13  ;;  %s2555_s13 = sld [smem:[#allocation6 + $0x3e]] }
  0x83   :  { %v355_v62 = vmul.f32 %v1853_v3, %v2322_v56  ;;  %v501_v13 = vstv %s2416_s14  ;;  %v480_v14 = vadd.f32 %v478_v49, %v462_v47  ;;  %v481_v15 = vadd.f32 %v479_v60, %v463_v48  ;;  %s2557_s14 = sld [smem:[#allocation6 + $0x44]] }
  0x84   :  { %v356_v10 = vadd.f32 %v354_v57, %v340_v26  ;;  %v496_v56 = vmul.f32 %v495_v12, %v2045_v6  ;;  %v502_v17 = vmul.f32 %v501_v13, %v2045_v6  ;;  %v503_v4 = vmul.f32 %v501_v13, %v2047_v7 }
  0x85   :  { %v357_v55 = vadd.f32 %v355_v62, %v341_v1  ;;  %v507_v18 = vstv %s2426_s15  ;;  %v492_v19 = vadd.f32 %v490_v9, %v474_v58  ;;  %v497_v20 = vmul.f32 %v495_v12, %v2047_v7  ;;  %s2564_s15 = sld [smem:[#allocation6 + $0x4a]] }
  0x86   :  { %v358_v16 = vmax.f32 %v356_v10, 0.0  ;;  %v508_v21 = vmul.f32 %v507_v18, %v2045_v6  ;;  %v493_v22 = vadd.f32 %v491_v11, %v475_v61  ;;  %v504_v26 = vadd.f32 %v502_v17, %v486_v8 }
  0x87   :  { %v359_v5 = vmax.f32 %v357_v55, 0.0  ;;  %v505_v40 = vadd.f32 %v503_v4, %v487_v63  ;;  %v513_v0 = vstv %s2432_s16  ;;  %v498_v41 = vadd.f32 %v496_v56, %v480_v14  ;;  %s2574_s16 = sld [smem:[#allocation6 + $0x50]] }
  0x88   :  { %360 = vst [vmem:[#allocation9] sm:$0xff] %v358_v16  ;;  %v509_v1 = vmul.f32 %v507_v18, %v2047_v7  ;;  %v514_v42 = vmul.f32 %v513_v0, %v2108_v32  ;;  %v519_v43 = vstv %s2438_s17  ;;  %v525_v45 = vstv %s2441_s18  ;;  %s2584_s17 = sld [smem:[#allocation6 + $0x56]]  ;;  %s2586_s18 = sld [smem:[#allocation6 + $0x5c]] }
  0x89   :  { %361 = vst [vmem:[#allocation9 + $0x8] sm:$0xff] %v359_v5  ;;  %v520_v6 = vmul.f32 %v519_v43, %v2108_v32  ;;  %v521_v44 = vmul.f32 %v519_v43, %v2114_v34  ;;  %v499_v46 = vadd.f32 %v497_v20, %v481_v15  ;;  %v510_v53 = vadd.f32 %v508_v21, %v492_v19 }
  0x8a   :  { %v515_v59 = vmul.f32 %v513_v0, %v2114_v34  ;;  %v526_v47 = vmul.f32 %v525_v45, %v2108_v32  ;;  %v531_v49 = vstv %s2448_s19  ;;  %v537_v50 = vstv %s2450_s20  ;;  %s2590_s19 = sld [smem:[#allocation6 + $0x62]]  ;;  %s2596_s20 = sld [smem:[#allocation6 + $0x74]] }
  0x8b   :  { %v522_v7 = vadd.f32 %v520_v6, %v504_v26  ;;  %v523_v48 = vadd.f32 %v521_v44, %v505_v40  ;;  %v511_v54 = vadd.f32 %v509_v1, %v493_v22  ;;  %v516_v60 = vadd.f32 %v514_v42, %v498_v41 }
  0x8c   :  { %v527_v2 = vmul.f32 %v525_v45, %v2114_v34  ;;  %v532_v51 = vmul.f32 %v531_v49, %v2111_v33  ;;  %v538_v52 = vmul.f32 %v537_v50, %v2111_v33  ;;  %v539_v3 = vmul.f32 %v537_v50, %v2123_v37 }
  0x8d   :  { %v543_v57 = vstv %s2456_s21  ;;  %v517_v58 = vadd.f32 %v515_v59, %v499_v46  ;;  %v533_v61 = vmul.f32 %v531_v49, %v2123_v37  ;;  %v549_v62 = vstv %s2460_s22  ;;  %s2600_s21 = sld [smem:[#allocation6 + $0x68]]  ;;  %s2611_s22 = sld [smem:[#allocation6 + $0x6e]] }
  0x8e   :  { %v528_v8 = vadd.f32 %v526_v47, %v510_v53  ;;  %v540_v63 = vadd.f32 %v538_v52, %v522_v7  ;;  %v541_v9 = vadd.f32 %v539_v3, %v523_v48  ;;  %v529_v10 = vadd.f32 %v527_v2, %v511_v54 }
  0x8f   :  { %v534_v11 = vadd.f32 %v532_v51, %v516_v60  ;;  %v544_v12 = vmul.f32 %v543_v57, %v2111_v33  ;;  %v555_v13 = vstv %s2466_s23  ;;  %v545_v55 = vmul.f32 %v543_v57, %v2123_v37  ;;  %s2621_s23 = sld [smem:[#allocation6 + $0x86]] }
  0x90   :  { %v550_v14 = vmul.f32 %v549_v62, %v2117_v35  ;;  %v556_v15 = vmul.f32 %v555_v13, %v2117_v35  ;;  %v557_v56 = vmul.f32 %v555_v13, %v2126_v38  ;;  %v535_v16 = vadd.f32 %v533_v61, %v517_v58 }
  0x91   :  { %v551_v17 = vmul.f32 %v549_v62, %v2126_v38  ;;  %v573_v4 = vstv %s2473_s24  ;;  %v561_v19 = vstv %s2477_s26  ;;  %v546_v22 = vadd.f32 %v544_v12, %v528_v8  ;;  %s2631_s24 = sld [smem:[#allocation6 + $0x7a]]  ;;  %s2637_s26 = sld [smem:[#allocation6 + $0x80]] }
  0x92   :  { %v558_v18 = vadd.f32 %v556_v15, %v540_v63  ;;  %v559_v5 = vadd.f32 %v557_v56, %v541_v9  ;;  %v574_v20 = vmul.f32 %v573_v4, %v2120_v36  ;;  %v575_v21 = vmul.f32 %v573_v4, %v2133_v39 }
  0x93   :  { %v547_v26 = vadd.f32 %v545_v55, %v529_v10  ;;  %v2515_v40 = vadd.f32 %v550_v14, %v534_v11  ;;  %v2519_v0 = vadd.f32 %v551_v17, %v535_v16  ;;  %v562_v41 = vmul.f32 %v561_v19, %v2117_v35 }
  0x94   :  { %v576_v1 = vadd.f32 %v574_v20, %v558_v18  ;;  %v577_v42 = vadd.f32 %v575_v21, %v559_v5  ;;  %v563_v43 = vmul.f32 %v561_v19, %v2126_v38  ;;  %v567_v6 = vstv %s2486_s27  ;;  %s2648_s27 = sld [smem:[#allocation6 + $0x98]] }
  0x95   :  { %v612_v44 = vstv %s2488_s28  ;;  %v618_v45 = vstv %s2490_s29  ;;  %v606_v59 = vstv %s2494_s30  ;;  %v608_v47 = vstv %s2496_s4  ;;  %s2652_s28 = sld [smem:[#allocation6 + $0x8c]]  ;;  %s2657_s29 = sld [smem:[#allocation6 + $0x92]] }
  0x96   :  { %v1674_v46 = vmul.f32 -1.442695, %v576_v1  ;;  %v1675_v53 = vmul.f32 -1.442695, %v577_v42  ;;  %v613_v7 = vmul.f32 %v612_v44, %v2081_v25  ;;  %v614_v48 = vmul.f32 %v612_v44, %v2075_v23  ;;  %s2667_s30 = sld [smem:[#allocation6 + $0xaa]]  ;;  %s2671_s4 = sld [smem:[#allocation6 + $0x9e]] }
  0x97   :  { %v619_v49 = vmul.f32 %v618_v45, %v2081_v25  ;;  %v620_v50 = vmul.f32 %v618_v45, %v2075_v23  ;;  %v624_v54 = vstv %s2502_s5  ;;  %v630_v60 = vstv %s2506_s6  ;;  %s2673_s5 = sld [smem:[#allocation6 + $0xbc]] }
  0x98   :  { %1854 = vpow2.f32 %v1674_v46  ;;  %v636_v2 = vstv %s2508_s0  ;;  %v610_v51 = vstv %s2511_s2  ;;  %v615_v52 = vadd.f32 %v613_v7, %v606_v59  ;;  %s2677_s6 = sld [smem:[#allocation6 + $0xa4]]  ;;  %s2686_s0 = sld [smem:[#allocation6 + $0xb0]] }
  0x99   :  { %1856 = vpow2.f32 %v1675_v53  ;;  %v621_v3 = vadd.f32 %v619_v49, %v608_v47  ;;  %v2547_v57 = vmul.f32 %v567_v6, %v2120_v36  ;;  %v625_v58 = vmul.f32 %v624_v54, %v2081_v25  ;;  %s2688_s2 = sld [smem:[#allocation6 + $0xce]] }
  0x9a   :  { %v626_v61 = vmul.f32 %v624_v54, %v2075_v23  ;;  %v631_v62 = vmul.f32 %v630_v60, %v2095_v29  ;;  %v622_v8 = vadd.f32 %v620_v50, %v608_v47  ;;  %v637_v63 = vmul.f32 %v636_v2, %v2095_v29 }
  0x9b   :  { %v638_v9 = vmul.f32 %v636_v2, %v2078_v24  ;;  %v642_v10 = vstv %s2517_s7  ;;  %v2560_v11 = vmul.f32 %v567_v6, %v2133_v39  ;;  %v616_v12 = vadd.f32 %v614_v48, %v606_v59  ;;  %s2697_s7 = sld [smem:[#allocation6 + $0xb6]] }
  0x9c   :  { %v627_v13 = vadd.f32 %v625_v58, %v610_v51  ;;  %v632_v55 = vmul.f32 %v630_v60, %v2078_v24  ;;  %v628_v14 = vadd.f32 %v626_v61, %v610_v51  ;;  %v633_v15 = vadd.f32 %v631_v62, %v615_v52 }
  0x9d   :  { %v639_v56 = vadd.f32 %v637_v63, %v621_v3  ;;  %v643_v16 = vmul.f32 %v642_v10, %v2095_v29  ;;  %v644_v17 = vmul.f32 %v642_v10, %v2078_v24  ;;  %v648_v4 = vstv %s2526_s8  ;;  %s2702_s8 = sld [smem:[#allocation6 + $0xc2]] }
  0x9e   :  { %v654_v18 = vstv %s2528_s9  ;;  %v660_v5 = vstv %s2532_s10  ;;  %v2570_v19 = vadd.f32 %v562_v41, %v546_v22  ;;  %v640_v20 = vadd.f32 %v638_v9, %v622_v8  ;;  %s2704_s9 = sld [smem:[#allocation6 + $0xc8]]  ;;  %s2708_s10 = sld [smem:[#allocation6 + $0x3]] }
  0x9f   :  { %v649_v21 = vmul.f32 %v648_v4, %v2098_v30  ;;  %v655_v1 = vmul.f32 %v654_v18, %v2098_v30  ;;  %v2576_v42 = vadd.f32 %v563_v43, %v547_v26  ;;  %v579_v6 = vstv %s2538_s11  ;;  %s2710_s11 = sld [smem:[#allocation6 + $0x9]] }
  0xa0   :  { %v634_v44 = vadd.f32 %v632_v55, %v616_v12  ;;  %v656_v45 = vmul.f32 %v654_v18, %v2089_v27  ;;  %v645_v46 = vadd.f32 %v643_v16, %v627_v13  ;;  %v650_v53 = vmul.f32 %v648_v4, %v2089_v27 }
  0xa1   :  { %v661_v22 = vmul.f32 %v660_v5, %v2098_v30  ;;  %v666_v41 = vstv %s2544_s12  ;;  %v646_v47 = vadd.f32 %v644_v17, %v628_v14  ;;  %v651_v7 = vadd.f32 %v649_v21, %v633_v15  ;;  %v2604_v15 = vld [vmem:[#allocation2] sm:$0xff]  ;;  %v2608_v17 = vld [vmem:[#allocation2 + $0x8] sm:$0xff]  ;;  %s2714_s12 = sld [smem:[#allocation7 + $0x9]] }
  0xa2   :  { %v1855_v59 = vpop.eup %1854  ;;  %v657_v48 = vadd.f32 %v655_v1, %v639_v56  ;;  %v662_v49 = vmul.f32 %v660_v5, %v2089_v27  ;;  %v658_v50 = vadd.f32 %v656_v45, %v640_v20  ;;  %v672_v54 = vstv %s2555_s13  ;;  %s2722_s13 = sld [smem:[#allocation6 + $0xf]] }
  0xa3   :  { %v1857_v26 = vpop.eup %1856  ;;  %v590_v43 = vadd.f32 1.0, %v1855_v59  ;;  %v678_v60 = vstv %s2557_s14  ;;  %v667_v51 = vmul.f32 %v666_v41, %v2105_v31  ;;  %v673_v52 = vmul.f32 %v672_v54, %v2105_v31  ;;  %s2724_s14 = sld [smem:[#allocation6 + $0x1b]] }
  0xa4   :  { %v591_v2 = vadd.f32 1.0, %v1857_v26  ;;  %v674_v3 = vmul.f32 %v672_v54, %v2092_v28  ;;  %v652_v58 = vadd.f32 %v650_v53, %v634_v44  ;;  %v663_v61 = vadd.f32 %v661_v22, %v645_v46 }
  0xa5   :  { %1858 = vrcp.f32 %v590_v43  ;;  %v684_v62 = vstv %s2564_s15  ;;  %v664_v8 = vadd.f32 %v662_v49, %v646_v47  ;;  %v668_v63 = vmul.f32 %v666_v41, %v2092_v28  ;;  %s2727_s15 = sld [smem:[#allocation7 + $0x3]] }
  0xa6   :  { %1860 = vrcp.f32 %v591_v2  ;;  %v679_v9 = vmul.f32 %v678_v60, %v2105_v31  ;;  %v675_v10 = vadd.f32 %v673_v52, %v657_v48  ;;  %v676_v12 = vadd.f32 %v674_v3, %v658_v50  ;;  %v2642_v52 = vld [vmem:[#allocation2 + $0x20] sm:$0xff] }
  0xa7   :  { %v680_v13 = vmul.f32 %v678_v60, %v2092_v28  ;;  %v690_v55 = vstv %s2574_s16  ;;  %v669_v14 = vadd.f32 %v667_v51, %v651_v7  ;;  %v685_v56 = vmul.f32 %v2604_v15, %v684_v62  ;;  %s2730_s16 = sld [smem:[#allocation6 + $0x15]] }
  0xa8   :  { %v691_v16 = vmul.f32 %v2604_v15, %v690_v55  ;;  %v692_v4 = vmul.f32 %v2608_v17, %v690_v55  ;;  %v570_v18 = vadd.f32 %v2547_v57, %v2515_v40  ;;  %v571_v5 = vadd.f32 %v2560_v11, %v2519_v0  ;;  %v2625_v0 = vld [vmem:[#allocation2 + $0x10] sm:$0xff] }
  0xa9   :  { %v580_v20 = vmul.f32 %v579_v6, %v2120_v36  ;;  %v581_v21 = vmul.f32 %v579_v6, %v2133_v39  ;;  %v670_v1 = vadd.f32 %v668_v63, %v652_v58  ;;  %v681_v44 = vadd.f32 %v679_v9, %v663_v61  ;;  %v2628_v6 = vld [vmem:[#allocation2 + $0x18] sm:$0xff]  ;;  %v2645_v58 = vld [vmem:[#allocation2 + $0x28] sm:$0xff] }
  0xaa   :  { %v696_v45 = vstv %s2584_s17  ;;  %v702_v46 = vstv %s2586_s18  ;;  %v682_v53 = vadd.f32 %v680_v13, %v664_v8  ;;  %v693_v22 = vadd.f32 %v691_v16, %v675_v10  ;;  %s2735_s17 = sld [smem:[#allocation7 + $0xf]]  ;;  %s2739_s18 = sld [smem:[#allocation6 + $0x2d]] }
  0xab   :  { %v694_v41 = vadd.f32 %v692_v4, %v676_v12  ;;  %v708_v59 = vstv %s2590_s19  ;;  %v686_v40 = vmul.f32 %v2608_v17, %v684_v62  ;;  %v687_v57 = vadd.f32 %v685_v56, %v669_v14  ;;  %s2746_s19 = sld [smem:[#allocation6 + $0xd4]] }
  0xac   :  { %v709_v11 = vmul.f32 %v2625_v0, %v708_v59  ;;  %v710_v47 = vmul.f32 %v2628_v6, %v708_v59  ;;  %v697_v7 = vmul.f32 %v2604_v15, %v696_v45  ;;  %v698_v48 = vmul.f32 %v2608_v17, %v696_v45 }
  0xad   :  { %v703_v49 = vmul.f32 %v2625_v0, %v702_v46  ;;  %v726_v26 = vstv %s2596_s20  ;;  %v582_v43 = vadd.f32 %v580_v20, %v2570_v19  ;;  %v583_v50 = vadd.f32 %v581_v21, %v2576_v42  ;;  %s2748_s20 = sld [smem:[#allocation6 + $0x3f]] }
  0xae   :  { %v714_v54 = vstv %s2600_s21  ;;  %v711_v2 = vadd.f32 %v709_v11, %v693_v22  ;;  %v712_v51 = vadd.f32 %v710_v47, %v694_v41  ;;  %v727_v3 = vmul.f32 %v2642_v52, %v726_v26  ;;  %s2753_s21 = sld [smem:[#allocation6 + $0x21]] }
  0xaf   :  { %v1859_v60 = vpop.eup %1858  ;;  %v728_v61 = vmul.f32 %v2645_v58, %v726_v26  ;;  %v688_v19 = vadd.f32 %v686_v40, %v670_v1  ;;  %v704_v42 = vmul.f32 %v2628_v6, %v702_v46  ;;  %v720_v63 = vstv %s2611_s22  ;;  %v2664_v46 = vld [vmem:[#allocation2 + $0x38] sm:$0xff]  ;;  %s2755_s22 = sld [smem:[#allocation6 + $0x27]] }
  0xb0   :  { %v1861_v62 = vpop.eup %1860  ;;  %v596_v8 = vmul.f32 %v1859_v60, %v570_v18  ;;  %v699_v10 = vadd.f32 %v697_v7, %v681_v44  ;;  %v700_v12 = vadd.f32 %v698_v48, %v682_v53  ;;  %v705_v13 = vadd.f32 %v703_v49, %v687_v57  ;;  %v2661_v44 = vld [vmem:[#allocation2 + $0x30] sm:$0xff] }
  0xb1   :  { %v597_v9 = vmul.f32 %v1861_v62, %v571_v5  ;;  %v715_v14 = vmul.f32 %v2625_v0, %v714_v54  ;;  %v716_v56 = vmul.f32 %v2628_v6, %v714_v54  ;;  %v744_v16 = vstv %s2621_s23  ;;  %s2774_s23 = sld [smem:[#allocation6 + $0x33]] }
  0xb2   :  { %v598_v55 = vadd.f32 %v596_v8, %v582_v43  ;;  %v721_v18 = vmul.f32 %v2642_v52, %v720_v63  ;;  %v729_v20 = vadd.f32 %v727_v3, %v711_v2  ;;  %v730_v21 = vadd.f32 %v728_v61, %v712_v51 }
  0xb3   :  { %v599_v4 = vadd.f32 %v597_v9, %v583_v50  ;;  %v732_v1 = vstv %s2631_s24  ;;  %v745_v45 = vmul.f32 %v2661_v44, %v744_v16  ;;  %v746_v53 = vmul.f32 %v2664_v46, %v744_v16  ;;  %s2776_s24 = sld [smem:[#allocation6 + $0x51]] }
  0xb4   :  { %v600_v5 = vmax.f32 %v598_v55, 0.0  ;;  %v738_v41 = vstv %s2637_s26  ;;  %v706_v59 = vadd.f32 %v704_v42, %v688_v19  ;;  %v717_v40 = vadd.f32 %v715_v14, %v699_v10  ;;  %s2779_s26 = sld [smem:[#allocation6 + $0x39]] }
  0xb5   :  { %v601_v22 = vmax.f32 %v599_v4, 0.0  ;;  %v722_v57 = vmul.f32 %v2645_v58, %v720_v63  ;;  %v733_v11 = vmul.f32 %v2642_v52, %v732_v1  ;;  %v747_v47 = vadd.f32 %v745_v45, %v729_v20 }
  0xb6   :  { %603 = vst [vmem:[#allocation9 + $0x10] sm:$0xff] %v600_v5  ;;  %v748_v7 = vadd.f32 %v746_v53, %v730_v21  ;;  %v762_v48 = vstv %s2648_s27  ;;  %v718_v49 = vadd.f32 %v716_v56, %v700_v12  ;;  %v723_v26 = vadd.f32 %v721_v18, %v705_v13  ;;  %s2793_s27 = sld [smem:[#allocation6 + $0x45]] }
  0xb7   :  { %604 = vst [vmem:[#allocation9 + $0x18] sm:$0xff] %v601_v22  ;;  %v734_v43 = vmul.f32 %v2645_v58, %v732_v1  ;;  %v739_v50 = vmul.f32 %v2661_v44, %v738_v41  ;;  %v750_v54 = vstv %s2652_s28  ;;  %v763_v60 = vmul.f32 %v762_v48, %v2108_v32  ;;  %s2795_s28 = sld [smem:[#allocation6 + $0x63]] }
  0xb8   :  { %v764_v2 = vmul.f32 %v762_v48, %v2114_v34  ;;  %v724_v51 = vadd.f32 %v722_v57, %v706_v59  ;;  %v740_v3 = vmul.f32 %v2664_v46, %v738_v41  ;;  %v756_v61 = vstv %s2657_s29  ;;  %s2799_s29 = sld [smem:[#allocation6 + $0x4b]] }
  0xb9   :  { %v735_v62 = vadd.f32 %v733_v11, %v717_v40  ;;  %v765_v8 = vadd.f32 %v763_v60, %v747_v47  ;;  %v736_v42 = vadd.f32 %v734_v43, %v718_v49  ;;  %v741_v63 = vadd.f32 %v739_v50, %v723_v26 }
  0xba   :  { %v766_v19 = vadd.f32 %v764_v2, %v748_v7  ;;  %v751_v9 = vmul.f32 %v2661_v44, %v750_v54  ;;  %v780_v10 = vstv %s2667_s30  ;;  %v752_v12 = vmul.f32 %v2664_v46, %v750_v54  ;;  %s2809_s30 = sld [smem:[#allocation6 + $0x57]] }
  0xbb   :  { %v757_v13 = vmul.f32 %v756_v61, %v2108_v32  ;;  %v781_v55 = vmul.f32 %v780_v10, %v2111_v33  ;;  %v782_v14 = vmul.f32 %v780_v10, %v2123_v37  ;;  %v742_v56 = vadd.f32 %v740_v3, %v724_v51 }
  0xbc   :  { %v768_v16 = vstv %s2671_s4  ;;  %v798_v4 = vstv %s2673_s5  ;;  %v758_v18 = vmul.f32 %v756_v61, %v2114_v34  ;;  %v774_v20 = vstv %s2677_s6  ;;  %s2811_s4 = sld [smem:[#allocation6 + $0x75]]  ;;  %s2828_s6 = sld [smem:[#allocation6 + $0x69]] }
  0xbd   :  { %v783_v21 = vadd.f32 %v781_v55, %v765_v8  ;;  %v784_v5 = vadd.f32 %v782_v14, %v766_v19  ;;  %v753_v1 = vadd.f32 %v751_v9, %v735_v62  ;;  %v799_v45 = vmul.f32 %v798_v4, %v2117_v35  ;;  %s2817_s5 = sld [smem:[#allocation6 + $0x5d]] }
  0xbe   :  { %v800_v53 = vmul.f32 %v798_v4, %v2126_v38  ;;  %v754_v22 = vadd.f32 %v752_v12, %v736_v42  ;;  %v759_v41 = vadd.f32 %v757_v13, %v741_v63  ;;  %v769_v59 = vmul.f32 %v768_v16, %v2108_v32 }
  0xbf   :  { %v770_v40 = vmul.f32 %v768_v16, %v2114_v34  ;;  %v775_v57 = vmul.f32 %v774_v20, %v2111_v33  ;;  %v786_v11 = vstv %s2686_s0  ;;  %v801_v47 = vadd.f32 %v799_v45, %v783_v21  ;;  %s2830_s0 = sld [smem:[#allocation6 + $0x87]] }
  0xc0   :  { %v802_v7 = vadd.f32 %v800_v53, %v784_v5  ;;  %v760_v48 = vadd.f32 %v758_v18, %v742_v56  ;;  %v776_v49 = vmul.f32 %v774_v20, %v2123_v37  ;;  %v816_v26 = vstv %s2688_s2  ;;  %s2838_s2 = sld [smem:[#allocation6 + $0x6f]] }
  0xc1   :  { %v817_v43 = vmul.f32 %v816_v26, %v2120_v36  ;;  %v818_v50 = vmul.f32 %v816_v26, %v2133_v39  ;;  %v771_v54 = vadd.f32 %v769_v59, %v753_v1  ;;  %v772_v60 = vadd.f32 %v770_v40, %v754_v22 }
  0xc2   :  { %v787_v2 = vmul.f32 %v786_v11, %v2111_v33  ;;  %v777_v51 = vadd.f32 %v775_v57, %v759_v41  ;;  %v788_v3 = vmul.f32 %v786_v11, %v2123_v37  ;;  %v778_v8 = vadd.f32 %v776_v49, %v760_v48 }
  0xc3   :  { %v819_v61 = vadd.f32 %v817_v43, %v801_v47  ;;  %v820_v62 = vadd.f32 %v818_v50, %v802_v7  ;;  %v792_v19 = vstv %s2697_s7  ;;  %v804_v42 = vstv %s2702_s8  ;;  %s2845_s7 = sld [smem:[#allocation6 + $0x99]]  ;;  %s2850_s8 = sld [smem:[#allocation6 + $0x7b]] }
  0xc4   :  { %v810_v63 = vstv %s2704_s9  ;;  %v855_v12 = vstv %s2708_s10  ;;  %v861_v13 = vstv %s2710_s11  ;;  %v789_v55 = vadd.f32 %v787_v2, %v771_v54  ;;  %s2853_s9 = sld [smem:[#allocation6 + $0x81]]  ;;  %s2855_s10 = sld [smem:[#allocation6 + $0xab]] }
  0xc5   :  { %v1715_v9 = vmul.f32 -1.442695, %v819_v61  ;;  %v1716_v10 = vmul.f32 -1.442695, %v820_v62  ;;  %v851_v14 = vstv %s2714_s12  ;;  %v862_v56 = vmul.f32 %v861_v13, %v2081_v25  ;;  %s2863_s11 = sld [smem:[#allocation6 + $0x8d]]  ;;  %s2868_s12 = sld [smem:[#allocation6 + $0x93]] }
  0xc6   :  { %v863_v16 = vmul.f32 %v861_v13, %v2075_v23  ;;  %v790_v4 = vadd.f32 %v788_v3, %v772_v60  ;;  %v793_v18 = vmul.f32 %v792_v19, %v2117_v35  ;;  %v794_v20 = vmul.f32 %v792_v19, %v2126_v38 }
  0xc7   :  { %1862 = vpow2.f32 %v1715_v9  ;;  %v805_v21 = vmul.f32 %v804_v42, %v2117_v35  ;;  %v806_v5 = vmul.f32 %v804_v42, %v2126_v38  ;;  %v856_v1 = vmul.f32 %v855_v12, %v2081_v25 }
  0xc8   :  { %1864 = vpow2.f32 %v1716_v10  ;;  %v864_v45 = vadd.f32 %v862_v56, %v851_v14  ;;  %v865_v53 = vadd.f32 %v863_v16, %v851_v14  ;;  %v867_v22 = vstv %s2722_s13  ;;  %s2870_s13 = sld [smem:[#allocation6 + $0xbd]] }
  0xc9   :  { %v879_v41 = vstv %s2724_s14  ;;  %v811_v59 = vmul.f32 %v810_v63, %v2120_v36  ;;  %v849_v40 = vstv %s2727_s15  ;;  %v795_v47 = vadd.f32 %v793_v18, %v777_v51  ;;  %s2878_s14 = sld [smem:[#allocation6 + $0x9f]] }
  0xca   :  { %v880_v57 = vmul.f32 %v879_v41, %v2095_v29  ;;  %v881_v11 = vmul.f32 %v879_v41, %v2078_v24  ;;  %v2763_v7 = vadd.f32 %v794_v20, %v778_v8  ;;  %v2766_v48 = vmul.f32 %v810_v63, %v2133_v39  ;;  %s2882_s15 = sld [smem:[#allocation6 + $0xcf]] }
  0xcb   :  { %v873_v49 = vstv %s2730_s16  ;;  %v2769_v26 = vadd.f32 %v805_v21, %v789_v55  ;;  %v853_v43 = vstv %s2735_s17  ;;  %v857_v50 = vmul.f32 %v855_v12, %v2075_v23  ;;  %s2885_s16 = sld [smem:[#allocation6 + $0xa5]]  ;;  %s2895_s17 = sld [smem:[#allocation6 + $0xb1]] }
  0xcc   :  { %v868_v54 = vmul.f32 %v867_v22, %v2081_v25  ;;  %v858_v60 = vadd.f32 %v856_v1, %v849_v40  ;;  %v882_v2 = vadd.f32 %v880_v57, %v864_v45  ;;  %v883_v51 = vadd.f32 %v881_v11, %v865_v53 }
  0xcd   :  { %v897_v3 = vstv %s2739_s18  ;;  %v869_v61 = vmul.f32 %v867_v22, %v2075_v23  ;;  %v874_v62 = vmul.f32 %v873_v49, %v2095_v29  ;;  %v2785_v42 = vadd.f32 %v806_v5, %v790_v4  ;;  %s2898_s18 = sld [smem:[#allocation6 + $0xa]] }
  0xce   :  { %v898_v8 = vmul.f32 %v897_v3, %v2098_v30  ;;  %v899_v19 = vmul.f32 %v897_v3, %v2089_v27  ;;  %v2787_v63 = vadd.f32 %v811_v59, %v795_v47  ;;  %v822_v9 = vstv %s2746_s19  ;;  %s2901_s19 = sld [smem:[#allocation6 + $0xb7]] }
  0xcf   :  { %v915_v10 = vstv %s2748_s20  ;;  %v859_v12 = vadd.f32 %v857_v50, %v849_v40  ;;  %v870_v13 = vadd.f32 %v868_v54, %v853_v43  ;;  %v885_v55 = vstv %s2753_s21  ;;  %s2907_s20 = sld [smem:[#allocation7 + $0xa]]  ;;  %s2913_s21 = sld [smem:[#allocation6 + $0xc3]] }
  0xd0   :  { %v891_v14 = vstv %s2755_s22  ;;  %v900_v16 = vadd.f32 %v898_v8, %v882_v2  ;;  %v901_v18 = vadd.f32 %v899_v19, %v883_v51  ;;  %v916_v4 = vmul.f32 %v915_v10, %v2105_v31  ;;  %s2916_s22 = sld [smem:[#allocation6 + $0xc9]] }
  0xd1   :  { %v1863_v56 = vpop.eup %1862  ;;  %v917_v20 = vmul.f32 %v915_v10, %v2092_v28  ;;  %v871_v1 = vadd.f32 %v869_v61, %v853_v43  ;;  %v875_v45 = vmul.f32 %v873_v49, %v2078_v24  ;;  %v876_v53 = vadd.f32 %v874_v62, %v858_v60 }
  0xd2   :  { %v1865_v21 = vpop.eup %1864  ;;  %v833_v5 = vadd.f32 1.0, %v1863_v56  ;;  %v886_v41 = vmul.f32 %v885_v55, %v2095_v29  ;;  %v887_v59 = vmul.f32 %v885_v55, %v2078_v24  ;;  %v892_v40 = vmul.f32 %v891_v14, %v2098_v30 }
  0xd3   :  { %v834_v22 = vadd.f32 1.0, %v1865_v21  ;;  %v823_v57 = vmul.f32 %v822_v9, %v2120_v36  ;;  %v903_v11 = vstv %s2774_s23  ;;  %v933_v47 = vstv %s2776_s24  ;;  %s2920_s23 = sld [smem:[#allocation6 + $0x1c]] }
  0xd4   :  { %1866 = vrcp.f32 %v833_v5  ;;  %v909_v50 = vstv %s2779_s26  ;;  %v918_v54 = vadd.f32 %v916_v4, %v900_v16  ;;  %v919_v43 = vadd.f32 %v917_v20, %v901_v18  ;;  %s2923_s24 = sld [smem:[#allocation6 + $0x4]]  ;;  %s2929_s26 = sld [smem:[#allocation6 + $0x2e]] }
  0xd5   :  { %1868 = vrcp.f32 %v834_v22  ;;  %v877_v49 = vadd.f32 %v875_v45, %v859_v12  ;;  %v893_v60 = vmul.f32 %v891_v14, %v2089_v27  ;;  %v934_v2 = vmul.f32 %v2604_v15, %v933_v47 }
  0xd6   :  { %v935_v51 = vmul.f32 %v2608_v17, %v933_v47  ;;  %v888_v3 = vadd.f32 %v886_v41, %v870_v13  ;;  %v889_v61 = vadd.f32 %v887_v59, %v871_v1  ;;  %v894_v62 = vadd.f32 %v892_v40, %v876_v53 }
  0xd7   :  { %v904_v8 = vmul.f32 %v903_v11, %v2098_v30  ;;  %v905_v19 = vmul.f32 %v903_v11, %v2089_v27  ;;  %v910_v10 = vmul.f32 %v909_v50, %v2105_v31  ;;  %v921_v55 = vstv %s2793_s27  ;;  %s2932_s27 = sld [smem:[#allocation6 + $0xd5]] }
  0xd8   :  { %v951_v56 = vstv %s2795_s28  ;;  %v824_v12 = vmul.f32 %v822_v9, %v2133_v39  ;;  %v927_v14 = vstv %s2799_s29  ;;  %v936_v16 = vadd.f32 %v934_v2, %v918_v54  ;;  %s2934_s28 = sld [smem:[#allocation7 + $0x4]]  ;;  %s2941_s29 = sld [smem:[#allocation6 + $0x10]] }
  0xd9   :  { %v937_v18 = vadd.f32 %v935_v51, %v919_v43  ;;  %v895_v4 = vadd.f32 %v893_v60, %v877_v49  ;;  %v911_v13 = vmul.f32 %v909_v50, %v2092_v28  ;;  %v952_v20 = vmul.f32 %v2625_v0, %v951_v56 }
  0xda   :  { %v953_v21 = vmul.f32 %v2628_v6, %v951_v56  ;;  %v814_v5 = vadd.f32 %v2766_v48, %v2763_v7  ;;  %v825_v9 = vadd.f32 %v823_v57, %v2769_v26  ;;  %v906_v1 = vadd.f32 %v904_v8, %v888_v3 }
  0xdb   :  { %v922_v45 = vmul.f32 %v921_v55, %v2105_v31  ;;  %v907_v53 = vadd.f32 %v905_v19, %v889_v61  ;;  %v912_v22 = vadd.f32 %v910_v10, %v894_v62  ;;  %v923_v41 = vmul.f32 %v921_v55, %v2092_v28 }
  0xdc   :  { %v928_v59 = vmul.f32 %v2604_v15, %v927_v14  ;;  %v939_v40 = vstv %s2809_s30  ;;  %v954_v11 = vadd.f32 %v952_v20, %v936_v16  ;;  %v955_v47 = vadd.f32 %v953_v21, %v937_v18  ;;  %s2945_s30 = sld [smem:[#allocation7 + $0x10]] }
  0xdd   :  { %v969_v50 = vstv %s2811_s4  ;;  %v826_v7 = vadd.f32 %v824_v12, %v2785_v42  ;;  %v913_v48 = vadd.f32 %v911_v13, %v895_v4  ;;  %v924_v60 = vadd.f32 %v922_v45, %v906_v1  ;;  %s2949_s4 = sld [smem:[#allocation6 + $0x16]] }
  0xde   :  { %v1867_v54 = vpop.eup %1866  ;;  %v970_v26 = vmul.f32 %v2642_v52, %v969_v50  ;;  %v971_v57 = vmul.f32 %v2645_v58, %v969_v50  ;;  %v929_v2 = vmul.f32 %v2608_v17, %v927_v14  ;;  %v945_v51 = vstv %s2817_s5  ;;  %s2952_s5 = sld [smem:[#allocation6 + $0x40]] }
  0xdf   :  { %v1869_v43 = vpop.eup %1868  ;;  %v839_v49 = vmul.f32 %v1867_v54, %v2787_v63  ;;  %v925_v42 = vadd.f32 %v923_v41, %v907_v53  ;;  %v930_v61 = vadd.f32 %v928_v59, %v912_v22  ;;  %v940_v62 = vmul.f32 %v2604_v15, %v939_v40 }
  0xe0   :  { %v840_v3 = vmul.f32 %v1869_v43, %v814_v5  ;;  %v941_v63 = vmul.f32 %v2608_v17, %v939_v40  ;;  %v972_v19 = vadd.f32 %v970_v26, %v954_v11  ;;  %v973_v10 = vadd.f32 %v971_v57, %v955_v47 }
  0xe1   :  { %v841_v8 = vadd.f32 %v839_v49, %v825_v9  ;;  %v946_v56 = vmul.f32 %v2625_v0, %v945_v51  ;;  %v957_v12 = vstv %s2828_s6  ;;  %v987_v14 = vstv %s2830_s0  ;;  %s2960_s6 = sld [smem:[#allocation6 + $0x22]] }
  0xe2   :  { %v842_v55 = vadd.f32 %v840_v3, %v826_v7  ;;  %v988_v18 = vmul.f32 %v2661_v44, %v987_v14  ;;  %v989_v4 = vmul.f32 %v2664_v46, %v987_v14  ;;  %v931_v20 = vadd.f32 %v929_v2, %v913_v48  ;;  %s2963_s0 = sld [smem:[#allocation6 + $0x52]] }
  0xe3   :  { %v843_v16 = vmax.f32 %v841_v8, 0.0  ;;  %v947_v21 = vmul.f32 %v2628_v6, %v945_v51  ;;  %v963_v5 = vstv %s2838_s2  ;;  %v942_v9 = vadd.f32 %v940_v62, %v924_v60  ;;  %s2967_s2 = sld [smem:[#allocation6 + $0x28]] }
  0xe4   :  { %v844_v13 = vmax.f32 %v842_v55, 0.0  ;;  %v958_v1 = vmul.f32 %v2625_v0, %v957_v12  ;;  %v990_v45 = vadd.f32 %v988_v18, %v972_v19  ;;  %v991_v53 = vadd.f32 %v989_v4, %v973_v10 }
  0xe5   :  { %846 = vst [vmem:[#allocation9 + $0x20] sm:$0xff] %v843_v16  ;;  %v943_v22 = vadd.f32 %v941_v63, %v925_v42  ;;  %v948_v41 = vadd.f32 %v946_v56, %v930_v61  ;;  %v959_v59 = vmul.f32 %v2628_v6, %v957_v12  ;;  %v1005_v40 = vstv %s2845_s7  ;;  %s2976_s7 = sld [smem:[#allocation6 + $0x64]] }
  0xe6   :  { %847 = vst [vmem:[#allocation9 + $0x28] sm:$0xff] %v844_v13  ;;  %v964_v11 = vmul.f32 %v2642_v52, %v963_v5  ;;  %v975_v47 = vstv %s2850_s8  ;;  %v1006_v50 = vmul.f32 %v1005_v40, %v2108_v32  ;;  %v1007_v54 = vmul.f32 %v1005_v40, %v2114_v34  ;;  %s2983_s8 = sld [smem:[#allocation6 + $0x34]] }
  0xe7   :  { %v949_v7 = vadd.f32 %v947_v21, %v931_v20  ;;  %v981_v48 = vstv %s2853_s9  ;;  %v1023_v26 = vstv %s2855_s10  ;;  %v960_v57 = vadd.f32 %v958_v1, %v942_v9  ;;  %s2986_s9 = sld [smem:[#allocation6 + $0x3a]]  ;;  %s2996_s10 = sld [smem:[#allocation6 + $0x76]] }
  0xe8   :  { %v965_v43 = vmul.f32 %v2645_v58, %v963_v5  ;;  %v1008_v49 = vadd.f32 %v1006_v50, %v990_v45  ;;  %v1009_v60 = vadd.f32 %v1007_v54, %v991_v53  ;;  %v961_v2 = vadd.f32 %v959_v59, %v943_v22 }
  0xe9   :  { %v976_v51 = vmul.f32 %v2642_v52, %v975_v47  ;;  %v1024_v3 = vmul.f32 %v1023_v26, %v2111_v33  ;;  %v1025_v42 = vmul.f32 %v1023_v26, %v2123_v37  ;;  %v966_v61 = vadd.f32 %v964_v11, %v948_v41 }
  0xea   :  { %v977_v62 = vmul.f32 %v2645_v58, %v975_v47  ;;  %v982_v8 = vmul.f32 %v2661_v44, %v981_v48  ;;  %v993_v63 = vstv %s2863_s11  ;;  %v967_v55 = vadd.f32 %v965_v43, %v949_v7  ;;  %s3000_s11 = sld [smem:[#allocation6 + $0x46]] }
  0xeb   :  { %v1026_v19 = vadd.f32 %v1024_v3, %v1008_v49  ;;  %v1027_v10 = vadd.f32 %v1025_v42, %v1009_v60  ;;  %v983_v56 = vmul.f32 %v2664_v46, %v981_v48  ;;  %v999_v12 = vstv %s2868_s12  ;;  %s3010_s12 = sld [smem:[#allocation6 + $0x4c]] }
  0xec   :  { %v1041_v14 = vstv %s2870_s13  ;;  %v978_v16 = vadd.f32 %v976_v51, %v960_v57  ;;  %v994_v18 = vmul.f32 %v2661_v44, %v993_v63  ;;  %v979_v20 = vadd.f32 %v977_v62, %v961_v2  ;;  %s3016_s13 = sld [smem:[#allocation6 + $0x88]] }
  0xed   :  { %v1042_v4 = vmul.f32 %v1041_v14, %v2117_v35  ;;  %v1043_v13 = vmul.f32 %v1041_v14, %v2126_v38  ;;  %v984_v21 = vadd.f32 %v982_v8, %v966_v61  ;;  %v995_v5 = vmul.f32 %v2664_v46, %v993_v63 }
  0xee   :  { %v1011_v9 = vstv %s2878_s14  ;;  %v1000_v1 = vmul.f32 %v999_v12, %v2108_v32  ;;  %v1059_v22 = vstv %s2882_s15  ;;  %v985_v41 = vadd.f32 %v983_v56, %v967_v55  ;;  %s3019_s14 = sld [smem:[#allocation6 + $0x58]]  ;;  %s3023_s15 = sld [smem:[#allocation6 + $0x5e]] }
  0xef   :  { %v1044_v45 = vadd.f32 %v1042_v4, %v1026_v19  ;;  %v1045_v53 = vadd.f32 %v1043_v13, %v1027_v10  ;;  %v1001_v59 = vmul.f32 %v999_v12, %v2114_v34  ;;  %v1017_v40 = vstv %s2885_s16  ;;  %s3028_s16 = sld [smem:[#allocation6 + $0x9a]] }
  0xf0   :  { %v996_v11 = vadd.f32 %v994_v18, %v978_v16  ;;  %v1012_v47 = vmul.f32 %v1011_v9, %v2108_v32  ;;  %v1060_v50 = vmul.f32 %v1059_v22, %v2120_v36  ;;  %v1061_v54 = vmul.f32 %v1059_v22, %v2133_v39 }
  0xf1   :  { %v997_v7 = vadd.f32 %v995_v5, %v979_v20  ;;  %v1013_v48 = vmul.f32 %v1011_v9, %v2114_v34  ;;  %v1002_v26 = vadd.f32 %v1000_v1, %v984_v21  ;;  %v1018_v57 = vmul.f32 %v1017_v40, %v2111_v33 }
  0xf2   :  { %v1062_v43 = vadd.f32 %v1060_v50, %v1044_v45  ;;  %v1063_v49 = vadd.f32 %v1061_v54, %v1045_v53  ;;  %v1003_v60 = vadd.f32 %v1001_v59, %v985_v41  ;;  %v1019_v2 = vmul.f32 %v1017_v40, %v2123_v37 }
  0xf3   :  { %v1029_v51 = vstv %s2895_s17  ;;  %v1104_v3 = vstv %s2898_s18  ;;  %v1014_v42 = vadd.f32 %v1012_v47, %v996_v11  ;;  %v1035_v61 = vstv %s2901_s19  ;;  %s3031_s17 = sld [smem:[#allocation6 + $0x6a]]  ;;  %s3037_s18 = sld [smem:[#allocation6 + $0x70]] }
  0xf4   :  { %v1756_v62 = vmul.f32 -1.442695, %v1062_v43  ;;  %v1757_v8 = vmul.f32 -1.442695, %v1063_v49  ;;  %v1015_v63 = vadd.f32 %v1013_v48, %v997_v7  ;;  %v1094_v19 = vstv %s2907_s20  ;;  %s3039_s19 = sld [smem:[#allocation6 + $0xac]]  ;;  %s3049_s20 = sld [smem:[#allocation6 + $0xbe]] }
  0xf5   :  { %v1105_v10 = vmul.f32 %v1104_v3, %v2081_v25  ;;  %v1106_v55 = vmul.f32 %v1104_v3, %v2075_v23  ;;  %v1020_v56 = vadd.f32 %v1018_v57, %v1002_v26  ;;  %v1030_v12 = vmul.f32 %v1029_v51, %v2111_v33 }
  0xf6   :  { %v1031_v14 = vmul.f32 %v1029_v51, %v2123_v37  ;;  %1870 = vpow2.f32 %v1756_v62  ;;  %v1021_v16 = vadd.f32 %v1019_v2, %v1003_v60  ;;  %v1036_v18 = vmul.f32 %v1035_v61, %v2117_v35 }
  0xf7   :  { %v1047_v4 = vstv %s2913_s21  ;;  %1872 = vpow2.f32 %v1757_v8  ;;  %v1037_v13 = vmul.f32 %v1035_v61, %v2126_v38  ;;  %v1053_v20 = vstv %s2916_s22  ;;  %s3055_s21 = sld [smem:[#allocation6 + $0x7c]]  ;;  %s3062_s22 = sld [smem:[#allocation6 + $0x82]] }
  0xf8   :  { %v1107_v21 = vadd.f32 %v1105_v10, %v1094_v19  ;;  %v1122_v5 = vstv %s2920_s23  ;;  %v1098_v9 = vstv %s2923_s24  ;;  %v1108_v1 = vadd.f32 %v1106_v55, %v1094_v19  ;;  %s3073_s23 = sld [smem:[#allocation6 + $0x8e]]  ;;  %s3077_s24 = sld [smem:[#allocation6 + $0xd0]] }
  0xf9   :  { %v1123_v45 = vmul.f32 %v1122_v5, %v2095_v29  ;;  %v1124_v53 = vmul.f32 %v1122_v5, %v2078_v24  ;;  %v1032_v22 = vadd.f32 %v1030_v12, %v1014_v42  ;;  %v1033_v41 = vadd.f32 %v1031_v14, %v1015_v63 }
  0xfa   :  { %v1048_v59 = vmul.f32 %v1047_v4, %v2117_v35  ;;  %v1049_v40 = vmul.f32 %v1047_v4, %v2126_v38  ;;  %v1038_v11 = vadd.f32 %v1036_v18, %v1020_v56  ;;  %v1054_v47 = vmul.f32 %v1053_v20, %v2120_v36 }
  0xfb   :  { %v1140_v50 = vstv %s2929_s26  ;;  %v1039_v54 = vadd.f32 %v1037_v13, %v1021_v16  ;;  %v1065_v7 = vstv %s2932_s27  ;;  %v1099_v48 = vmul.f32 %v1098_v9, %v2081_v25  ;;  %s3090_s26 = sld [smem:[#allocation6 + $0x94]]  ;;  %s3093_s27 = sld [smem:[#allocation6 + $0xa0]] }
  0xfc   :  { %v1125_v26 = vadd.f32 %v1123_v45, %v1107_v21  ;;  %v1092_v57 = vstv %s2934_s28  ;;  %v1126_v43 = vadd.f32 %v1124_v53, %v1108_v1  ;;  %v1141_v49 = vmul.f32 %v1140_v50, %v2098_v30  ;;  %s3097_s28 = sld [smem:[#allocation7 + $0xb]] }
  0xfd   :  { %v1142_v60 = vmul.f32 %v1140_v50, %v2089_v27  ;;  %v1050_v2 = vadd.f32 %v1048_v59, %v1032_v22  ;;  %v2972_v51 = vadd.f32 %v1049_v40, %v1033_v41  ;;  %v1100_v3 = vmul.f32 %v1098_v9, %v2075_v23 }
  0xfe   :  { %v1110_v42 = vstv %s2941_s29  ;;  %v1055_v61 = vmul.f32 %v1053_v20, %v2133_v39  ;;  %v2979_v62 = vadd.f32 %v1054_v47, %v1038_v11  ;;  %v1066_v8 = vmul.f32 %v1065_v7, %v2120_v36  ;;  %s3100_s29 = sld [smem:[#allocation6 + $0xb]] }
  0xff   :  { %v1096_v63 = vstv %s2945_s30  ;;  %v1101_v10 = vadd.f32 %v1099_v48, %v1092_v57  ;;  %v1116_v55 = vstv %s2949_s4  ;;  %v1143_v56 = vadd.f32 %v1141_v49, %v1125_v26  ;;  %s3102_s30 = sld [smem:[#allocation6 + $0x1d]]  ;;  %s3112_s4 = sld [smem:[#allocation6 + $0xa6]] }
 0x100   :  { %v1871_v19 = vpop.eup %1870  ;;  %v1158_v12 = vstv %s2952_s5  ;;  %v1111_v18 = vmul.f32 %v1110_v42, %v2081_v25  ;;  %v1144_v4 = vadd.f32 %v1142_v60, %v1126_v43  ;;  %v1102_v21 = vadd.f32 %v1100_v3, %v1092_v57  ;;  %s3118_s5 = sld [smem:[#allocation6 + $0xb2]] }
 0x101   :  { %v1873_v14 = vpop.eup %1872  ;;  %v1076_v16 = vadd.f32 1.0, %v1871_v19  ;;  %v1159_v13 = vmul.f32 %v1158_v12, %v2105_v31  ;;  %v1112_v5 = vmul.f32 %v1110_v42, %v2075_v23  ;;  %v1160_v9 = vmul.f32 %v1158_v12, %v2092_v28 }
 0x102   :  { %v1077_v20 = vadd.f32 1.0, %v1873_v14  ;;  %v1117_v1 = vmul.f32 %v1116_v55, %v2095_v29  ;;  %v1128_v45 = vstv %s2960_s6  ;;  %v1176_v53 = vstv %s2963_s0  ;;  %s3121_s6 = sld [smem:[#allocation6 + $0xb8]]  ;;  %s3125_s0 = sld [smem:[#allocation6 + $0x2f]] }
 0x103   :  { %1874 = vrcp.f32 %v1076_v16  ;;  %v1118_v22 = vmul.f32 %v1116_v55, %v2078_v24  ;;  %v1134_v41 = vstv %s2967_s2  ;;  %v1161_v59 = vadd.f32 %v1159_v13, %v1143_v56  ;;  %s3132_s2 = sld [smem:[#allocation6 + $0xc4]] }
 0x104   :  { %1876 = vrcp.f32 %v1077_v20  ;;  %v1113_v40 = vadd.f32 %v1111_v18, %v1096_v63  ;;  %v1162_v11 = vadd.f32 %v1160_v9, %v1144_v4  ;;  %v1177_v47 = vmul.f32 %v2604_v15, %v1176_v53 }
 0x105   :  { %v1178_v50 = vmul.f32 %v2608_v17, %v1176_v53  ;;  %v1114_v48 = vadd.f32 %v1112_v5, %v1096_v63  ;;  %v1129_v26 = vmul.f32 %v1128_v45, %v2095_v29  ;;  %v1130_v57 = vmul.f32 %v1128_v45, %v2078_v24 }
 0x106   :  { %v1194_v43 = vstv %s2976_s7  ;;  %v1067_v49 = vmul.f32 %v1065_v7, %v2133_v39  ;;  %v1119_v60 = vadd.f32 %v1117_v1, %v1101_v10  ;;  %v1135_v3 = vmul.f32 %v1134_v41, %v2098_v30  ;;  %s3138_s7 = sld [smem:[#allocation6 + $0x41]] }
 0x107   :  { %v1146_v42 = vstv %s2983_s8  ;;  %v1120_v19 = vadd.f32 %v1118_v22, %v1102_v21  ;;  %v1136_v55 = vmul.f32 %v1134_v41, %v2089_v27  ;;  %v1152_v15 = vstv %s2986_s9  ;;  %s3145_s8 = sld [smem:[#allocation6 + $0xca]]  ;;  %s3149_s9 = sld [smem:[#allocation6 + $0xd6]] }
 0x108   :  { %v1179_v17 = vadd.f32 %v1177_v47, %v1161_v59  ;;  %v1057_v63 = vadd.f32 %v1055_v61, %v1039_v54  ;;  %v1180_v56 = vadd.f32 %v1178_v50, %v1162_v11  ;;  %v1195_v12 = vmul.f32 %v2625_v0, %v1194_v43 }
 0x109   :  { %v1196_v14 = vmul.f32 %v2628_v6, %v1194_v43  ;;  %v1068_v7 = vadd.f32 %v1066_v8, %v1050_v2  ;;  %v1131_v10 = vadd.f32 %v1129_v26, %v1113_v40  ;;  %v1132_v16 = vadd.f32 %v1130_v57, %v1114_v48  ;;  %v3044_v43 = vld [vmem:[#allocation2] sm:$0xff] }
 0x10a   :  { %v1147_v18 = vmul.f32 %v1146_v42, %v2098_v30  ;;  %v1137_v4 = vadd.f32 %v1135_v3, %v1119_v60  ;;  %v1148_v13 = vmul.f32 %v1146_v42, %v2089_v27  ;;  %v1153_v54 = vmul.f32 %v1152_v15, %v2105_v31 }
 0x10b   :  { %v1212_v0 = vstv %s2996_s10  ;;  %v1069_v6 = vadd.f32 %v1067_v49, %v2972_v51  ;;  %v1138_v61 = vadd.f32 %v1136_v55, %v1120_v19  ;;  %v1154_v2 = vmul.f32 %v1152_v15, %v2092_v28  ;;  %v3051_v19 = vld [vmem:[#allocation2 + $0x8] sm:$0xff]  ;;  %s3151_s10 = sld [smem:[#allocation6 + $0x5]] }
 0x10c   :  { %v1197_v8 = vadd.f32 %v1195_v12, %v1179_v17  ;;  %v1164_v21 = vstv %s3000_s11  ;;  %v1198_v5 = vadd.f32 %v1196_v14, %v1180_v56  ;;  %v1213_v9 = vmul.f32 %v2642_v52, %v1212_v0  ;;  %s3155_s11 = sld [smem:[#allocation6 + $0x53]] }
 0x10d   :  { %v1875_v20 = vpop.eup %1874  ;;  %v1214_v1 = vmul.f32 %v2645_v58, %v1212_v0  ;;  %v1149_v53 = vadd.f32 %v1147_v18, %v1131_v10  ;;  %v1150_v41 = vadd.f32 %v1148_v13, %v1132_v16  ;;  %v1155_v59 = vadd.f32 %v1153_v54, %v1137_v4  ;;  %v3064_v4 = vld [vmem:[#allocation2 + $0x10] sm:$0xff] }
 0x10e   :  { %v1877_v45 = vpop.eup %1876  ;;  %v1082_v51 = vmul.f32 %v1875_v20, %v2979_v62  ;;  %v1170_v40 = vstv %s3010_s12  ;;  %v1165_v47 = vmul.f32 %v1164_v21, %v2105_v31  ;;  %v1166_v52 = vmul.f32 %v1164_v21, %v2092_v28  ;;  %s3162_s12 = sld [smem:[#allocation6 + $0x65]] }
 0x10f   :  { %v1083_v22 = vmul.f32 %v1877_v45, %v1057_v63  ;;  %v1215_v58 = vadd.f32 %v1213_v9, %v1197_v8  ;;  %v1156_v48 = vadd.f32 %v1154_v2, %v1138_v61  ;;  %v1216_v62 = vadd.f32 %v1214_v1, %v1198_v5 }
 0x110   :  { %v1084_v11 = vadd.f32 %v1082_v51, %v1068_v7  ;;  %v1230_v26 = vstv %s3016_s13  ;;  %v1171_v49 = vmul.f32 %v3044_v43, %v1170_v40  ;;  %v1182_v60 = vstv %s3019_s14  ;;  %s3166_s13 = sld [smem:[#allocation7 + $0x5]]  ;;  %s3168_s14 = sld [smem:[#allocation6 + $0x11]] }
 0x111   :  { %v1085_v50 = vadd.f32 %v1083_v22, %v1069_v6  ;;  %v1231_v3 = vmul.f32 %v2661_v44, %v1230_v26  ;;  %v1172_v55 = vmul.f32 %v3051_v19, %v1170_v40  ;;  %v1188_v15 = vstv %s3023_s15  ;;  %v3069_v6 = vld [vmem:[#allocation2 + $0x18] sm:$0xff]  ;;  %v3081_v22 = vld [vmem:[#allocation2 + $0x20] sm:$0xff]  ;;  %s3174_s15 = sld [smem:[#allocation6 + $0x17]] }
 0x112   :  { %v1086_v57 = vmax.f32 %v1084_v11, 0.0  ;;  %v1232_v17 = vmul.f32 %v2664_v46, %v1230_v26  ;;  %v1167_v63 = vadd.f32 %v1165_v47, %v1149_v53  ;;  %v1168_v56 = vadd.f32 %v1166_v52, %v1150_v41  ;;  %v3086_v47 = vld [vmem:[#allocation2 + $0x28] sm:$0xff] }
 0x113   :  { %v1087_v42 = vmax.f32 %v1085_v50, 0.0  ;;  %v1233_v12 = vadd.f32 %v1231_v3, %v1215_v58  ;;  %v1248_v14 = vstv %s3028_s16  ;;  %v1183_v44 = vmul.f32 %v3044_v43, %v1182_v60  ;;  %s3178_s16 = sld [smem:[#allocation7 + $0x11]] }
 0x114   :  { %1089 = vst [vmem:[#allocation9 + $0x30] sm:$0xff] %v1086_v57  ;;  %v1184_v7 = vmul.f32 %v3051_v19, %v1182_v60  ;;  %v1200_v10 = vstv %s3031_s17  ;;  %v1234_v16 = vadd.f32 %v1232_v17, %v1216_v62  ;;  %v1173_v18 = vadd.f32 %v1171_v49, %v1155_v59  ;;  %s3181_s17 = sld [smem:[#allocation6 + $0x23]] }
 0x115   :  { %1090 = vst [vmem:[#allocation9 + $0x38] sm:$0xff] %v1087_v42  ;;  %v1189_v46 = vmul.f32 %v3064_v4, %v1188_v15  ;;  %v1249_v13 = vmul.f32 %v1248_v14, %v2108_v32  ;;  %v1250_v54 = vmul.f32 %v1248_v14, %v2114_v34  ;;  %v1174_v0 = vadd.f32 %v1172_v55, %v1156_v48 }
 0x116   :  { %v1190_v61 = vmul.f32 %v3069_v6, %v1188_v15  ;;  %v1206_v2 = vstv %s3037_s18  ;;  %v1266_v8 = vstv %s3039_s19  ;;  %v1201_v20 = vmul.f32 %v3064_v4, %v1200_v10  ;;  %s3184_s18 = sld [smem:[#allocation6 + $0x77]]  ;;  %s3194_s19 = sld [smem:[#allocation6 + $0x29]] }
 0x117   :  { %v1251_v21 = vadd.f32 %v1249_v13, %v1233_v12  ;;  %v1252_v5 = vadd.f32 %v1250_v54, %v1234_v16  ;;  %v1185_v9 = vadd.f32 %v1183_v44, %v1167_v63  ;;  %v1186_v1 = vadd.f32 %v1184_v7, %v1168_v56  ;;  %v3106_v12 = vld [vmem:[#allocation2 + $0x30] sm:$0xff]  ;;  %v3109_v44 = vld [vmem:[#allocation2 + $0x38] sm:$0xff] }
 0x118   :  { %v1202_v45 = vmul.f32 %v3069_v6, %v1200_v10  ;;  %v1267_v51 = vmul.f32 %v1266_v8, %v2111_v33  ;;  %v1191_v53 = vadd.f32 %v1189_v46, %v1173_v18  ;;  %v1207_v41 = vmul.f32 %v3081_v22, %v1206_v2 }
 0x119   :  { %v1268_v59 = vmul.f32 %v1266_v8, %v2123_v37  ;;  %v1284_v40 = vstv %s3049_s20  ;;  %v1192_v11 = vadd.f32 %v1190_v61, %v1174_v0  ;;  %v1208_v52 = vmul.f32 %v3086_v47, %v1206_v2  ;;  %s3198_s20 = sld [smem:[#allocation6 + $0x89]] }
 0x11a   :  { %v1218_v58 = vstv %s3055_s21  ;;  %v1269_v50 = vadd.f32 %v1267_v51, %v1251_v21  ;;  %v1224_v62 = vstv %s3062_s22  ;;  %v1285_v26 = vmul.f32 %v1284_v40, %v2117_v35  ;;  %s3204_s21 = sld [smem:[#allocation6 + $0x35]]  ;;  %s3209_s22 = sld [smem:[#allocation6 + $0x3b]] }
 0x11b   :  { %v1270_v48 = vadd.f32 %v1268_v59, %v1252_v5  ;;  %v1286_v57 = vmul.f32 %v1284_v40, %v2126_v38  ;;  %v1203_v49 = vadd.f32 %v1201_v20, %v1185_v9  ;;  %v1204_v60 = vadd.f32 %v1202_v45, %v1186_v1 }
 0x11c   :  { %v1209_v3 = vadd.f32 %v1207_v41, %v1191_v53  ;;  %v1219_v42 = vmul.f32 %v3081_v22, %v1218_v58  ;;  %v1210_v55 = vadd.f32 %v1208_v52, %v1192_v11  ;;  %v1236_v15 = vstv %s3073_s23  ;;  %s3216_s23 = sld [smem:[#allocation6 + $0x9b]] }
 0x11d   :  { %v1287_v17 = vadd.f32 %v1285_v26, %v1269_v50  ;;  %v1288_v63 = vadd.f32 %v1286_v57, %v1270_v48  ;;  %v1220_v56 = vmul.f32 %v3086_v47, %v1218_v58  ;;  %v1225_v14 = vmul.f32 %v3106_v12, %v1224_v62 }
 0x11e   :  { %v1226_v7 = vmul.f32 %v3109_v44, %v1224_v62  ;;  %v1302_v10 = vstv %s3077_s24  ;;  %v1221_v46 = vadd.f32 %v1219_v42, %v1203_v49  ;;  %v1237_v13 = vmul.f32 %v3106_v12, %v1236_v15  ;;  %s3219_s24 = sld [smem:[#allocation6 + $0x47]] }
 0x11f   :  { %v1303_v16 = vmul.f32 %v1302_v10, %v2120_v36  ;;  %v1304_v18 = vmul.f32 %v1302_v10, %v2133_v39  ;;  %v1222_v61 = vadd.f32 %v1220_v56, %v1204_v60  ;;  %v1227_v2 = vadd.f32 %v1225_v14, %v1209_v3 }
 0x120   :  { %v1228_v8 = vadd.f32 %v1226_v7, %v1210_v55  ;;  %v1242_v20 = vstv %s3090_s26  ;;  %v1238_v21 = vmul.f32 %v3109_v44, %v1236_v15  ;;  %v1254_v5 = vstv %s3093_s27  ;;  %s3223_s26 = sld [smem:[#allocation6 + $0x4d]] }
 0x121   :  { %v1305_v54 = vadd.f32 %v1303_v16, %v1287_v17  ;;  %v1306_v0 = vadd.f32 %v1304_v18, %v1288_v63  ;;  %v1239_v45 = vadd.f32 %v1237_v13, %v1221_v46  ;;  %v1337_v51 = vstv %s3097_s28  ;;  %s3226_s27 = sld [smem:[#allocation6 + $0xad]]  ;;  %s3230_s28 = sld [smem:[#allocation6 + $0x59]] }
 0x122   :  { %v1347_v53 = vstv %s3100_s29  ;;  %v1365_v41 = vstv %s3102_s30  ;;  %v1243_v59 = vmul.f32 %v1242_v20, %v2108_v32  ;;  %v1244_v40 = vmul.f32 %v1242_v20, %v2114_v34  ;;  %s3237_s29 = sld [smem:[#allocation6 + $0x5f]] }
 0x123   :  { %v1797_v9 = vmul.f32 -1.442695, %v1305_v54  ;;  %v1798_v1 = vmul.f32 -1.442695, %v1306_v0  ;;  %v1348_v11 = vmul.f32 %v1347_v53, %v2081_v25  ;;  %v1255_v52 = vmul.f32 %v1254_v5, %v2108_v32  ;;  %s3242_s30 = sld [smem:[#allocation6 + $0xbf]] }
 0x124   :  { %v1260_v58 = vstv %s3112_s4  ;;  %v1349_v50 = vmul.f32 %v1347_v53, %v2075_v23  ;;  %v1240_v48 = vadd.f32 %v1238_v21, %v1222_v61  ;;  %v1366_v26 = vmul.f32 %v1365_v41, %v2095_v29  ;;  %s3245_s4 = sld [smem:[#allocation6 + $0x6b]] }
 0x125   :  { %1878 = vpow2.f32 %v1797_v9  ;;  %v1350_v62 = vadd.f32 %v1348_v11, %v1337_v51  ;;  %v1256_v57 = vmul.f32 %v1254_v5, %v2114_v34  ;;  %v1272_v49 = vstv %s3118_s5  ;;  %s3251_s5 = sld [smem:[#allocation6 + $0xd1]] }
 0x126   :  { %1880 = vpow2.f32 %v1798_v1  ;;  %v1351_v60 = vadd.f32 %v1349_v50, %v1337_v51  ;;  %v1367_v3 = vmul.f32 %v1365_v41, %v2078_v24  ;;  %v1245_v42 = vadd.f32 %v1243_v59, %v1227_v2 }
 0x127   :  { %v1261_v55 = vmul.f32 %v1260_v58, %v2111_v33  ;;  %v1246_v15 = vadd.f32 %v1244_v40, %v1228_v8  ;;  %v1257_v17 = vadd.f32 %v1255_v52, %v1239_v45  ;;  %v1262_v63 = vmul.f32 %v1260_v58, %v2123_v37 }
 0x128   :  { %v1278_v56 = vstv %s3121_s6  ;;  %v1273_v14 = vmul.f32 %v1272_v49, %v2111_v33  ;;  %v1368_v7 = vadd.f32 %v1366_v26, %v1350_v62  ;;  %v1369_v10 = vadd.f32 %v1367_v3, %v1351_v60  ;;  %s3254_s6 = sld [smem:[#allocation6 + $0x71]] }
 0x129   :  { %v1383_v16 = vstv %s3125_s0  ;;  %v1258_v18 = vadd.f32 %v1256_v57, %v1240_v48  ;;  %v1263_v54 = vadd.f32 %v1261_v55, %v1245_v42  ;;  %v1274_v0 = vmul.f32 %v1272_v49, %v2123_v37  ;;  %s3260_s0 = sld [smem:[#allocation6 + $0x7d]] }
 0x12a   :  { %v1384_v46 = vmul.f32 %v1383_v16, %v2098_v30  ;;  %v1385_v13 = vmul.f32 %v1383_v16, %v2089_v27  ;;  %v1279_v61 = vmul.f32 %v1278_v56, %v2117_v35  ;;  %v1290_v2 = vstv %s3132_s2  ;;  %s3267_s2 = sld [smem:[#allocation6 + $0x83]] }
 0x12b   :  { %v1264_v8 = vadd.f32 %v1262_v63, %v1246_v15  ;;  %v1401_v20 = vstv %s3138_s7  ;;  %v1275_v5 = vadd.f32 %v1273_v14, %v1257_v17  ;;  %v1280_v9 = vmul.f32 %v1278_v56, %v2126_v38  ;;  %s3273_s7 = sld [smem:[#allocation6 + $0x8f]] }
 0x12c   :  { %v1386_v1 = vadd.f32 %v1384_v46, %v1368_v7  ;;  %v1387_v45 = vadd.f32 %v1385_v13, %v1369_v10  ;;  %v1291_v53 = vmul.f32 %v1290_v2, %v2117_v35  ;;  %v1402_v59 = vmul.f32 %v1401_v20, %v2105_v31 }
 0x12d   :  { %v1403_v40 = vmul.f32 %v1401_v20, %v2092_v28  ;;  %v1276_v11 = vadd.f32 %v1274_v0, %v1258_v18  ;;  %v1281_v52 = vadd.f32 %v1279_v61, %v1263_v54  ;;  %v1296_v58 = vstv %s3145_s8  ;;  %s3281_s8 = sld [smem:[#allocation6 + $0x95]] }
 0x12e   :  { %v1292_v48 = vmul.f32 %v1290_v2, %v2126_v38  ;;  %v1308_v62 = vstv %s3149_s9  ;;  %v1341_v26 = vstv %s3151_s10  ;;  %v1404_v57 = vadd.f32 %v1402_v59, %v1386_v1  ;;  %s3288_s9 = sld [smem:[#allocation6 + $0xa1]]  ;;  %s3293_s10 = sld [smem:[#allocation6 + $0xa7]] }
 0x12f   :  { %v1879_v21 = vpop.eup %1878  ;;  %v1405_v49 = vadd.f32 %v1403_v40, %v1387_v45  ;;  %v1419_v60 = vstv %s3155_s11  ;;  %v1282_v3 = vadd.f32 %v1280_v9, %v1264_v8  ;;  %v1293_v42 = vadd.f32 %v1291_v53, %v1275_v5  ;;  %s3298_s11 = sld [smem:[#allocation6 + $0xb3]] }
 0x130   :  { %v1881_v51 = vpop.eup %1880  ;;  %v1319_v41 = vadd.f32 1.0, %v1879_v21  ;;  %v1297_v55 = vmul.f32 %v1296_v58, %v2120_v36  ;;  %v1420_v15 = vmul.f32 %v3044_v43, %v1419_v60  ;;  %v1298_v17 = vmul.f32 %v1296_v58, %v2133_v39 }
 0x131   :  { %v1320_v50 = vadd.f32 1.0, %v1881_v51  ;;  %v1309_v63 = vmul.f32 %v1308_v62, %v2120_v36  ;;  %v1421_v56 = vmul.f32 %v3051_v19, %v1419_v60  ;;  %v1437_v14 = vstv %s3162_s12  ;;  %s3303_s12 = sld [smem:[#allocation6 + $0xb9]] }
 0x132   :  { %1882 = vrcp.f32 %v1319_v41  ;;  %v1294_v7 = vadd.f32 %v1292_v48, %v1276_v11  ;;  %v1310_v10 = vmul.f32 %v1308_v62, %v2133_v39  ;;  %v1342_v16 = vmul.f32 %v1341_v26, %v2081_v25 }
 0x133   :  { %1884 = vrcp.f32 %v1320_v50  ;;  %v1335_v18 = vstv %s3166_s13  ;;  %v1353_v46 = vstv %s3168_s14  ;;  %v1422_v13 = vadd.f32 %v1420_v15, %v1404_v57  ;;  %s3308_s13 = sld [smem:[#allocation6 + $0xc5]]  ;;  %s3313_s14 = sld [smem:[#allocation6 + $0xcb]] }
 0x134   :  { %v1423_v54 = vadd.f32 %v1421_v56, %v1405_v49  ;;  %v1299_v0 = vadd.f32 %v1297_v55, %v1281_v52  ;;  %v1438_v61 = vmul.f32 %v3064_v4, %v1437_v14  ;;  %v1439_v2 = vmul.f32 %v3069_v6, %v1437_v14 }
 0x135   :  { %v1300_v8 = vadd.f32 %v1298_v17, %v1282_v3  ;;  %v1311_v20 = vadd.f32 %v1309_v63, %v1293_v42  ;;  %v1343_v21 = vmul.f32 %v1341_v26, %v2075_v23  ;;  %v1359_v5 = vstv %s3174_s15  ;;  %s3318_s15 = sld [smem:[#allocation6 + $0xd7]] }
 0x136   :  { %v1312_v9 = vadd.f32 %v1310_v10, %v1294_v7  ;;  %v1339_v1 = vstv %s3178_s16  ;;  %v1344_v45 = vadd.f32 %v1342_v16, %v1335_v18  ;;  %v1354_v51 = vmul.f32 %v1353_v46, %v2081_v25  ;;  %s1991_s16 = smov [#allocation9]  }
 0x137   :  { %v1371_v53 = vstv %s3181_s17  ;;  %v1440_v41 = vadd.f32 %v1438_v61, %v1422_v13  ;;  %v1441_v59 = vadd.f32 %v1439_v2, %v1423_v54  ;;  %v1455_v40 = vstv %s3184_s18  ;;  %s1582_s17 = sshll.u32 %s1991_s16, 4  ;;  %s1583_s17 = int_to_ptr.vmem [resolvable:$true] %s1582_s17 }
 0x138   :  { %v1355_v52 = vmul.f32 %v1353_v46, %v2075_v23  ;;  %v1360_v58 = vmul.f32 %v1359_v5, %v2095_v29  ;;  %v1456_v50 = vmul.f32 %v3081_v22, %v1455_v40  ;;  %v1457_v48 = vmul.f32 %v3086_v47, %v1455_v40  ;;  %s1956_s18 = scalar_lea.vmem %s1583_s17, 1536  ;;  %p1961_p5 = scmp.lt.s32.totalorder %s1583_s17, %s1583_s17 }
 0x139   :  { %v1345_v26 = vadd.f32 %v1343_v21, %v1335_v18  ;;  %v1361_v57 = vmul.f32 %v1359_v5, %v2078_v24  ;;  %v1356_v60 = vadd.f32 %v1354_v51, %v1339_v1  ;;  %v1372_v23 = vmul.f32 %v1371_v53, %v2095_v29  ;;  %p1957_p4 = scmp.ne.s32.totalorder %s1583_s17, %s1956_s18  ;;  %p1962_p6 = scmp.lt.s32.totalorder %s1956_s18, %s1956_s18 }
 0x13a   :  { %v1377_v3 = vstv %s3194_s19  ;;  %v1458_v55 = vadd.f32 %v1456_v50, %v1440_v41  ;;  %v1459_v15 = vadd.f32 %v1457_v48, %v1441_v59  ;;  %v1473_v17 = vstv %s3198_s20 }
 0x13b   :  { %v1357_v56 = vadd.f32 %v1355_v52, %v1339_v1  ;;  %v1362_v14 = vadd.f32 %v1360_v58, %v1344_v45  ;;  %v1373_v7 = vmul.f32 %v1371_v53, %v2078_v24  ;;  %v1389_v16 = vstv %s3204_s21  ;;  %p1963_p7 = por %p1962_p6, %p1961_p5 }
 0x13c   :  { %v1883_v11 = vpop.eup %1882  ;;  %v1474_v29 = vmul.f32 %v3106_v12, %v1473_v17  ;;  %v1475_v18 = vmul.f32 %v3109_v44, %v1473_v17  ;;  %v1363_v13 = vadd.f32 %v1361_v57, %v1345_v26  ;;  %v1378_v54 = vmul.f32 %v1377_v3, %v2098_v30 }
 0x13d   :  { %v1885_v25 = vpop.eup %1884  ;;  %v1325_v62 = vmul.f32 %v1883_v11, %v1299_v0  ;;  %v1379_v0 = vmul.f32 %v1377_v3, %v2089_v27  ;;  %v1374_v61 = vadd.f32 %v1372_v23, %v1356_v60  ;;  %v1395_v2 = vstv %s3209_s22  ;;  %p1964_p8 = pnand %p1963_p7, %p1957_p4 }
 0x13e   :  { %v1326_v49 = vmul.f32 %v1885_v25, %v1300_v8  ;;  %v1476_v24 = vadd.f32 %v1474_v29, %v1458_v55  ;;  %v1477_v8 = vadd.f32 %v1475_v18, %v1459_v15  ;;  %v1390_v21 = vmul.f32 %v1389_v16, %v2098_v30 }
 0x13f   :  { %v1327_v42 = vadd.f32 %v1325_v62, %v1311_v20  ;;  %v1375_v20 = vadd.f32 %v1373_v7, %v1357_v56  ;;  %v1391_v5 = vmul.f32 %v1389_v16, %v2089_v27  ;;  %v1407_v1 = vstv %s3219_s24 }
 0x140   :  { %v1328_v63 = vadd.f32 %v1326_v49, %v1312_v9  ;;  %v1491_v9 = vstv %s3216_s23  ;;  %v1380_v53 = vadd.f32 %v1378_v54, %v1362_v14  ;;  %v1381_v41 = vadd.f32 %v1379_v0, %v1363_v13 }
 0x141   :  { %v1329_v10 = vmax.f32 %v1327_v42, 0.0  ;;  %v1492_v45 = vmul.f32 %v1491_v9, %v2108_v32  ;;  %v1493_v51 = vmul.f32 %v1491_v9, %v2114_v34  ;;  %v1396_v59 = vmul.f32 %v1395_v2, %v2105_v31 }
 0x142   :  { %v1330_v46 = vmax.f32 %v1328_v63, 0.0  ;;  %v1397_v30 = vmul.f32 %v1395_v2, %v2092_v28  ;;  %v1413_v27 = vstv %s3223_s26  ;;  %v1509_v52 = vstv %s3226_s27 }
 0x143   :  { %1332 = vst [vmem:[#allocation9 + $0x40] sm:$0xff] %v1329_v10  ;;  %v1494_v40 = vadd.f32 %v1492_v45, %v1476_v24  ;;  %v1495_v11 = vadd.f32 %v1493_v51, %v1477_v8  ;;  %v1392_v58 = vadd.f32 %v1390_v21, %v1374_v61  ;;  %v1393_v50 = vadd.f32 %v1391_v5, %v1375_v20 }
 0x144   :  { %1333 = vst [vmem:[#allocation9 + $0x48] sm:$0xff] %v1330_v46  ;;  %v1408_v48 = vmul.f32 %v1407_v1, %v2105_v31  ;;  %v1409_v25 = vmul.f32 %v1407_v1, %v2092_v28  ;;  %v1425_v62 = vstv %s3230_s28  ;;  %v1510_v26 = vmul.f32 %v1509_v52, %v2111_v33 }
 0x145   :  { %v1511_v57 = vmul.f32 %v1509_v52, %v2123_v37  ;;  %v1398_v49 = vadd.f32 %v1396_v59, %v1380_v53  ;;  %v1399_v60 = vadd.f32 %v1397_v30, %v1381_v41  ;;  %v1414_v23 = vmul.f32 %v3044_v43, %v1413_v27 }
 0x146   :  { %v1415_v3 = vmul.f32 %v3051_v19, %v1413_v27  ;;  %v1431_v42 = vstv %s3237_s29  ;;  %v1512_v28 = vadd.f32 %v1510_v26, %v1494_v40  ;;  %v1410_v55 = vadd.f32 %v1408_v48, %v1392_v58 }
 0x147   :  { %v1513_v31 = vadd.f32 %v1511_v57, %v1495_v11  ;;  %v1411_v15 = vadd.f32 %v1409_v25, %v1393_v50  ;;  %v1426_v17 = vmul.f32 %v3044_v43, %v1425_v62  ;;  %v1527_v63 = vstv %s3242_s30 }
 0x148   :  { %v1427_v56 = vmul.f32 %v3051_v19, %v1425_v62  ;;  %v1443_v14 = vstv %s3245_s4  ;;  %v1528_v7 = vmul.f32 %v1527_v63, %v2117_v35  ;;  %v1529_v10 = vmul.f32 %v1527_v63, %v2126_v38 }
 0x149   :  { %v1416_v16 = vadd.f32 %v1414_v23, %v1398_v49  ;;  %v1417_v29 = vadd.f32 %v1415_v3, %v1399_v60  ;;  %v1432_v18 = vmul.f32 %v3064_v4, %v1431_v42  ;;  %v1545_v46 = vstv %s3251_s5 }
 0x14a   :  { %v1433_v13 = vmul.f32 %v3069_v6, %v1431_v42  ;;  %v1449_v54 = vstv %s3254_s6  ;;  %v1530_v43 = vadd.f32 %v1528_v7, %v1512_v28  ;;  %v1531_v19 = vadd.f32 %v1529_v10, %v1513_v31 }
 0x14b   :  { %v1428_v0 = vadd.f32 %v1426_v17, %v1410_v55  ;;  %v1444_v61 = vmul.f32 %v3064_v4, %v1443_v14  ;;  %v1546_v2 = vmul.f32 %v1545_v46, %v2120_v36  ;;  %v1547_v24 = vmul.f32 %v1545_v46, %v2133_v39 }
 0x14c   :  { %v1429_v8 = vadd.f32 %v1427_v56, %v1411_v15  ;;  %v1445_v20 = vmul.f32 %v3069_v6, %v1443_v14  ;;  %v1461_v21 = vstv %s3260_s0  ;;  %v1434_v5 = vadd.f32 %v1432_v18, %v1416_v16 }
 0x14d   :  { %v1450_v9 = vmul.f32 %v3081_v22, %v1449_v54  ;;  %v1548_v1 = vadd.f32 %v1546_v2, %v1530_v43  ;;  %v1549_v45 = vadd.f32 %v1547_v24, %v1531_v19  ;;  %v1435_v51 = vadd.f32 %v1433_v13, %v1417_v29 }
 0x14e   :  { %v1451_v53 = vmul.f32 %v3086_v47, %v1449_v54  ;;  %v1467_v4 = vstv %s3267_s2  ;;  %v1446_v41 = vadd.f32 %v1444_v61, %v1428_v0  ;;  %v1462_v59 = vmul.f32 %v3081_v22, %v1461_v21 }
 0x14f   :  { %v1838_v6 = vmul.f32 -1.442695, %v1548_v1  ;;  %v1839_v30 = vmul.f32 -1.442695, %v1549_v45  ;;  %v1447_v27 = vadd.f32 %v1445_v20, %v1429_v8  ;;  %v1463_v40 = vmul.f32 %v3086_v47, %v1461_v21 }
 0x150   :  { %v1479_v11 = vstv %s3273_s7  ;;  %v1452_v52 = vadd.f32 %v1450_v9, %v1434_v5  ;;  %v1468_v58 = vmul.f32 %v3106_v12, %v1467_v4  ;;  %v1453_v50 = vadd.f32 %v1451_v53, %v1435_v51 }
 0x151   :  { %1886 = vpow2.f32 %v1838_v6  ;;  %v1469_v48 = vmul.f32 %v3109_v44, %v1467_v4  ;;  %v1485_v25 = vstv %s3281_s8  ;;  %v1464_v22 = vadd.f32 %v1462_v59, %v1446_v41 }
 0x152   :  { %1888 = vpow2.f32 %v1839_v30  ;;  %v1480_v62 = vmul.f32 %v3106_v12, %v1479_v11  ;;  %v1465_v47 = vadd.f32 %v1463_v40, %v1447_v27  ;;  %v1481_v26 = vmul.f32 %v3109_v44, %v1479_v11 }
 0x153   :  { %v1497_v57 = vstv %s3288_s9  ;;  %v1470_v49 = vadd.f32 %v1468_v58, %v1452_v52  ;;  %v1486_v60 = vmul.f32 %v1485_v25, %v2108_v32  ;;  %v1471_v23 = vadd.f32 %v1469_v48, %v1453_v50 }
 0x154   :  { %v1487_v3 = vmul.f32 %v1485_v25, %v2114_v34  ;;  %v1503_v42 = vstv %s3293_s10  ;;  %v1482_v28 = vadd.f32 %v1480_v62, %v1464_v22  ;;  %v1498_v31 = vmul.f32 %v1497_v57, %v2108_v32 }
 0x155   :  { %v1483_v12 = vadd.f32 %v1481_v26, %v1465_v47  ;;  %v1499_v44 = vmul.f32 %v1497_v57, %v2114_v34  ;;  %v1515_v55 = vstv %s3298_s11  ;;  %v1488_v15 = vadd.f32 %v1486_v60, %v1470_v49 }
 0x156   :  { %v1504_v17 = vmul.f32 %v1503_v42, %v2111_v33  ;;  %v1489_v63 = vadd.f32 %v1487_v3, %v1471_v23  ;;  %v1505_v56 = vmul.f32 %v1503_v42, %v2123_v37  ;;  %v1521_v14 = vstv %s3303_s12 }
 0x157   :  { %v1500_v10 = vadd.f32 %v1498_v31, %v1482_v28  ;;  %v1516_v16 = vmul.f32 %v1515_v55, %v2111_v33  ;;  %v1501_v29 = vadd.f32 %v1499_v44, %v1483_v12  ;;  %v1517_v34 = vmul.f32 %v1515_v55, %v2123_v37 }
 0x158   :  { %v1533_v18 = vstv %s3308_s13  ;;  %v1506_v13 = vadd.f32 %v1504_v17, %v1488_v15  ;;  %v1522_v54 = vmul.f32 %v1521_v14, %v2117_v35  ;;  %v1507_v19 = vadd.f32 %v1505_v56, %v1489_v63 }
 0x159   :  { %v1523_v0 = vmul.f32 %v1521_v14, %v2126_v38  ;;  %v1539_v61 = vstv %s3313_s14  ;;  %v1518_v2 = vadd.f32 %v1516_v16, %v1500_v10  ;;  %v1534_v24 = vmul.f32 %v1533_v18, %v2117_v35 }
 0x15a   :  { %v1519_v33 = vadd.f32 %v1517_v34, %v1501_v29  ;;  %v1535_v8 = vmul.f32 %v1533_v18, %v2126_v38  ;;  %v1551_v20 = vstv %s3318_s15  ;;  %v1524_v37 = vadd.f32 %v1522_v54, %v1506_v13 }
 0x15b   :  { %v1887_v7 = vpop.eup %1886  ;;  %v1540_v21 = vmul.f32 %v1539_v61, %v2120_v36  ;;  %v1525_v5 = vadd.f32 %v1523_v0, %v1507_v19  ;;  %v1541_v9 = vmul.f32 %v1539_v61, %v2133_v39  ;;  %v1536_v1 = vadd.f32 %v1534_v24, %v1518_v2 }
 0x15c   :  { %v1889_v32 = vpop.eup %1888  ;;  %v1562_v46 = vadd.f32 1.0, %v1887_v7  ;;  %v1552_v45 = vmul.f32 %v1551_v20, %v2120_v36  ;;  %v1537_v51 = vadd.f32 %v1535_v8, %v1519_v33  ;;  %v1553_v53 = vmul.f32 %v1551_v20, %v2133_v39 }
 0x15d   :  { %v1563_v43 = vadd.f32 1.0, %v1889_v32  ;;  %v1542_v4 = vadd.f32 %v1540_v21, %v1524_v37  ;;  %v1543_v41 = vadd.f32 %v1541_v9, %v1525_v5 }
 0x15e   :  { %1890 = vrcp.f32 %v1562_v46  ;;  %v1554_v35 = vadd.f32 %v1552_v45, %v1536_v1  ;;  %v1555_v6 = vadd.f32 %v1553_v53, %v1537_v51 }
 0x15f   :  { %1892 = vrcp.f32 %v1563_v43 }
 0x168   :  { %v1891_v59 = vpop.eup %1890 }
 0x169   :  { %v1893_v30 = vpop.eup %1892  ;;  %v1568_v38 = vmul.f32 %v1891_v59, %v1542_v4 }
 0x16a   :  { %v1569_v27 = vmul.f32 %v1893_v30, %v1543_v41 }
 0x16b   :  { %v1570_v40 = vadd.f32 %v1568_v38, %v1554_v35 }
 0x16c   :  { %v1571_v11 = vadd.f32 %v1569_v27, %v1555_v6 }
 0x16d   :  { %v1572_v52 = vmax.f32 %v1570_v40, 0.0 }
 0x16e   :  { %v1573_v58 = vmax.f32 %v1571_v11, 0.0 }
 0x16f   :  { %1575 = vst [vmem:[#allocation9 + $0x50] sm:$0xff] %v1572_v52 }
 0x170   :  { %1576 = vst [vmem:[#allocation9 + $0x58] sm:$0xff] %v1573_v58 }
 0x171   :  { %1967 = shalt.err (!%p1964_p8)
}
 0x172   :  { %s1968_s21 = scalar_lea.hbm %s3354_s3, 1536 }
 0x173   :  { %p1969_p9 = scmp.ne.s32.totalorder %s3354_s3, %s1968_s21  ;;  %p1972_p10 = scmp.lt.u32.totalorder %s1968_s21, %s3354_s3 }
 0x175   :  { %p1974_p11 = pnand %p1972_p10, %p1969_p9 }
 0x177   :  { %1977 = shalt.err (!%p1974_p11)
}
 0x178   :  { %1588 = dma.vmem_to_hbm [thread:$0]  %s1583_s17, 1536, %s3354_s3, [#allocation4], %s1987_s1, %s1987_s1, %s1988_s25  }
 0x179   :  { %1984 = dma.done.wait [#allocation4], 1536  }
 0x17a   :  { %1985 = vsyncadd [#allocation4], 4294965760 }
 0x17b   :  { %1592 = vsyncpa [#allocation3], 1 }
 0x17c   :  { %1593 = vsyncpa [#allocation4], 1 }
 0x17d   :  { %1594 = vsyncpa [#allocation5], 1 }
 0x17e   :  { %1595 = vsyncpa [#allocation8], 1 }

</bundles_post_ra>
